<compile_context>
chip_gen: v6e
topology: v6e:2x2x1
jax: 0.10.0
libtpu: 0.0.40
codegen_flags: <defaults>
</compile_context>

<pallas_src>
from functools import partial

import jax
import jax.numpy as jnp
from jax.experimental import pallas as pl
from jax.experimental.pallas import tpu as pltpu

WS_EPS = 1e-5   # WeightStandardizedConv2d eps for float32 inputs
GN_EPS = 1e-5   # nn.GroupNorm default eps
LANE = 128


def _round_up(x, m):
    return (x + m - 1) // m * m


# --------------------------------------------------------------------------
# Pallas kernels
# --------------------------------------------------------------------------
def _conv3x3_kernel(x_ref, w_ref, b_ref, o_ref, acc_ref, *, H, W):
    """3x3 conv (padding=1) for one batch image x one Cout tile.

    x_ref  : (1, H+2, W+2, Cin_p)  f32  (spatially pre-padded activations)
    w_ref  : (3, 3, Cin_p, TCO)    bf16 (weight-standardized, packed)
    b_ref  : (1, TCO)              f32
    o_ref  : (1, H, W, TCO)        f32
    acc_ref: (H*W, TCO)            f32  VMEM scratch accumulator
    """
    cin = x_ref.shape[3]
    first = True
    for dy in range(3):
        for dx in range(3):
            # halo'd spatial slice of the VMEM-resident block (no im2col copy)
            patch = x_ref[0, dy:dy + H, dx:dx + W, :].reshape(H * W, cin)
            contrib = jnp.dot(patch.astype(jnp.bfloat16), w_ref[dy, dx],
                              preferred_element_type=jnp.float32)
            if first:
                acc_ref[...] = contrib
                first = False
            else:
                acc_ref[...] += contrib
    out = acc_ref[...] + b_ref[...]
    o_ref[...] = out.reshape(o_ref.shape).astype(o_ref.dtype)


def _groupnorm(x, mask, mask_t, gamma, beta, count):
    """GroupNorm + affine on one (HW, C_p) slab, f32 throughout.

    mask (C_p, G) zeroes out padded channels so they never contaminate the
    per-(batch, group) statistics; `count` is the *real* HW * (C // G).
    """
    colsum = jnp.sum(x, axis=0, keepdims=True)                     # (1, C_p)
    colsq = jnp.sum(x * x, axis=0, keepdims=True)                  # (1, C_p)
    gsum = jnp.dot(colsum, mask, preferred_element_type=jnp.float32)   # (1, G)
    gsq = jnp.dot(colsq, mask, preferred_element_type=jnp.float32)     # (1, G)
    mean = gsum / count
    var = jnp.maximum(gsq / count - mean * mean, 0.0)              # clamp >= 0
    inv = jax.lax.rsqrt(var + GN_EPS)
    mean_c = jnp.dot(mean, mask_t, preferred_element_type=jnp.float32)  # (1, C_p)
    inv_c = jnp.dot(inv, mask_t, preferred_element_type=jnp.float32)    # (1, C_p)
    return (x - mean_c) * inv_c * gamma + beta


def _gn_ss_silu_kernel(h_ref, mask_ref, mask_t_ref, gamma_ref, beta_ref,
                       scale_ref, shift_ref, o_ref, *, count):
    # h:(1,HW,C_p)  mask:(C_p,G)  mask_t:(G,C_p)  gamma/beta:(1,C_p)
    # scale/shift:(1,1,C_p)
    x = h_ref[0].astype(jnp.float32)
    y = _groupnorm(x, mask_ref[...], mask_t_ref[...],
                   gamma_ref[...], beta_ref[...], count)
    y = y * (scale_ref[0] + 1.0) + shift_ref[0]
    o_ref[0] = (y * jax.nn.sigmoid(y)).astype(o_ref.dtype)         # SiLU


def _gn_silu_res_kernel(h_ref, x_ref, rw_ref, rb_ref, mask_ref, mask_t_ref,
                        gamma_ref, beta_ref, o_ref, *, count):
    # GroupNorm + SiLU fused with the 1x1 residual conv + add.
    # h:(1,HW,C_p) f32   x:(1,HW,Cin_p) bf16   rw:(Cin_p,C_p) bf16  rb:(1,C_p)
    x = h_ref[0].astype(jnp.float32)
    y = _groupnorm(x, mask_ref[...], mask_t_ref[...],
                   gamma_ref[...], beta_ref[...], count)
    y = y * jax.nn.sigmoid(y)                                      # SiLU
    res = jnp.dot(x_ref[0], rw_ref[...],
                  preferred_element_type=jnp.float32) + rb_ref[...]
    o_ref[0] = (y + res).astype(o_ref.dtype)


# --------------------------------------------------------------------------
# pallas_call wrappers (gridded, pipelined, lane-dense outputs)
# --------------------------------------------------------------------------
def conv3x3_ws(x_sp, w_pack, bias, H, W):
    """x_sp:(B,H+2,W+2,Cin_p) f32, w_pack:(3,3,Cin_p,Cout_p) bf16, bias:(1,Cout_p)."""
    B = x_sp.shape[0]
    cin_p = x_sp.shape[3]
    cout_p = w_pack.shape[3]
    tco = 256 if cout_p % 256 == 0 else 128       # lane-dense Cout tile
    n_co = cout_p // tco
    return pl.pallas_call(
        partial(_conv3x3_kernel, H=H, W=W),
        out_shape=jax.ShapeDtypeStruct((B, H, W, cout_p), jnp.float32),
        grid_spec=pltpu.PrefetchScalarGridSpec(
            num_scalar_prefetch=0,
            grid=(B, n_co),
            in_specs=[
                # x block constant across j -> re-fetch skipped by the pipeline
                pl.BlockSpec((1, H + 2, W + 2, cin_p), lambda b, j: (b, 0, 0, 0)),
                pl.BlockSpec((3, 3, cin_p, tco), lambda b, j: (0, 0, 0, j)),
                pl.BlockSpec((1, tco), lambda b, j: (0, j)),
            ],
            out_specs=pl.BlockSpec((1, H, W, tco), lambda b, j: (b, 0, 0, j)),
            scratch_shapes=[pltpu.VMEM((H * W, tco), jnp.float32)],
        ),
        compiler_params=pltpu.CompilerParams(
            dimension_semantics=("parallel", "parallel")),
    )(x_sp, w_pack, bias)


def gn_scale_shift_silu(h, mask, mask_t, gamma, beta, scale, shift, count):
    """h:(B,HW,C_p) f32, scale/shift:(B,1,C_p) -> (B,HW,C_p) f32."""
    B, HW, c_p = h.shape
    G = mask.shape[1]
    # TODO(synk): for very large H*W, tile the HW axis (two-pass stats) instead
    # of one (HW, C_p) block per batch element.
    return pl.pallas_call(
        partial(_gn_ss_silu_kernel, count=count),
        out_shape=jax.ShapeDtypeStruct((B, HW, c_p), jnp.float32),
        grid_spec=pltpu.PrefetchScalarGridSpec(
            num_scalar_prefetch=0,
            grid=(B,),
            in_specs=[
                pl.BlockSpec((1, HW, c_p), lambda b: (b, 0, 0)),
                pl.BlockSpec((c_p, G), lambda b: (0, 0)),
                pl.BlockSpec((G, c_p), lambda b: (0, 0)),
                pl.BlockSpec((1, c_p), lambda b: (0, 0)),
                pl.BlockSpec((1, c_p), lambda b: (0, 0)),
                pl.BlockSpec((1, 1, c_p), lambda b: (b, 0, 0)),
                pl.BlockSpec((1, 1, c_p), lambda b: (b, 0, 0)),
            ],
            out_specs=pl.BlockSpec((1, HW, c_p), lambda b: (b, 0, 0)),
        ),
        compiler_params=pltpu.CompilerParams(dimension_semantics=("parallel",)),
    )(h, mask, mask_t, gamma, beta, scale, shift)


def gn_silu_residual(h, x_flat, res_w, res_b, mask, mask_t, gamma, beta, count):
    """Fused GN+SiLU+1x1 residual conv+add.  Returns (B,HW,C_p) f32."""
    B, HW, c_p = h.shape
    cin_p = x_flat.shape[2]
    G = mask.shape[1]
    return pl.pallas_call(
        partial(_gn_silu_res_kernel, count=count),
        out_shape=jax.ShapeDtypeStruct((B, HW, c_p), jnp.float32),
        grid_spec=pltpu.PrefetchScalarGridSpec(
            num_scalar_prefetch=0,
            grid=(B,),
            in_specs=[
                pl.BlockSpec((1, HW, c_p), lambda b: (b, 0, 0)),
                pl.BlockSpec((1, HW, cin_p), lambda b: (b, 0, 0)),
                pl.BlockSpec((cin_p, c_p), lambda b: (0, 0)),
                pl.BlockSpec((1, c_p), lambda b: (0, 0)),
                pl.BlockSpec((c_p, G), lambda b: (0, 0)),
                pl.BlockSpec((G, c_p), lambda b: (0, 0)),
                pl.BlockSpec((1, c_p), lambda b: (0, 0)),
                pl.BlockSpec((1, c_p), lambda b: (0, 0)),
            ],
            out_specs=pl.BlockSpec((1, HW, c_p), lambda b: (b, 0, 0)),
        ),
        compiler_params=pltpu.CompilerParams(dimension_semantics=("parallel",)),
    )(h, x_flat, res_w, res_b, mask, mask_t, gamma, beta)


# --------------------------------------------------------------------------
# Plain-JAX parameter packing (tiny, param-sized ops)
# --------------------------------------------------------------------------
def weight_standardize(w):
    # w: (Cout, Cin, kh, kw), standardized over (Cin, kh, kw) per filter
    mean = jnp.mean(w, axis=(1, 2, 3), keepdims=True)
    var = jnp.var(w, axis=(1, 2, 3), keepdims=True)            # unbiased=False
    return (w - mean) * jax.lax.rsqrt(var + WS_EPS)


def pack_conv3x3(w_oihw, cin_p, cout_p):
    w = weight_standardize(w_oihw.astype(jnp.float32))
    cout, cin = w.shape[0], w.shape[1]
    w = jnp.transpose(w, (2, 3, 1, 0))                          # (3,3,Cin,Cout)
    w = jnp.pad(w, ((0, 0), (0, 0), (0, cin_p - cin), (0, cout_p - cout)))
    return w.astype(jnp.bfloat16)


def pack_residual(params, cin, cout, cin_p, cout_p):
    if params.get("res_w", None) is not None:                   # 1x1 conv
        w = params["res_w"][:, :, 0, 0].astype(jnp.float32).T   # (Cin, Cout)
        b = params["res_b"].astype(jnp.float32)
    else:                                                       # Identity (dim==dim_out)
        w = jnp.eye(cin, cout, dtype=jnp.float32)
        b = jnp.zeros((cout,), jnp.float32)
    w = jnp.pad(w, ((0, cin_p - cin), (0, cout_p - cout))).astype(jnp.bfloat16)
    b = jnp.pad(b, (0, cout_p - cout)).reshape(1, cout_p)
    return w, b


def make_group_mask(c, g, c_p):
    cg = c // g
    ch = jnp.arange(c_p)
    valid = ch < c
    mask = ((ch[:, None] // cg == jnp.arange(g)[None, :]) & valid[:, None])
    mask = mask.astype(jnp.float32)                             # (C_p, G)
    return mask, mask.T


def _pad_row(v, n):
    v = v.astype(jnp.float32)
    return jnp.pad(v, (0, n - v.shape[0])).reshape(1, n)


# --------------------------------------------------------------------------
# ResnetBlock forward
# --------------------------------------------------------------------------
def resnet_block_forward(x_nchw, time_emb, params, *, groups):
    B, Cin, H, W = x_nchw.shape
    Cout = params["conv1_w"].shape[0]
    assert Cout % groups == 0
    cin_p = _round_up(Cin, LANE)
    cout_p = _round_up(Cout, LANE)
    HW = H * W
    count = float(HW * (Cout // groups))          # real elements per (batch, group)

    # NHWC + lane padding (pad channels stay exactly zero through the block)
    x = jnp.transpose(x_nchw, (0, 2, 3, 1)).astype(jnp.float32)
    x = jnp.pad(x, ((0, 0), (0, 0), (0, 0), (0, cin_p - Cin)))

    # time-embedding MLP (SiLU -> Linear), tiny -> plain XLA
    if time_emb is not None:
        t = time_emb.astype(jnp.float32)
        te = jax.nn.silu(t) @ params["mlp_w"] + params["mlp_b"]  # (B, 2*Cout)
        scale, shift = te[:, :Cout], te[:, Cout:]
    else:
        scale = jnp.zeros((B, Cout), jnp.float32)
        shift = jnp.zeros((B, Cout), jnp.float32)
    scale = jnp.pad(scale, ((0, 0), (0, cout_p - Cout))).reshape(B, 1, cout_p)
    shift = jnp.pad(shift, ((0, 0), (0, cout_p - Cout))).reshape(B, 1, cout_p)

    mask, mask_t = make_group_mask(Cout, groups, cout_p)
    g1 = _pad_row(params["gamma1"], cout_p)
    be1 = _pad_row(params["beta1"], cout_p)
    g2 = _pad_row(params["gamma2"], cout_p)
    be2 = _pad_row(params["beta2"], cout_p)

    w1 = pack_conv3x3(params["conv1_w"], cin_p, cout_p)
    c1b = _pad_row(params["conv1_b"], cout_p)
    w2 = pack_conv3x3(params["conv2_w"], cout_p, cout_p)
    c2b = _pad_row(params["conv2_b"], cout_p)
    res_w, res_b = pack_residual(params, Cin, Cout, cin_p, cout_p)

    # block1: WS-conv3x3 -> GroupNorm -> x*(scale+1)+shift -> SiLU
    x_sp = jnp.pad(x, ((0, 0), (1, 1), (1, 1), (0, 0)))
    h = conv3x3_ws(x_sp, w1, c1b, H, W)                                # (B,H,W,C_p)
    h = gn_scale_shift_silu(h.reshape(B, HW, cout_p), mask, mask_t,
                            g1, be1, scale, shift, count)              # (B,HW,C_p)

    # block2: WS-conv3x3 -> GroupNorm -> SiLU, fused with 1x1 residual + add
    h_sp = jnp.pad(h.reshape(B, H, W, cout_p), ((0, 0), (1, 1), (1, 1), (0, 0)))
    h2 = conv3x3_ws(h_sp, w2, c2b, H, W)
    x_flat = x.reshape(B, HW, cin_p).astype(jnp.bfloat16)
    out = gn_silu_residual(h2.reshape(B, HW, cout_p), x_flat, res_w, res_b,
                           mask, mask_t, g2, be2, count)               # (B,HW,C_p)

    out = out.reshape(B, H, W, cout_p)[..., :Cout]
    return jnp.transpose(out, (0, 3, 1, 2))                            # NCHW


# --------------------------------------------------------------------------
# Deterministic parameter init + smoke test
# --------------------------------------------------------------------------
def init_params(key, dim, dim_out, time_emb_dim):
    ks = jax.random.split(key, 12)
    f32 = jnp.float32
    return {
        "mlp_w": jax.random.normal(ks[0], (time_emb_dim, 2 * dim_out), f32)
                 / jnp.sqrt(f32(time_emb_dim)),
        "mlp_b": 0.02 * jax.random.normal(ks[1], (2 * dim_out,), f32),
        "conv1_w": jax.random.normal(ks[2], (dim_out, dim, 3, 3), f32)
                   / jnp.sqrt(f32(dim * 9)),
        "conv1_b": 0.02 * jax.random.normal(ks[3], (dim_out,), f32),
        "gamma1": 1.0 + 0.1 * jax.random.normal(ks[4], (dim_out,), f32),
        "beta1": 0.1 * jax.random.normal(ks[5], (dim_out,), f32),
        "conv2_w": jax.random.normal(ks[6], (dim_out, dim_out, 3, 3), f32)
                   / jnp.sqrt(f32(dim_out * 9)),
        "conv2_b": 0.02 * jax.random.normal(ks[7], (dim_out,), f32),
        "gamma2": 1.0 + 0.1 * jax.random.normal(ks[8], (dim_out,), f32),
        "beta2": 0.1 * jax.random.normal(ks[9], (dim_out,), f32),
        "res_w": jax.random.normal(ks[10], (dim_out, dim, 1, 1), f32)
                 / jnp.sqrt(f32(dim)),
        "res_b": 0.02 * jax.random.normal(ks[11], (dim_out,), f32),
    }


if __name__ == "__main__":
    B, dim, dim_out, H, W = 2, 4, 16, 16, 16
    time_emb_dim, groups = 32, 8

    key = jax.random.PRNGKey(0)
    kx, kt, kp = jax.random.split(key, 3)
    x = jax.random.normal(kx, (B, dim, H, W), jnp.float32)       # NCHW like PyTorch
    time_emb = jax.random.normal(kt, (B, time_emb_dim), jnp.float32)
    params = init_params(kp, dim, dim_out, time_emb_dim)

    fwd = jax.jit(partial(resnet_block_forward, groups=groups))
    out = fwd(x, time_emb, params)
    out = jax.block_until_ready(out)
    assert out.shape == (B, dim_out, H, W)
    assert bool(jnp.all(jnp.isfinite(out)))
    print("KERNEL_OK")
</pallas_src>

<mosaic_0001>
module attributes {stable_mosaic.version = 11 : i64} {
  func.func @_conv3x3_kernel(%arg0: i32, %arg1: i32, %arg2: memref<1x18x18x128xf32, #tpu.memory_space<vmem>>, %arg3: memref<3x3x128x128xbf16, #tpu.memory_space<vmem>>, %arg4: memref<1x128xf32, #tpu.memory_space<vmem>>, %arg5: memref<1x16x16x128xf32, #tpu.memory_space<vmem>>, %arg6: memref<256x128xf32, #tpu.memory_space<vmem>>) attributes {dimension_semantics = [#tpu.dimension_semantics<parallel>, #tpu.dimension_semantics<parallel>], iteration_bounds = array<i64: 2, 1>, scalar_prefetch = 0 : i64, scratch_operands = 1 : i64, tpu.core_type = #tpu.core_type<tc>, window_params = [{transform_indices = @transform_0, window_bounds = array<i64: 1, 18, 18, 128>}, {transform_indices = @transform_1, window_bounds = array<i64: 3, 3, 128, 128>}, {transform_indices = @transform_2, window_bounds = array<i64: 1, 128>}, {transform_indices = @transform_3, window_bounds = array<i64: 1, 16, 16, 128>}]} {
    %c0 = arith.constant 0 : index
    %c0_0 = arith.constant 0 : index
    %c0_1 = arith.constant 0 : index
    %c0_2 = arith.constant 0 : index
    %0 = vector.load %arg2[%c0, %c0_0, %c0_1, %c0_2] : memref<1x18x18x128xf32, #tpu.memory_space<vmem>>, vector<1x16x16x128xf32>
    %1 = vector.shape_cast %0 : vector<1x16x16x128xf32> to vector<16x16x128xf32>
    %2 = vector.shape_cast %1 : vector<16x16x128xf32> to vector<256x128xf32>
    %3 = arith.truncf %2 : vector<256x128xf32> to vector<256x128xbf16>
    %c0_3 = arith.constant 0 : index
    %c0_4 = arith.constant 0 : index
    %c0_5 = arith.constant 0 : index
    %c0_6 = arith.constant 0 : index
    %4 = vector.load %arg3[%c0_3, %c0_4, %c0_5, %c0_6] : memref<3x3x128x128xbf16, #tpu.memory_space<vmem>>, vector<1x1x128x128xbf16>
    %5 = vector.shape_cast %4 : vector<1x1x128x128xbf16> to vector<128x128xbf16>
    %cst = arith.constant dense<0.000000e+00> : vector<256x128xf32>
    %6 = tpu.matmul %3, %5, %cst {dimension_numbers = #tpu.dot_dimension_numbers<[1], [0], [0], [1], [0, 0, 1, 1], [], []>} : vector<256x128xbf16>, vector<128x128xbf16>, vector<256x128xf32> -> vector<256x128xf32>
    %c0_7 = arith.constant 0 : index
    %c0_8 = arith.constant 0 : index
    %7 = vector.load %arg6[%c0_7, %c0_8] : memref<256x128xf32, #tpu.memory_space<vmem>>, vector<256x128xf32>
    tpu.vector_store %arg6[%c0_7, %c0_8], %6 {strides = array<i32>} : memref<256x128xf32, #tpu.memory_space<vmem>>, vector<256x128xf32>,
    %c0_9 = arith.constant 0 : index
    %c0_10 = arith.constant 0 : index
    %c1 = arith.constant 1 : index
    %c0_11 = arith.constant 0 : index
    %8 = vector.load %arg2[%c0_9, %c0_10, %c1, %c0_11] : memref<1x18x18x128xf32, #tpu.memory_space<vmem>>, vector<1x16x16x128xf32>
    %9 = vector.shape_cast %8 : vector<1x16x16x128xf32> to vector<16x16x128xf32>
    %10 = vector.shape_cast %9 : vector<16x16x128xf32> to vector<256x128xf32>
    %11 = arith.truncf %10 : vector<256x128xf32> to vector<256x128xbf16>
    %c0_12 = arith.constant 0 : index
    %c1_13 = arith.constant 1 : index
    %c0_14 = arith.constant 0 : index
    %c0_15 = arith.constant 0 : index
    %12 = vector.load %arg3[%c0_12, %c1_13, %c0_14, %c0_15] : memref<3x3x128x128xbf16, #tpu.memory_space<vmem>>, vector<1x1x128x128xbf16>
    %13 = vector.shape_cast %12 : vector<1x1x128x128xbf16> to vector<128x128xbf16>
    %cst_16 = arith.constant dense<0.000000e+00> : vector<256x128xf32>
    %14 = tpu.matmul %11, %13, %cst_16 {dimension_numbers = #tpu.dot_dimension_numbers<[1], [0], [0], [1], [0, 0, 1, 1], [], []>} : vector<256x128xbf16>, vector<128x128xbf16>, vector<256x128xf32> -> vector<256x128xf32>
    %c0_17 = arith.constant 0 : index
    %c0_18 = arith.constant 0 : index
    %15 = vector.load %arg6[%c0_17, %c0_18] : memref<256x128xf32, #tpu.memory_space<vmem>>, vector<256x128xf32>
    %16 = arith.addf %15, %14 : vector<256x128xf32>
    %c0_19 = arith.constant 0 : index
    %c0_20 = arith.constant 0 : index
    %17 = vector.load %arg6[%c0_19, %c0_20] : memref<256x128xf32, #tpu.memory_space<vmem>>, vector<256x128xf32>
    tpu.vector_store %arg6[%c0_19, %c0_20], %16 {strides = array<i32>} : memref<256x128xf32, #tpu.memory_space<vmem>>, vector<256x128xf32>,
    %c0_21 = arith.constant 0 : index
    %c0_22 = arith.constant 0 : index
    %c2 = arith.constant 2 : index
    %c0_23 = arith.constant 0 : index
    %18 = vector.load %arg2[%c0_21, %c0_22, %c2, %c0_23] : memref<1x18x18x128xf32, #tpu.memory_space<vmem>>, vector<1x16x16x128xf32>
    %19 = vector.shape_cast %18 : vector<1x16x16x128xf32> to vector<16x16x128xf32>
    %20 = vector.shape_cast %19 : vector<16x16x128xf32> to vector<256x128xf32>
    %21 = arith.truncf %20 : vector<256x128xf32> to vector<256x128xbf16>
    %c0_24 = arith.constant 0 : index
    %c2_25 = arith.constant 2 : index
    %c0_26 = arith.constant 0 : index
    %c0_27 = arith.constant 0 : index
    %22 = vector.load %arg3[%c0_24, %c2_25, %c0_26, %c0_27] : memref<3x3x128x128xbf16, #tpu.memory_space<vmem>>, vector<1x1x128x128xbf16>
    %23 = vector.shape_cast %22 : vector<1x1x128x128xbf16> to vector<128x128xbf16>
    %cst_28 = arith.constant dense<0.000000e+00> : vector<256x128xf32>
    %24 = tpu.matmul %21, %23, %cst_28 {dimension_numbers = #tpu.dot_dimension_numbers<[1], [0], [0], [1], [0, 0, 1, 1], [], []>} : vector<256x128xbf16>, vector<128x128xbf16>, vector<256x128xf32> -> vector<256x128xf32>
    %c0_29 = arith.constant 0 : index
    %c0_30 = arith.constant 0 : index
    %25 = vector.load %arg6[%c0_29, %c0_30] : memref<256x128xf32, #tpu.memory_space<vmem>>, vector<256x128xf32>
    %26 = arith.addf %25, %24 : vector<256x128xf32>
    %c0_31 = arith.constant 0 : index
    %c0_32 = arith.constant 0 : index
    %27 = vector.load %arg6[%c0_31, %c0_32] : memref<256x128xf32, #tpu.memory_space<vmem>>, vector<256x128xf32>
    tpu.vector_store %arg6[%c0_31, %c0_32], %26 {strides = array<i32>} : memref<256x128xf32, #tpu.memory_space<vmem>>, vector<256x128xf32>,
    %c0_33 = arith.constant 0 : index
    %c1_34 = arith.constant 1 : index
    %c0_35 = arith.constant 0 : index
    %c0_36 = arith.constant 0 : index
    %28 = vector.load %arg2[%c0_33, %c1_34, %c0_35, %c0_36] : memref<1x18x18x128xf32, #tpu.memory_space<vmem>>, vector<1x16x16x128xf32>
    %29 = vector.shape_cast %28 : vector<1x16x16x128xf32> to vector<16x16x128xf32>
    %30 = vector.shape_cast %29 : vector<16x16x128xf32> to vector<256x128xf32>
    %31 = arith.truncf %30 : vector<256x128xf32> to vector<256x128xbf16>
    %c1_37 = arith.constant 1 : index
    %c0_38 = arith.constant 0 : index
    %c0_39 = arith.constant 0 : index
    %c0_40 = arith.constant 0 : index
    %32 = vector.load %arg3[%c1_37, %c0_38, %c0_39, %c0_40] : memref<3x3x128x128xbf16, #tpu.memory_space<vmem>>, vector<1x1x128x128xbf16>
    %33 = vector.shape_cast %32 : vector<1x1x128x128xbf16> to vector<128x128xbf16>
    %cst_41 = arith.constant dense<0.000000e+00> : vector<256x128xf32>
    %34 = tpu.matmul %31, %33, %cst_41 {dimension_numbers = #tpu.dot_dimension_numbers<[1], [0], [0], [1], [0, 0, 1, 1], [], []>} : vector<256x128xbf16>, vector<128x128xbf16>, vector<256x128xf32> -> vector<256x128xf32>
    %c0_42 = arith.constant 0 : index
    %c0_43 = arith.constant 0 : index
    %35 = vector.load %arg6[%c0_42, %c0_43] : memref<256x128xf32, #tpu.memory_space<vmem>>, vector<256x128xf32>
    %36 = arith.addf %35, %34 : vector<256x128xf32>
    %c0_44 = arith.constant 0 : index
    %c0_45 = arith.constant 0 : index
    %37 = vector.load %arg6[%c0_44, %c0_45] : memref<256x128xf32, #tpu.memory_space<vmem>>, vector<256x128xf32>
    tpu.vector_store %arg6[%c0_44, %c0_45], %36 {strides = array<i32>} : memref<256x128xf32, #tpu.memory_space<vmem>>, vector<256x128xf32>,
    %c0_46 = arith.constant 0 : index
    %c1_47 = arith.constant 1 : index
    %c1_48 = arith.constant 1 : index
    %c0_49 = arith.constant 0 : index
    %38 = vector.load %arg2[%c0_46, %c1_47, %c1_48, %c0_49] : memref<1x18x18x128xf32, #tpu.memory_space<vmem>>, vector<1x16x16x128xf32>
    %39 = vector.shape_cast %38 : vector<1x16x16x128xf32> to vector<16x16x128xf32>
    %40 = vector.shape_cast %39 : vector<16x16x128xf32> to vector<256x128xf32>
    %41 = arith.truncf %40 : vector<256x128xf32> to vector<256x128xbf16>
    %c1_50 = arith.constant 1 : index
    %c1_51 = arith.constant 1 : index
    %c0_52 = arith.constant 0 : index
    %c0_53 = arith.constant 0 : index
    %42 = vector.load %arg3[%c1_50, %c1_51, %c0_52, %c0_53] : memref<3x3x128x128xbf16, #tpu.memory_space<vmem>>, vector<1x1x128x128xbf16>
    %43 = vector.shape_cast %42 : vector<1x1x128x128xbf16> to vector<128x128xbf16>
    %cst_54 = arith.constant dense<0.000000e+00> : vector<256x128xf32>
    %44 = tpu.matmul %41, %43, %cst_54 {dimension_numbers = #tpu.dot_dimension_numbers<[1], [0], [0], [1], [0, 0, 1, 1], [], []>} : vector<256x128xbf16>, vector<128x128xbf16>, vector<256x128xf32> -> vector<256x128xf32>
    %c0_55 = arith.constant 0 : index
    %c0_56 = arith.constant 0 : index
    %45 = vector.load %arg6[%c0_55, %c0_56] : memref<256x128xf32, #tpu.memory_space<vmem>>, vector<256x128xf32>
    %46 = arith.addf %45, %44 : vector<256x128xf32>
    %c0_57 = arith.constant 0 : index
    %c0_58 = arith.constant 0 : index
    %47 = vector.load %arg6[%c0_57, %c0_58] : memref<256x128xf32, #tpu.memory_space<vmem>>, vector<256x128xf32>
    tpu.vector_store %arg6[%c0_57, %c0_58], %46 {strides = array<i32>} : memref<256x128xf32, #tpu.memory_space<vmem>>, vector<256x128xf32>,
    %c0_59 = arith.constant 0 : index
    %c1_60 = arith.constant 1 : index
    %c2_61 = arith.constant 2 : index
    %c0_62 = arith.constant 0 : index
    %48 = vector.load %arg2[%c0_59, %c1_60, %c2_61, %c0_62] : memref<1x18x18x128xf32, #tpu.memory_space<vmem>>, vector<1x16x16x128xf32>
    %49 = vector.shape_cast %48 : vector<1x16x16x128xf32> to vector<16x16x128xf32>
    %50 = vector.shape_cast %49 : vector<16x16x128xf32> to vector<256x128xf32>
    %51 = arith.truncf %50 : vector<256x128xf32> to vector<256x128xbf16>
    %c1_63 = arith.constant 1 : index
    %c2_64 = arith.constant 2 : index
    %c0_65 = arith.constant 0 : index
    %c0_66 = arith.constant 0 : index
    %52 = vector.load %arg3[%c1_63, %c2_64, %c0_65, %c0_66] : memref<3x3x128x128xbf16, #tpu.memory_space<vmem>>, vector<1x1x128x128xbf16>
    %53 = vector.shape_cast %52 : vector<1x1x128x128xbf16> to vector<128x128xbf16>
    %cst_67 = arith.constant dense<0.000000e+00> : vector<256x128xf32>
    %54 = tpu.matmul %51, %53, %cst_67 {dimension_numbers = #tpu.dot_dimension_numbers<[1], [0], [0], [1], [0, 0, 1, 1], [], []>} : vector<256x128xbf16>, vector<128x128xbf16>, vector<256x128xf32> -> vector<256x128xf32>
    %c0_68 = arith.constant 0 : index
    %c0_69 = arith.constant 0 : index
    %55 = vector.load %arg6[%c0_68, %c0_69] : memref<256x128xf32, #tpu.memory_space<vmem>>, vector<256x128xf32>
    %56 = arith.addf %55, %54 : vector<256x128xf32>
    %c0_70 = arith.constant 0 : index
    %c0_71 = arith.constant 0 : index
    %57 = vector.load %arg6[%c0_70, %c0_71] : memref<256x128xf32, #tpu.memory_space<vmem>>, vector<256x128xf32>
    tpu.vector_store %arg6[%c0_70, %c0_71], %56 {strides = array<i32>} : memref<256x128xf32, #tpu.memory_space<vmem>>, vector<256x128xf32>,
    %c0_72 = arith.constant 0 : index
    %c2_73 = arith.constant 2 : index
    %c0_74 = arith.constant 0 : index
    %c0_75 = arith.constant 0 : index
    %58 = vector.load %arg2[%c0_72, %c2_73, %c0_74, %c0_75] : memref<1x18x18x128xf32, #tpu.memory_space<vmem>>, vector<1x16x16x128xf32>
    %59 = vector.shape_cast %58 : vector<1x16x16x128xf32> to vector<16x16x128xf32>
    %60 = vector.shape_cast %59 : vector<16x16x128xf32> to vector<256x128xf32>
    %61 = arith.truncf %60 : vector<256x128xf32> to vector<256x128xbf16>
    %c2_76 = arith.constant 2 : index
    %c0_77 = arith.constant 0 : index
    %c0_78 = arith.constant 0 : index
    %c0_79 = arith.constant 0 : index
    %62 = vector.load %arg3[%c2_76, %c0_77, %c0_78, %c0_79] : memref<3x3x128x128xbf16, #tpu.memory_space<vmem>>, vector<1x1x128x128xbf16>
    %63 = vector.shape_cast %62 : vector<1x1x128x128xbf16> to vector<128x128xbf16>
    %cst_80 = arith.constant dense<0.000000e+00> : vector<256x128xf32>
    %64 = tpu.matmul %61, %63, %cst_80 {dimension_numbers = #tpu.dot_dimension_numbers<[1], [0], [0], [1], [0, 0, 1, 1], [], []>} : vector<256x128xbf16>, vector<128x128xbf16>, vector<256x128xf32> -> vector<256x128xf32>
    %c0_81 = arith.constant 0 : index
    %c0_82 = arith.constant 0 : index
    %65 = vector.load %arg6[%c0_81, %c0_82] : memref<256x128xf32, #tpu.memory_space<vmem>>, vector<256x128xf32>
    %66 = arith.addf %65, %64 : vector<256x128xf32>
    %c0_83 = arith.constant 0 : index
    %c0_84 = arith.constant 0 : index
    %67 = vector.load %arg6[%c0_83, %c0_84] : memref<256x128xf32, #tpu.memory_space<vmem>>, vector<256x128xf32>
    tpu.vector_store %arg6[%c0_83, %c0_84], %66 {strides = array<i32>} : memref<256x128xf32, #tpu.memory_space<vmem>>, vector<256x128xf32>,
    %c0_85 = arith.constant 0 : index
    %c2_86 = arith.constant 2 : index
    %c1_87 = arith.constant 1 : index
    %c0_88 = arith.constant 0 : index
    %68 = vector.load %arg2[%c0_85, %c2_86, %c1_87, %c0_88] : memref<1x18x18x128xf32, #tpu.memory_space<vmem>>, vector<1x16x16x128xf32>
    %69 = vector.shape_cast %68 : vector<1x16x16x128xf32> to vector<16x16x128xf32>
    %70 = vector.shape_cast %69 : vector<16x16x128xf32> to vector<256x128xf32>
    %71 = arith.truncf %70 : vector<256x128xf32> to vector<256x128xbf16>
    %c2_89 = arith.constant 2 : index
    %c1_90 = arith.constant 1 : index
    %c0_91 = arith.constant 0 : index
    %c0_92 = arith.constant 0 : index
    %72 = vector.load %arg3[%c2_89, %c1_90, %c0_91, %c0_92] : memref<3x3x128x128xbf16, #tpu.memory_space<vmem>>, vector<1x1x128x128xbf16>
    %73 = vector.shape_cast %72 : vector<1x1x128x128xbf16> to vector<128x128xbf16>
    %cst_93 = arith.constant dense<0.000000e+00> : vector<256x128xf32>
    %74 = tpu.matmul %71, %73, %cst_93 {dimension_numbers = #tpu.dot_dimension_numbers<[1], [0], [0], [1], [0, 0, 1, 1], [], []>} : vector<256x128xbf16>, vector<128x128xbf16>, vector<256x128xf32> -> vector<256x128xf32>
    %c0_94 = arith.constant 0 : index
    %c0_95 = arith.constant 0 : index
    %75 = vector.load %arg6[%c0_94, %c0_95] : memref<256x128xf32, #tpu.memory_space<vmem>>, vector<256x128xf32>
    %76 = arith.addf %75, %74 : vector<256x128xf32>
    %c0_96 = arith.constant 0 : index
    %c0_97 = arith.constant 0 : index
    %77 = vector.load %arg6[%c0_96, %c0_97] : memref<256x128xf32, #tpu.memory_space<vmem>>, vector<256x128xf32>
    tpu.vector_store %arg6[%c0_96, %c0_97], %76 {strides = array<i32>} : memref<256x128xf32, #tpu.memory_space<vmem>>, vector<256x128xf32>,
    %c0_98 = arith.constant 0 : index
    %c2_99 = arith.constant 2 : index
    %c2_100 = arith.constant 2 : index
    %c0_101 = arith.constant 0 : index
    %78 = vector.load %arg2[%c0_98, %c2_99, %c2_100, %c0_101] : memref<1x18x18x128xf32, #tpu.memory_space<vmem>>, vector<1x16x16x128xf32>
    %79 = vector.shape_cast %78 : vector<1x16x16x128xf32> to vector<16x16x128xf32>
    %80 = vector.shape_cast %79 : vector<16x16x128xf32> to vector<256x128xf32>
    %81 = arith.truncf %80 : vector<256x128xf32> to vector<256x128xbf16>
    %c2_102 = arith.constant 2 : index
    %c2_103 = arith.constant 2 : index
    %c0_104 = arith.constant 0 : index
    %c0_105 = arith.constant 0 : index
    %82 = vector.load %arg3[%c2_102, %c2_103, %c0_104, %c0_105] : memref<3x3x128x128xbf16, #tpu.memory_space<vmem>>, vector<1x1x128x128xbf16>
    %83 = vector.shape_cast %82 : vector<1x1x128x128xbf16> to vector<128x128xbf16>
    %cst_106 = arith.constant dense<0.000000e+00> : vector<256x128xf32>
    %84 = tpu.matmul %81, %83, %cst_106 {dimension_numbers = #tpu.dot_dimension_numbers<[1], [0], [0], [1], [0, 0, 1, 1], [], []>} : vector<256x128xbf16>, vector<128x128xbf16>, vector<256x128xf32> -> vector<256x128xf32>
    %c0_107 = arith.constant 0 : index
    %c0_108 = arith.constant 0 : index
    %85 = vector.load %arg6[%c0_107, %c0_108] : memref<256x128xf32, #tpu.memory_space<vmem>>, vector<256x128xf32>
    %86 = arith.addf %85, %84 : vector<256x128xf32>
    %c0_109 = arith.constant 0 : index
    %c0_110 = arith.constant 0 : index
    %87 = vector.load %arg6[%c0_109, %c0_110] : memref<256x128xf32, #tpu.memory_space<vmem>>, vector<256x128xf32>
    tpu.vector_store %arg6[%c0_109, %c0_110], %86 {strides = array<i32>} : memref<256x128xf32, #tpu.memory_space<vmem>>, vector<256x128xf32>,
    %c0_111 = arith.constant 0 : index
    %c0_112 = arith.constant 0 : index
    %88 = vector.load %arg6[%c0_111, %c0_112] : memref<256x128xf32, #tpu.memory_space<vmem>>, vector<256x128xf32>
    %c0_113 = arith.constant 0 : index
    %c0_114 = arith.constant 0 : index
    %89 = vector.load %arg4[%c0_113, %c0_114] : memref<1x128xf32, #tpu.memory_space<vmem>>, vector<1x128xf32>
    %90 = vector.broadcast %89 : vector<1x128xf32> to vector<256x128xf32>
    %91 = arith.addf %88, %90 : vector<256x128xf32>
    %92 = vector.shape_cast %91 : vector<256x128xf32> to vector<1x16x16x128xf32>
    %c0_115 = arith.constant 0 : index
    %c0_116 = arith.constant 0 : index
    %c0_117 = arith.constant 0 : index
    %c0_118 = arith.constant 0 : index
    %93 = vector.load %arg5[%c0_115, %c0_116, %c0_117, %c0_118] : memref<1x16x16x128xf32, #tpu.memory_space<vmem>>, vector<1x16x16x128xf32>
    tpu.vector_store %arg5[%c0_115, %c0_116, %c0_117, %c0_118], %92 {strides = array<i32>} : memref<1x16x16x128xf32, #tpu.memory_space<vmem>>, vector<1x16x16x128xf32>,
    return
  }
  func.func @transform_0(%arg0: i32, %arg1: i32) -> (i32, i32, i32, i32) {
    %c0_i32 = arith.constant 0 : i32
    %c0_i32_0 = arith.constant 0 : i32
    %c0_i32_1 = arith.constant 0 : i32
    %c0_i32_2 = arith.constant 0 : i32
    return %arg0, %c0_i32, %c0_i32_0, %c0_i32_1 : i32, i32, i32, i32
  }
  func.func @transform_1(%arg0: i32, %arg1: i32) -> (i32, i32, i32, i32) {
    %c0_i32 = arith.constant 0 : i32
    %c0_i32_0 = arith.constant 0 : i32
    %c0_i32_1 = arith.constant 0 : i32
    %c0_i32_2 = arith.constant 0 : i32
    return %c0_i32, %c0_i32_0, %c0_i32_1, %arg1 : i32, i32, i32, i32
  }
  func.func @transform_2(%arg0: i32, %arg1: i32) -> (i32, i32) {
    %c0_i32 = arith.constant 0 : i32
    %c0_i32_0 = arith.constant 0 : i32
    return %c0_i32, %arg1 : i32, i32
  }
  func.func @transform_3(%arg0: i32, %arg1: i32) -> (i32, i32, i32, i32) {
    %c0_i32 = arith.constant 0 : i32
    %c0_i32_0 = arith.constant 0 : i32
    %c0_i32_1 = arith.constant 0 : i32
    return %arg0, %c0_i32, %c0_i32_0, %arg1 : i32, i32, i32, i32
  }
}

module attributes {stable_mosaic.version = 11 : i64} {
  func.func @_gn_ss_silu_kernel(%arg0: i32, %arg1: memref<1x256x128xf32, #tpu.memory_space<vmem>>, %arg2: memref<128x8xf32, #tpu.memory_space<vmem>>, %arg3: memref<8x128xf32, #tpu.memory_space<vmem>>, %arg4: memref<1x128xf32, #tpu.memory_space<vmem>>, %arg5: memref<1x128xf32, #tpu.memory_space<vmem>>, %arg6: memref<1x1x128xf32, #tpu.memory_space<vmem>>, %arg7: memref<1x1x128xf32, #tpu.memory_space<vmem>>, %arg8: memref<1x256x128xf32, #tpu.memory_space<vmem>>) attributes {dimension_semantics = [#tpu.dimension_semantics<parallel>], iteration_bounds = array<i64: 2>, scalar_prefetch = 0 : i64, scratch_operands = 0 : i64, tpu.core_type = #tpu.core_type<tc>, window_params = [{transform_indices = @transform_0, window_bounds = array<i64: 1, 256, 128>}, {pipeline_mode = #tpu.pipeline_mode<synchronous>, transform_indices = @transform_1, window_bounds = array<i64: 128, 8>}, {pipeline_mode = #tpu.pipeline_mode<synchronous>, transform_indices = @transform_2, window_bounds = array<i64: 8, 128>}, {pipeline_mode = #tpu.pipeline_mode<synchronous>, transform_indices = @transform_3, window_bounds = array<i64: 1, 128>}, {pipeline_mode = #tpu.pipeline_mode<synchronous>, transform_indices = @transform_4, window_bounds = array<i64: 1, 128>}, {transform_indices = @transform_5, window_bounds = array<i64: 1, 1, 128>}, {transform_indices = @transform_6, window_bounds = array<i64: 1, 1, 128>}, {transform_indices = @transform_7, window_bounds = array<i64: 1, 256, 128>}]} {
    %c0 = arith.constant 0 : index
    %c0_0 = arith.constant 0 : index
    %c0_1 = arith.constant 0 : index
    %0 = vector.load %arg1[%c0, %c0_0, %c0_1] : memref<1x256x128xf32, #tpu.memory_space<vmem>>, vector<1x256x128xf32>
    %1 = vector.shape_cast %0 : vector<1x256x128xf32> to vector<256x128xf32>
    %c0_2 = arith.constant 0 : index
    %c0_3 = arith.constant 0 : index
    %2 = vector.load %arg2[%c0_2, %c0_3] : memref<128x8xf32, #tpu.memory_space<vmem>>, vector<128x8xf32>
    %c0_4 = arith.constant 0 : index
    %c0_5 = arith.constant 0 : index
    %3 = vector.load %arg3[%c0_4, %c0_5] : memref<8x128xf32, #tpu.memory_space<vmem>>, vector<8x128xf32>
    %c0_6 = arith.constant 0 : index
    %c0_7 = arith.constant 0 : index
    %4 = vector.load %arg4[%c0_6, %c0_7] : memref<1x128xf32, #tpu.memory_space<vmem>>, vector<1x128xf32>
    %c0_8 = arith.constant 0 : index
    %c0_9 = arith.constant 0 : index
    %5 = vector.load %arg5[%c0_8, %c0_9] : memref<1x128xf32, #tpu.memory_space<vmem>>, vector<1x128xf32>
    %cst = arith.constant dense<0.000000e+00> : vector<128xf32>
    %6 = vector.multi_reduction <add>, %1, %cst [0] : vector<256x128xf32> to vector<128xf32>
    %7 = vector.shape_cast %6 : vector<128xf32> to vector<1x128xf32>
    %8 = arith.mulf %1, %1 : vector<256x128xf32>
    %cst_10 = arith.constant dense<0.000000e+00> : vector<128xf32>
    %9 = vector.multi_reduction <add>, %8, %cst_10 [0] : vector<256x128xf32> to vector<128xf32>
    %10 = vector.shape_cast %9 : vector<128xf32> to vector<1x128xf32>
    %cst_11 = arith.constant dense<0.000000e+00> : vector<1x8xf32>
    %11 = tpu.matmul %7, %2, %cst_11 {dimension_numbers = #tpu.dot_dimension_numbers<[1], [0], [0], [1], [0, 0, 1, 1], [], []>} : vector<1x128xf32>, vector<128x8xf32>, vector<1x8xf32> -> vector<1x8xf32>
    %cst_12 = arith.constant dense<0.000000e+00> : vector<1x8xf32>
    %12 = tpu.matmul %10, %2, %cst_12 {dimension_numbers = #tpu.dot_dimension_numbers<[1], [0], [0], [1], [0, 0, 1, 1], [], []>} : vector<1x128xf32>, vector<128x8xf32>, vector<1x8xf32> -> vector<1x8xf32>
    %cst_13 = arith.constant 5.120000e+02 : f32
    %13 = vector.broadcast %cst_13 : f32 to vector<1x8xf32>
    %14 = arith.divf %11, %13 : vector<1x8xf32>
    %cst_14 = arith.constant 5.120000e+02 : f32
    %15 = vector.broadcast %cst_14 : f32 to vector<1x8xf32>
    %16 = arith.divf %12, %15 : vector<1x8xf32>
    %17 = arith.mulf %14, %14 : vector<1x8xf32>
    %18 = arith.subf %16, %17 : vector<1x8xf32>
    %cst_15 = arith.constant 0.000000e+00 : f32
    %19 = vector.broadcast %cst_15 : f32 to vector<1x8xf32>
    %20 = arith.maximumf %18, %19 : vector<1x8xf32>
    %cst_16 = arith.constant 9.99999974E-6 : f32
    %21 = vector.broadcast %cst_16 : f32 to vector<1x8xf32>
    %22 = arith.addf %20, %21 : vector<1x8xf32>
    %23 = math.rsqrt %22 : vector<1x8xf32>
    %cst_17 = arith.constant dense<0.000000e+00> : vector<1x128xf32>
    %24 = tpu.matmul %14, %3, %cst_17 {dimension_numbers = #tpu.dot_dimension_numbers<[1], [0], [0], [1], [0, 0, 1, 1], [], []>} : vector<1x8xf32>, vector<8x128xf32>, vector<1x128xf32> -> vector<1x128xf32>
    %cst_18 = arith.constant dense<0.000000e+00> : vector<1x128xf32>
    %25 = tpu.matmul %23, %3, %cst_18 {dimension_numbers = #tpu.dot_dimension_numbers<[1], [0], [0], [1], [0, 0, 1, 1], [], []>} : vector<1x8xf32>, vector<8x128xf32>, vector<1x128xf32> -> vector<1x128xf32>
    %26 = vector.broadcast %24 : vector<1x128xf32> to vector<256x128xf32>
    %27 = arith.subf %1, %26 : vector<256x128xf32>
    %28 = vector.broadcast %25 : vector<1x128xf32> to vector<256x128xf32>
    %29 = arith.mulf %27, %28 : vector<256x128xf32>
    %30 = vector.broadcast %4 : vector<1x128xf32> to vector<256x128xf32>
    %31 = arith.mulf %29, %30 : vector<256x128xf32>
    %32 = vector.broadcast %5 : vector<1x128xf32> to vector<256x128xf32>
    %33 = arith.addf %31, %32 : vector<256x128xf32>
    %c0_19 = arith.constant 0 : index
    %c0_20 = arith.constant 0 : index
    %c0_21 = arith.constant 0 : index
    %34 = vector.load %arg6[%c0_19, %c0_20, %c0_21] : memref<1x1x128xf32, #tpu.memory_space<vmem>>, vector<1x1x128xf32>
    %35 = vector.shape_cast %34 : vector<1x1x128xf32> to vector<1x128xf32>
    %cst_22 = arith.constant 1.000000e+00 : f32
    %36 = vector.broadcast %cst_22 : f32 to vector<1x128xf32>
    %37 = arith.addf %35, %36 : vector<1x128xf32>
    %38 = vector.broadcast %37 : vector<1x128xf32> to vector<256x128xf32>
    %39 = arith.mulf %33, %38 : vector<256x128xf32>
    %c0_23 = arith.constant 0 : index
    %c0_24 = arith.constant 0 : index
    %c0_25 = arith.constant 0 : index
    %40 = vector.load %arg7[%c0_23, %c0_24, %c0_25] : memref<1x1x128xf32, #tpu.memory_space<vmem>>, vector<1x1x128xf32>
    %41 = vector.shape_cast %40 : vector<1x1x128xf32> to vector<1x128xf32>
    %42 = vector.broadcast %41 : vector<1x128xf32> to vector<256x128xf32>
    %43 = arith.addf %39, %42 : vector<256x128xf32>
    %44 = arith.negf %43 : vector<256x128xf32>
    %45 = math.exp %44 : vector<256x128xf32>
    %cst_26 = arith.constant 1.000000e+00 : f32
    %46 = vector.broadcast %cst_26 : f32 to vector<256x128xf32>
    %47 = arith.addf %46, %45 : vector<256x128xf32>
    %48 = arith.divf %46, %47 : vector<256x128xf32>
    %49 = arith.mulf %43, %48 : vector<256x128xf32>
    %c0_27 = arith.constant 0 : index
    %c0_28 = arith.constant 0 : index
    %c0_29 = arith.constant 0 : index
    %50 = vector.load %arg8[%c0_27, %c0_28, %c0_29] : memref<1x256x128xf32, #tpu.memory_space<vmem>>, vector<1x256x128xf32>
    %51 = vector.shape_cast %50 : vector<1x256x128xf32> to vector<256x128xf32>
    %52 = vector.shape_cast %49 : vector<256x128xf32> to vector<1x256x128xf32>
    tpu.vector_store %arg8[%c0_27, %c0_28, %c0_29], %52 {strides = array<i32>} : memref<1x256x128xf32, #tpu.memory_space<vmem>>, vector<1x256x128xf32>,
    return
  }
  func.func @transform_0(%arg0: i32) -> (i32, i32, i32) {
    %c0_i32 = arith.constant 0 : i32
    %c0_i32_0 = arith.constant 0 : i32
    %c0_i32_1 = arith.constant 0 : i32
    return %arg0, %c0_i32, %c0_i32_0 : i32, i32, i32
  }
  func.func @transform_1(%arg0: i32) -> (i32, i32) {
    %c0_i32 = arith.constant 0 : i32
    %c0_i32_0 = arith.constant 0 : i32
    %c0_i32_1 = arith.constant 0 : i32
    return %c0_i32, %c0_i32_0 : i32, i32
  }
  func.func @transform_2(%arg0: i32) -> (i32, i32) {
    %c0_i32 = arith.constant 0 : i32
    %c0_i32_0 = arith.constant 0 : i32
    %c0_i32_1 = arith.constant 0 : i32
    return %c0_i32, %c0_i32_0 : i32, i32
  }
  func.func @transform_3(%arg0: i32) -> (i32, i32) {
    %c0_i32 = arith.constant 0 : i32
    %c0_i32_0 = arith.constant 0 : i32
    %c0_i32_1 = arith.constant 0 : i32
    return %c0_i32, %c0_i32_0 : i32, i32
  }
  func.func @transform_4(%arg0: i32) -> (i32, i32) {
    %c0_i32 = arith.constant 0 : i32
    %c0_i32_0 = arith.constant 0 : i32
    %c0_i32_1 = arith.constant 0 : i32
    return %c0_i32, %c0_i32_0 : i32, i32
  }
  func.func @transform_5(%arg0: i32) -> (i32, i32, i32) {
    %c0_i32 = arith.constant 0 : i32
    %c0_i32_0 = arith.constant 0 : i32
    %c0_i32_1 = arith.constant 0 : i32
    return %arg0, %c0_i32, %c0_i32_0 : i32, i32, i32
  }
  func.func @transform_6(%arg0: i32) -> (i32, i32, i32) {
    %c0_i32 = arith.constant 0 : i32
    %c0_i32_0 = arith.constant 0 : i32
    %c0_i32_1 = arith.constant 0 : i32
    return %arg0, %c0_i32, %c0_i32_0 : i32, i32, i32
  }
  func.func @transform_7(%arg0: i32) -> (i32, i32, i32) {
    %c0_i32 = arith.constant 0 : i32
    %c0_i32_0 = arith.constant 0 : i32
    %c0_i32_1 = arith.constant 0 : i32
    return %arg0, %c0_i32, %c0_i32_0 : i32, i32, i32
  }
}

module attributes {stable_mosaic.version = 11 : i64} {
  func.func @_gn_silu_res_kernel(%arg0: i32, %arg1: memref<1x256x128xf32, #tpu.memory_space<vmem>>, %arg2: memref<1x256x128xbf16, #tpu.memory_space<vmem>>, %arg3: memref<128x128xbf16, #tpu.memory_space<vmem>>, %arg4: memref<1x128xf32, #tpu.memory_space<vmem>>, %arg5: memref<128x8xf32, #tpu.memory_space<vmem>>, %arg6: memref<8x128xf32, #tpu.memory_space<vmem>>, %arg7: memref<1x128xf32, #tpu.memory_space<vmem>>, %arg8: memref<1x128xf32, #tpu.memory_space<vmem>>, %arg9: memref<1x256x128xf32, #tpu.memory_space<vmem>>) attributes {dimension_semantics = [#tpu.dimension_semantics<parallel>], iteration_bounds = array<i64: 2>, scalar_prefetch = 0 : i64, scratch_operands = 0 : i64, tpu.core_type = #tpu.core_type<tc>, window_params = [{transform_indices = @transform_0, window_bounds = array<i64: 1, 256, 128>}, {transform_indices = @transform_1, window_bounds = array<i64: 1, 256, 128>}, {pipeline_mode = #tpu.pipeline_mode<synchronous>, transform_indices = @transform_2, window_bounds = array<i64: 128, 128>}, {pipeline_mode = #tpu.pipeline_mode<synchronous>, transform_indices = @transform_3, window_bounds = array<i64: 1, 128>}, {pipeline_mode = #tpu.pipeline_mode<synchronous>, transform_indices = @transform_4, window_bounds = array<i64: 128, 8>}, {pipeline_mode = #tpu.pipeline_mode<synchronous>, transform_indices = @transform_5, window_bounds = array<i64: 8, 128>}, {pipeline_mode = #tpu.pipeline_mode<synchronous>, transform_indices = @transform_6, window_bounds = array<i64: 1, 128>}, {pipeline_mode = #tpu.pipeline_mode<synchronous>, transform_indices = @transform_7, window_bounds = array<i64: 1, 128>}, {transform_indices = @transform_8, window_bounds = array<i64: 1, 256, 128>}]} {
    %c0 = arith.constant 0 : index
    %c0_0 = arith.constant 0 : index
    %c0_1 = arith.constant 0 : index
    %0 = vector.load %arg1[%c0, %c0_0, %c0_1] : memref<1x256x128xf32, #tpu.memory_space<vmem>>, vector<1x256x128xf32>
    %1 = vector.shape_cast %0 : vector<1x256x128xf32> to vector<256x128xf32>
    %c0_2 = arith.constant 0 : index
    %c0_3 = arith.constant 0 : index
    %2 = vector.load %arg5[%c0_2, %c0_3] : memref<128x8xf32, #tpu.memory_space<vmem>>, vector<128x8xf32>
    %c0_4 = arith.constant 0 : index
    %c0_5 = arith.constant 0 : index
    %3 = vector.load %arg6[%c0_4, %c0_5] : memref<8x128xf32, #tpu.memory_space<vmem>>, vector<8x128xf32>
    %c0_6 = arith.constant 0 : index
    %c0_7 = arith.constant 0 : index
    %4 = vector.load %arg7[%c0_6, %c0_7] : memref<1x128xf32, #tpu.memory_space<vmem>>, vector<1x128xf32>
    %c0_8 = arith.constant 0 : index
    %c0_9 = arith.constant 0 : index
    %5 = vector.load %arg8[%c0_8, %c0_9] : memref<1x128xf32, #tpu.memory_space<vmem>>, vector<1x128xf32>
    %cst = arith.constant dense<0.000000e+00> : vector<128xf32>
    %6 = vector.multi_reduction <add>, %1, %cst [0] : vector<256x128xf32> to vector<128xf32>
    %7 = vector.shape_cast %6 : vector<128xf32> to vector<1x128xf32>
    %8 = arith.mulf %1, %1 : vector<256x128xf32>
    %cst_10 = arith.constant dense<0.000000e+00> : vector<128xf32>
    %9 = vector.multi_reduction <add>, %8, %cst_10 [0] : vector<256x128xf32> to vector<128xf32>
    %10 = vector.shape_cast %9 : vector<128xf32> to vector<1x128xf32>
    %cst_11 = arith.constant dense<0.000000e+00> : vector<1x8xf32>
    %11 = tpu.matmul %7, %2, %cst_11 {dimension_numbers = #tpu.dot_dimension_numbers<[1], [0], [0], [1], [0, 0, 1, 1], [], []>} : vector<1x128xf32>, vector<128x8xf32>, vector<1x8xf32> -> vector<1x8xf32>
    %cst_12 = arith.constant dense<0.000000e+00> : vector<1x8xf32>
    %12 = tpu.matmul %10, %2, %cst_12 {dimension_numbers = #tpu.dot_dimension_numbers<[1], [0], [0], [1], [0, 0, 1, 1], [], []>} : vector<1x128xf32>, vector<128x8xf32>, vector<1x8xf32> -> vector<1x8xf32>
    %cst_13 = arith.constant 5.120000e+02 : f32
    %13 = vector.broadcast %cst_13 : f32 to vector<1x8xf32>
    %14 = arith.divf %11, %13 : vector<1x8xf32>
    %cst_14 = arith.constant 5.120000e+02 : f32
    %15 = vector.broadcast %cst_14 : f32 to vector<1x8xf32>
    %16 = arith.divf %12, %15 : vector<1x8xf32>
    %17 = arith.mulf %14, %14 : vector<1x8xf32>
    %18 = arith.subf %16, %17 : vector<1x8xf32>
    %cst_15 = arith.constant 0.000000e+00 : f32
    %19 = vector.broadcast %cst_15 : f32 to vector<1x8xf32>
    %20 = arith.maximumf %18, %19 : vector<1x8xf32>
    %cst_16 = arith.constant 9.99999974E-6 : f32
    %21 = vector.broadcast %cst_16 : f32 to vector<1x8xf32>
    %22 = arith.addf %20, %21 : vector<1x8xf32>
    %23 = math.rsqrt %22 : vector<1x8xf32>
    %cst_17 = arith.constant dense<0.000000e+00> : vector<1x128xf32>
    %24 = tpu.matmul %14, %3, %cst_17 {dimension_numbers = #tpu.dot_dimension_numbers<[1], [0], [0], [1], [0, 0, 1, 1], [], []>} : vector<1x8xf32>, vector<8x128xf32>, vector<1x128xf32> -> vector<1x128xf32>
    %cst_18 = arith.constant dense<0.000000e+00> : vector<1x128xf32>
    %25 = tpu.matmul %23, %3, %cst_18 {dimension_numbers = #tpu.dot_dimension_numbers<[1], [0], [0], [1], [0, 0, 1, 1], [], []>} : vector<1x8xf32>, vector<8x128xf32>, vector<1x128xf32> -> vector<1x128xf32>
    %26 = vector.broadcast %24 : vector<1x128xf32> to vector<256x128xf32>
    %27 = arith.subf %1, %26 : vector<256x128xf32>
    %28 = vector.broadcast %25 : vector<1x128xf32> to vector<256x128xf32>
    %29 = arith.mulf %27, %28 : vector<256x128xf32>
    %30 = vector.broadcast %4 : vector<1x128xf32> to vector<256x128xf32>
    %31 = arith.mulf %29, %30 : vector<256x128xf32>
    %32 = vector.broadcast %5 : vector<1x128xf32> to vector<256x128xf32>
    %33 = arith.addf %31, %32 : vector<256x128xf32>
    %34 = arith.negf %33 : vector<256x128xf32>
    %35 = math.exp %34 : vector<256x128xf32>
    %cst_19 = arith.constant 1.000000e+00 : f32
    %36 = vector.broadcast %cst_19 : f32 to vector<256x128xf32>
    %37 = arith.addf %36, %35 : vector<256x128xf32>
    %38 = arith.divf %36, %37 : vector<256x128xf32>
    %39 = arith.mulf %33, %38 : vector<256x128xf32>
    %c0_20 = arith.constant 0 : index
    %c0_21 = arith.constant 0 : index
    %c0_22 = arith.constant 0 : index
    %40 = vector.load %arg2[%c0_20, %c0_21, %c0_22] : memref<1x256x128xbf16, #tpu.memory_space<vmem>>, vector<1x256x128xbf16>
    %41 = vector.shape_cast %40 : vector<1x256x128xbf16> to vector<256x128xbf16>
    %c0_23 = arith.constant 0 : index
    %c0_24 = arith.constant 0 : index
    %42 = vector.load %arg3[%c0_23, %c0_24] : memref<128x128xbf16, #tpu.memory_space<vmem>>, vector<128x128xbf16>
    %cst_25 = arith.constant dense<0.000000e+00> : vector<256x128xf32>
    %43 = tpu.matmul %41, %42, %cst_25 {dimension_numbers = #tpu.dot_dimension_numbers<[1], [0], [0], [1], [0, 0, 1, 1], [], []>} : vector<256x128xbf16>, vector<128x128xbf16>, vector<256x128xf32> -> vector<256x128xf32>
    %c0_26 = arith.constant 0 : index
    %c0_27 = arith.constant 0 : index
    %44 = vector.load %arg4[%c0_26, %c0_27] : memref<1x128xf32, #tpu.memory_space<vmem>>, vector<1x128xf32>
    %45 = vector.broadcast %44 : vector<1x128xf32> to vector<256x128xf32>
    %46 = arith.addf %43, %45 : vector<256x128xf32>
    %47 = arith.addf %39, %46 : vector<256x128xf32>
    %c0_28 = arith.constant 0 : index
    %c0_29 = arith.constant 0 : index
    %c0_30 = arith.constant 0 : index
    %48 = vector.load %arg9[%c0_28, %c0_29, %c0_30] : memref<1x256x128xf32, #tpu.memory_space<vmem>>, vector<1x256x128xf32>
    %49 = vector.shape_cast %48 : vector<1x256x128xf32> to vector<256x128xf32>
    %50 = vector.shape_cast %47 : vector<256x128xf32> to vector<1x256x128xf32>
    tpu.vector_store %arg9[%c0_28, %c0_29, %c0_30], %50 {strides = array<i32>} : memref<1x256x128xf32, #tpu.memory_space<vmem>>, vector<1x256x128xf32>,
    return
  }
  func.func @transform_0(%arg0: i32) -> (i32, i32, i32) {
    %c0_i32 = arith.constant 0 : i32
    %c0_i32_0 = arith.constant 0 : i32
    %c0_i32_1 = arith.constant 0 : i32
    return %arg0, %c0_i32, %c0_i32_0 : i32, i32, i32
  }
  func.func @transform_1(%arg0: i32) -> (i32, i32, i32) {
    %c0_i32 = arith.constant 0 : i32
    %c0_i32_0 = arith.constant 0 : i32
    %c0_i32_1 = arith.constant 0 : i32
    return %arg0, %c0_i32, %c0_i32_0 : i32, i32, i32
  }
  func.func @transform_2(%arg0: i32) -> (i32, i32) {
    %c0_i32 = arith.constant 0 : i32
    %c0_i32_0 = arith.constant 0 : i32
    %c0_i32_1 = arith.constant 0 : i32
    return %c0_i32, %c0_i32_0 : i32, i32
  }
  func.func @transform_3(%arg0: i32) -> (i32, i32) {
    %c0_i32 = arith.constant 0 : i32
    %c0_i32_0 = arith.constant 0 : i32
    %c0_i32_1 = arith.constant 0 : i32
    return %c0_i32, %c0_i32_0 : i32, i32
  }
  func.func @transform_4(%arg0: i32) -> (i32, i32) {
    %c0_i32 = arith.constant 0 : i32
    %c0_i32_0 = arith.constant 0 : i32
    %c0_i32_1 = arith.constant 0 : i32
    return %c0_i32, %c0_i32_0 : i32, i32
  }
  func.func @transform_5(%arg0: i32) -> (i32, i32) {
    %c0_i32 = arith.constant 0 : i32
    %c0_i32_0 = arith.constant 0 : i32
    %c0_i32_1 = arith.constant 0 : i32
    return %c0_i32, %c0_i32_0 : i32, i32
  }
  func.func @transform_6(%arg0: i32) -> (i32, i32) {
    %c0_i32 = arith.constant 0 : i32
    %c0_i32_0 = arith.constant 0 : i32
    %c0_i32_1 = arith.constant 0 : i32
    return %c0_i32, %c0_i32_0 : i32, i32
  }
  func.func @transform_7(%arg0: i32) -> (i32, i32) {
    %c0_i32 = arith.constant 0 : i32
    %c0_i32_0 = arith.constant 0 : i32
    %c0_i32_1 = arith.constant 0 : i32
    return %c0_i32, %c0_i32_0 : i32, i32
  }
  func.func @transform_8(%arg0: i32) -> (i32, i32, i32) {
    %c0_i32 = arith.constant 0 : i32
    %c0_i32_0 = arith.constant 0 : i32
    %c0_i32_1 = arith.constant 0 : i32
    return %arg0, %c0_i32, %c0_i32_0 : i32, i32, i32
  }
}

</mosaic_0001>

<bundles_post_ra>
// kernel: resnet_block_forward.5
= control target key start
LH: loop header
LB: loop body
LE: loop exit
PB: predicated region body
PF: predicated region fallthrough
CT: control target
= control target key end

     0   :  { %s1673_s24 = smov 0   ;;  %s2379_s0 = inlined_call_operand.vmem [shape: f32[2,256,128], index: 0, kind: input, shape index: {}]   ;;  %s2380_s1 = inlined_call_operand.vmem [shape: f32[128,8], index: 1, kind: input, shape index: {}]   ;;  %s2381_s2 = inlined_call_operand.vmem [shape: f32[8,128], index: 2, kind: input, shape index: {}]   ;;  %s2382_s3 = inlined_call_operand.vmem [shape: f32[1,128], index: 3, kind: input, shape index: {}]   ;;  %s2383_s4 = inlined_call_operand.vmem [shape: f32[1,128], index: 4, kind: input, shape index: {}]   ;;  %s2384_s5 = inlined_call_operand.vmem [shape: f32[2,1,128], index: 5, kind: input, shape index: {}]   ;;  %s2385_s6 = inlined_call_operand.vmem [shape: f32[2,1,128], index: 6, kind: input, shape index: {}]   ;;  %s2386_s7 = inlined_call_operand.vmem [shape: f32[2,256,128], index: 7, kind: output, shape index: {}]  }
   0x1 LB: > { %s1315_s25 = sadd.s32 4294967295, %s1629_s24   ;;  %p1319_p0 = scmp.ge.s32.totalorder %s1629_s24, 1  ;;  %s1629_s24 = sphi %s1673_s24, %s17_s24  }
   0x2   : > { %p253_p1 = scmp.lt.s32.totalorder %s1629_s24, 3 }
   0x4   : > { %p254_p2 = pnand %p1319_p0, %p253_p1 }
   0x6   : > { %257 = sbr.rel (%p254_p2) target bundleno = 613 (0x265), region = 48 }
   0xb   : > { %v354_v0 = vld [vmem:[%s2380_s1 + $0x78] sm:$0xff]  ;;  %p291_p3 = scmp.lt.s32.totalorder %s1315_s25, 1  ;;  %v1631_v1 = vmov 0.0   ;;  %v353_v2 = vld [vmem:[%s2380_s1 + $0x70] sm:$0xff]  ;;  %v352_v3 = vld [vmem:[%s2380_s1 + $0x68] sm:$0xff]  ;;  %vm1632_vm0 = vmmov 0  }
   0xc   : > { %1403 = vmatprep.subr.mxu0 %v1631_v1  ;;  %1438 = vmatprep.subr.mxu1 %v1631_v1  ;;  %v351_v4 = vld [vmem:[%s2380_s1 + $0x60] sm:$0xff]  ;;  %v350_v8 = vld [vmem:[%s2380_s1 + $0x58] sm:$0xff]  ;;  %v349_v11 = vld [vmem:[%s2380_s1 + $0x50] sm:$0xff]  ;;  %vm612_vm1 = vcmask 64512  }
   0xd   : > { %1404 = vmatpush3.msra.mxu0 %v354_v0  ;;  %1439 = vmatpush3.msra.mxu1 %v354_v0  ;;  %s2391_s25 = smov (!%p291_p3, %s1315_s25), 1  ;;  %v348_v14 = vld [vmem:[%s2380_s1 + $0x48] sm:$0xff]  ;;  %v347_v17 = vld [vmem:[%s2380_s1 + $0x40] sm:$0xff]  ;;  %v346_v20 = vld [vmem:[%s2380_s1 + $0x38] sm:$0xff] }
   0xe   : > { %1405 = vmatprep.subr.mxu0 %v1631_v1  ;;  %1440 = vmatprep.subr.mxu1 %v1631_v1  ;;  %s1363_s9 = sshll.u32 %s2391_s25, 8  ;;  %v345_v25 = vld [vmem:[%s2380_s1 + $0x30] sm:$0xff]  ;;  %v344_v29 = vld [vmem:[%s2380_s1 + $0x28] sm:$0xff]  ;;  %v343_v34 = vld [vmem:[%s2380_s1 + $0x20] sm:$0xff]  ;;  %s298_s23 = scalar_lea.vmem %s2384_s5, %s2391_s25 }
   0xf   : > { %1406 = vmatpush3.msra.mxu0 %v353_v2  ;;  %1441 = vmatpush3.msra.mxu1 %v353_v2  ;;  %s1707_s14 = scalar_lea.vmem %s2379_s0, %s1363_s9  ;;  %v342_v39 = vld [vmem:[%s2380_s1 + $0x18] sm:$0xff]  ;;  %v341_v44 = vld [vmem:[%s2380_s1 + $0x10] sm:$0xff]  ;;  %v340_v49 = vld [vmem:[%s2380_s1 + $0x8] sm:$0xff]  ;;  %s301_s10 = scalar_lea.vmem %s2385_s6, %s2391_s25 }
  0x10   : > { %1407 = vmatprep.subr.mxu0 %v1631_v1  ;;  %1442 = vmatprep.subr.mxu1 %v1631_v1  ;;  %v1710_v5 = vld [vmem:[%s1707_s14] sm:$0xff]  ;;  %v1713_v6 = vld [vmem:[%s1707_s14 + $0x8] sm:$0xff]  ;;  %v1716_v7 = vld [vmem:[%s1707_s14 + $0x10] sm:$0xff]  ;;  %s2306_s13 = scalar_lea.vmem %s2386_s7, %s1363_s9 }
  0x11   : > { %1408 = vmatpush3.msra.mxu0 %v352_v3  ;;  %1443 = vmatpush3.msra.mxu1 %v352_v3  ;;  %v358_v9 = vadd.f32 %v1713_v6, %v1710_v5  ;;  %v1726_v10 = vld [vmem:[%s1707_s14 + $0x18] sm:$0xff]  ;;  %v1735_v13 = vld [vmem:[%s1707_s14 + $0x20] sm:$0xff]  ;;  %v1744_v16 = vld [vmem:[%s1707_s14 + $0x28] sm:$0xff]  ;;  %v395_v23 = vmul.f32 %v1710_v5, %v1710_v5  ;;  %v396_v24 = vmul.f32 %v1713_v6, %v1713_v6 }
  0x12   : > { %1409 = vmatprep.subr.mxu0 %v1631_v1  ;;  %1444 = vmatprep.subr.mxu1 %v1631_v1  ;;  %v1753_v19 = vld [vmem:[%s1707_s14 + $0x30] sm:$0xff]  ;;  %v1762_v22 = vld [vmem:[%s1707_s14 + $0x38] sm:$0xff]  ;;  %v1775_v27 = vld [vmem:[%s1707_s14 + $0x40] sm:$0xff]  ;;  %v397_v28 = vmul.f32 %v1716_v7, %v1716_v7  ;;  %v398_v32 = vmul.f32 %v1726_v10, %v1726_v10  ;;  %v399_v37 = vmul.f32 %v1735_v13, %v1735_v13 }
  0x13   : > { %1410 = vmatpush3.msra.mxu0 %v351_v4  ;;  %1445 = vmatpush3.msra.mxu1 %v351_v4  ;;  %v359_v12 = vadd.f32 %v358_v9, %v1716_v7  ;;  %v1786_v31 = vld [vmem:[%s1707_s14 + $0x48] sm:$0xff]  ;;  %v427_v33 = vadd.f32 %v396_v24, %v395_v23  ;;  %v1797_v36 = vld [vmem:[%s1707_s14 + $0x50] sm:$0xff]  ;;  %v1808_v41 = vld [vmem:[%s1707_s14 + $0x58] sm:$0xff]  ;;  %v400_v42 = vmul.f32 %v1744_v16, %v1744_v16 }
  0x14   : > { %1411 = vmatprep.subr.mxu0 %v1631_v1  ;;  %1446 = vmatprep.subr.mxu1 %v1631_v1  ;;  %v1819_v46 = vld [vmem:[%s1707_s14 + $0x60] sm:$0xff]  ;;  %v401_v47 = vmul.f32 %v1753_v19, %v1753_v19  ;;  %v1830_v51 = vld [vmem:[%s1707_s14 + $0x68] sm:$0xff]  ;;  %v402_v52 = vmul.f32 %v1762_v22, %v1762_v22  ;;  %v1843_v56 = vld [vmem:[%s1707_s14 + $0x70] sm:$0xff]  ;;  %v403_v57 = vmul.f32 %v1775_v27, %v1775_v27 }
  0x15   : > { %1412 = vmatpush3.msra.mxu0 %v350_v8  ;;  %1447 = vmatpush3.msra.mxu1 %v350_v8  ;;  %v360_v15 = vadd.f32 %v359_v12, %v1726_v10  ;;  %v428_v38 = vadd.f32 %v427_v33, %v397_v28  ;;  %v339_v54 = vld [vmem:[%s2380_s1] sm:$0xff]  ;;  %v1850_v60 = vld [vmem:[%s1707_s14 + $0x78] sm:$0xff]  ;;  %v404_v61 = vmul.f32 %v1786_v31, %v1786_v31  ;;  %v1867_v8 = vld [vmem:[%s1707_s14 + $0x88] sm:$0xff] }
  0x16   : > { %1413 = vmatprep.subr.mxu0 %v1631_v1  ;;  %1448 = vmatprep.subr.mxu1 %v1631_v1  ;;  %v1859_v0 = vld [vmem:[%s1707_s14 + $0x80] sm:$0xff]  ;;  %v405_v2 = vmul.f32 %v1797_v36, %v1797_v36  ;;  %v406_v9 = vmul.f32 %v1808_v41, %v1808_v41 }
  0x17   : > { %1414 = vmatpush3.msra.mxu0 %v349_v11  ;;  %1449 = vmatpush3.msra.mxu1 %v349_v11  ;;  %v361_v18 = vadd.f32 %v360_v15, %v1735_v13  ;;  %v429_v43 = vadd.f32 %v428_v38, %v398_v32  ;;  %v407_v15 = vmul.f32 %v1819_v46, %v1819_v46 }
  0x18   : > { %1415 = vmatprep.subr.mxu0 %v1631_v1  ;;  %1450 = vmatprep.subr.mxu1 %v1631_v1  ;;  %v410_v32 = vmul.f32 %v1850_v60, %v1850_v60 }
  0x19   : > { %1416 = vmatpush3.msra.mxu0 %v348_v14  ;;  %1451 = vmatpush3.msra.mxu1 %v348_v14  ;;  %v362_v21 = vadd.f32 %v361_v18, %v1744_v16  ;;  %v430_v48 = vadd.f32 %v429_v43, %v399_v37  ;;  %v1873_v14 = vld [vmem:[%s1707_s14 + $0x90] sm:$0xff]  ;;  %v411_v37 = vmul.f32 %v1859_v0, %v1859_v0 }
  0x1a   : > { %1417 = vmatprep.subr.mxu0 %v1631_v1  ;;  %1452 = vmatprep.subr.mxu1 %v1631_v1 }
  0x1b   : > { %1418 = vmatpush3.msra.mxu0 %v347_v17  ;;  %1453 = vmatpush3.msra.mxu1 %v347_v17  ;;  %v363_v26 = vadd.f32 %v362_v21, %v1753_v19  ;;  %v431_v53 = vadd.f32 %v430_v48, %v400_v42  ;;  %v408_v21 = vmul.f32 %v1830_v51, %v1830_v51 }
  0x1c   : > { %1419 = vmatprep.subr.mxu0 %v1631_v1  ;;  %1454 = vmatprep.subr.mxu1 %v1631_v1  ;;  %v412_v42 = vmul.f32 %v1867_v8, %v1867_v8 }
  0x1d   : > { %1420 = vmatpush3.msra.mxu0 %v346_v20  ;;  %1455 = vmatpush3.msra.mxu1 %v346_v20  ;;  %v364_v30 = vadd.f32 %v363_v26, %v1762_v22  ;;  %v432_v58 = vadd.f32 %v431_v53, %v401_v47  ;;  %v1879_v20 = vld [vmem:[%s1707_s14 + $0x98] sm:$0xff]  ;;  %v409_v26 = vmul.f32 %v1843_v56, %v1843_v56 }
  0x1e   : > { %1421 = vmatprep.subr.mxu0 %v1631_v1  ;;  %1456 = vmatprep.subr.mxu1 %v1631_v1  ;;  %v413_v47 = vmul.f32 %v1873_v14, %v1873_v14 }
  0x1f   : > { %1422 = vmatpush3.msra.mxu0 %v345_v25  ;;  %1457 = vmatpush3.msra.mxu1 %v345_v25  ;;  %v365_v35 = vadd.f32 %v364_v30, %v1775_v27  ;;  %v433_v62 = vadd.f32 %v432_v58, %v402_v52  ;;  %v1885_v25 = vld [vmem:[%s1707_s14 + $0xa0] sm:$0xff]  ;;  %v1891_v30 = vld [vmem:[%s1707_s14 + $0xa8] sm:$0xff]  ;;  %v414_v52 = vmul.f32 %v1879_v20, %v1879_v20 }
  0x20   : > { %1423 = vmatprep.subr.mxu0 %v1631_v1  ;;  %1458 = vmatprep.subr.mxu1 %v1631_v1 }
  0x21   : > { %1424 = vmatpush3.msra.mxu0 %v344_v29  ;;  %1459 = vmatpush3.msra.mxu1 %v344_v29  ;;  %v366_v40 = vadd.f32 %v365_v35, %v1786_v31  ;;  %v434_v3 = vadd.f32 %v433_v62, %v403_v57  ;;  %v1897_v35 = vld [vmem:[%s1707_s14 + $0xb0] sm:$0xff]  ;;  %v415_v57 = vmul.f32 %v1885_v25, %v1885_v25 }
  0x22   : > { %1425 = vmatprep.subr.mxu0 %v1631_v1  ;;  %1460 = vmatprep.subr.mxu1 %v1631_v1  ;;  %v416_v62 = vmul.f32 %v1891_v30, %v1891_v30 }
  0x23   : > { %1426 = vmatpush3.msra.mxu0 %v343_v34  ;;  %1461 = vmatpush3.msra.mxu1 %v343_v34  ;;  %v367_v45 = vadd.f32 %v366_v40, %v1797_v36  ;;  %v435_v11 = vadd.f32 %v434_v3, %v404_v61  ;;  %v1903_v40 = vld [vmem:[%s1707_s14 + $0xb8] sm:$0xff]  ;;  %v1933_v3 = vld [vmem:[%s1707_s14 + $0xe0] sm:$0xff] }
  0x24   : > { %1427 = vmatprep.subr.mxu0 %v1631_v1  ;;  %1462 = vmatprep.subr.mxu1 %v1631_v1  ;;  %v1927_v61 = vld [vmem:[%s1707_s14 + $0xd8] sm:$0xff] }
  0x25   : > { %1428 = vmatpush3.msra.mxu0 %v342_v39  ;;  %1463 = vmatpush3.msra.mxu1 %v342_v39  ;;  %v368_v50 = vadd.f32 %v367_v45, %v1808_v41  ;;  %v436_v17 = vadd.f32 %v435_v11, %v405_v2  ;;  %v1909_v45 = vld [vmem:[%s1707_s14 + $0xc0] sm:$0xff] }
  0x26   : > { %1429 = vmatprep.subr.mxu0 %v1631_v1  ;;  %1464 = vmatprep.subr.mxu1 %v1631_v1 }
  0x27   : > { %1430 = vmatpush3.msra.mxu0 %v341_v44  ;;  %1465 = vmatpush3.msra.mxu1 %v341_v44  ;;  %v369_v55 = vadd.f32 %v368_v50, %v1819_v46  ;;  %v437_v23 = vadd.f32 %v436_v17, %v406_v9  ;;  %v1915_v50 = vld [vmem:[%s1707_s14 + $0xc8] sm:$0xff] }
  0x28   : > { %1431 = vmatprep.subr.mxu0 %v1631_v1  ;;  %1466 = vmatprep.subr.mxu1 %v1631_v1 }
  0x29   : > { %1432 = vmatpush3.msra.mxu0 %v340_v49  ;;  %1435 = vmatprep.mubr.msk.f32.mxu0 %vm1632_vm0, %v1631_v1  ;;  %v370_v59 = vadd.f32 %v369_v55, %v1830_v51  ;;  %v438_v28 = vadd.f32 %v437_v23, %v407_v15  ;;  %v1921_v55 = vld [vmem:[%s1707_s14 + $0xd0] sm:$0xff]  ;;  %v418_v15 = vmul.f32 %v1903_v40, %v1903_v40 }
  0x2a   : > { %1433 = vmatprep.subr.mxu0 %v1631_v1  ;;  %1467 = vmatpush3.msra.mxu1 %v340_v49  ;;  %v419_v23 = vmul.f32 %v1909_v45, %v1909_v45 }
  0x2b   : > { %1434 = vmatpush3.msra.mxu0 %v339_v54  ;;  %1468 = vmatprep.subr.mxu1 %v1631_v1  ;;  %v371_v63 = vadd.f32 %v370_v59, %v1843_v56  ;;  %v439_v33 = vadd.f32 %v438_v28, %v408_v21  ;;  %v1945_v21 = vld [vmem:[%s1707_s14 + $0xf0] sm:$0xff]  ;;  %v1951_v28 = vld [vmem:[%s1707_s14 + $0xf8] sm:$0xff] }
  0x2c   : > { %1469 = vmatpush3.msra.mxu1 %v339_v54  ;;  %1470 = vmatprep.mubr.msk.f32.mxu1 %vm1632_vm0, %v1631_v1 }
  0x2d   : > { %1473 = vmatprep.subr.mxu0 %v1631_v1  ;;  %1478 = vmatprep.subr.mxu1 %v1631_v1  ;;  %v372_v4 = vadd.f32 %v371_v63, %v1850_v60  ;;  %v440_v38 = vadd.f32 %v439_v33, %v409_v26 }
  0x2f   : > { %v373_v12 = vadd.f32 %v372_v4, %v1859_v0  ;;  %v441_v43 = vadd.f32 %v440_v38, %v410_v32  ;;  %v417_v4 = vmul.f32 %v1897_v35, %v1897_v35 }
  0x31   : > { %v374_v18 = vadd.f32 %v373_v12, %v1867_v8  ;;  %v442_v48 = vadd.f32 %v441_v43, %v411_v37  ;;  %v1939_v12 = vld [vmem:[%s1707_s14 + $0xe8] sm:$0xff] }
  0x33   : > { %v375_v24 = vadd.f32 %v374_v18, %v1873_v14  ;;  %v443_v53 = vadd.f32 %v442_v48, %v412_v42 }
  0x35   : > { %v376_v29 = vadd.f32 %v375_v24, %v1879_v20  ;;  %v444_v58 = vadd.f32 %v443_v53, %v413_v47 }
  0x37   : > { %v377_v34 = vadd.f32 %v376_v29, %v1885_v25  ;;  %v445_v63 = vadd.f32 %v444_v58, %v414_v52  ;;  %v420_v29 = vmul.f32 %v1915_v50, %v1915_v50 }
  0x39   : > { %v378_v39 = vadd.f32 %v377_v34, %v1891_v30  ;;  %v446_v9 = vadd.f32 %v445_v63, %v415_v57  ;;  %v421_v34 = vmul.f32 %v1921_v55, %v1921_v55 }
  0x3b   : > { %v379_v44 = vadd.f32 %v378_v39, %v1897_v35  ;;  %v447_v17 = vadd.f32 %v446_v9, %v416_v62  ;;  %v422_v39 = vmul.f32 %v1927_v61, %v1927_v61 }
  0x3d   : > { %v380_v49 = vadd.f32 %v379_v44, %v1903_v40  ;;  %v448_v24 = vadd.f32 %v447_v17, %v417_v4  ;;  %v423_v44 = vmul.f32 %v1933_v3, %v1933_v3 }
  0x3f   : > { %v381_v54 = vadd.f32 %v380_v49, %v1909_v45  ;;  %v449_v32 = vadd.f32 %v448_v24, %v418_v15  ;;  %v424_v49 = vmul.f32 %v1939_v12, %v1939_v12 }
  0x41   : > { %v382_v59 = vadd.f32 %v381_v54, %v1915_v50  ;;  %v450_v37 = vadd.f32 %v449_v32, %v419_v23  ;;  %v425_v54 = vmul.f32 %v1945_v21, %v1945_v21 }
  0x43   : > { %v383_v2 = vadd.f32 %v382_v59, %v1921_v55  ;;  %v451_v42 = vadd.f32 %v450_v37, %v420_v29  ;;  %v426_v59 = vmul.f32 %v1951_v28, %v1951_v28 }
  0x45   : > { %v384_v11 = vadd.f32 %v383_v2, %v1927_v61  ;;  %v452_v47 = vadd.f32 %v451_v42, %v421_v34 }
  0x47   : > { %v385_v18 = vadd.f32 %v384_v11, %v1933_v3  ;;  %v453_v52 = vadd.f32 %v452_v47, %v422_v39 }
  0x49   : > { %v386_v26 = vadd.f32 %v385_v18, %v1939_v12  ;;  %v454_v57 = vadd.f32 %v453_v52, %v423_v44 }
  0x4b   : > { %v387_v33 = vadd.f32 %v386_v26, %v1945_v21  ;;  %v455_v62 = vadd.f32 %v454_v57, %v424_v49  ;;  %v355_v26 = vld [vmem:[%s2381_s2] sm:$0xff]  ;;  %v759_v49 = vlaneseq }
  0x4d   : > { %v388_v38 = vadd.f32 %v387_v33, %v1951_v28  ;;  %v456_v2 = vadd.f32 %v455_v62, %v425_v54  ;;  %v760_v52 = vshrl.u32 %v759_v49, 7  ;;  %v907_v54 = vld [vmem:[%s298_s23] sm:$0x1] }
  0x4f   : > { %v389_v43 = vrot.slane %v388_v38, 4  ;;  %v457_v9 = vadd.f32 %v456_v2, %v426_v59  ;;  %v908_v59 = vadd.f32 1.0, %v907_v54 }
  0x51   : > { %v390_v48 = vadd.f32 %v389_v43, %v388_v38  ;;  %v458_v11 = vrot.slane %v457_v9, 4 }
  0x53   : > { %v391_v53 = vrot.slane %v390_v48, 2  ;;  %v459_v15 = vadd.f32 %v458_v11, %v457_v9 }
  0x55   : > { %v392_v58 = vadd.f32 %v391_v53, %v390_v48  ;;  %v460_v17 = vrot.slane %v459_v15, 2  ;;  %v761_v53 = vsub.s32 0, %v760_v52 }
  0x57   : > { %v393_v63 = vrot.slane %v392_v58, 1  ;;  %v461_v18 = vadd.f32 %v460_v17, %v459_v15  ;;  %v1984_v2 = vrot.slane %v908_v59, %v761_v53 }
  0x59   : > { %v394_v4 = vadd.f32 %v393_v63, %v392_v58  ;;  %v462_v23 = vrot.slane %v461_v18, 1 }
  0x5b   : > { %1436 = vmatmul.mubr.f32.vlgmr.msra.gmra.mxu0 %v394_v4  ;;  %v463_v24 = vadd.f32 %v462_v23, %v461_v18 }
  0x5c   : > { %1475 = vmatprep.mubr.msk.f32.mxu0 %vm1632_vm0, %v1631_v1  ;;  %1474 = vmatpush3.msra.mxu0 %v355_v26 }
  0x5d   : > { %1471 = vmatmul.mubr.f32.vlgmr.msra.gmra.mxu1 %v463_v24 }
  0x5e   : > { %1480 = vmatprep.mubr.msk.f32.mxu1 %vm1632_vm0, %v1631_v1  ;;  %1479 = vmatpush3.msra.mxu1 %v355_v26 }
 0x11b   : > { %v530_v29 = vpop.f32.mrf.mxu0 }
 0x11c   : > { %v605_v32 = vmul.f32 0.001953125, %v530_v29 }
 0x11d   : > { %v1437_v33 = vpop.f32.mrf.mxu0  ;;  %v600_v37 = vpop.f32.mrf.mxu1 }
 0x11e   : > { %1476 = vmatmul.mubr.msk.f32.vlgmr.msra.gmra.mxu0 %vm612_vm1, %v605_v32  ;;  %v607_v34 = vmul.f32 %v605_v32, %v605_v32  ;;  %v606_v38 = vmul.f32 0.001953125, %v600_v37 }
 0x11f   : > { %v1472_v39 = vpop.f32.mrf.mxu1 }
 0x120   : > { %v608_v42 = vsub.f32 %v606_v38, %v607_v34 }
 0x122   : > { %v609_v43 = vmax.f32 %v608_v42, 0.0 }
 0x124   : > { %v610_v44 = vadd.f32 1e-05, %v609_v43 }
 0x126   : > { %1493 = vrsqrt.f32 %v610_v44 }
 0x133   : > { %v1494_v1 = vpop.eup %1493 }
 0x134   : > { %1481 = vmatmul.mubr.msk.f32.vlgmr.msra.gmra.mxu1 %vm612_vm1, %v1494_v1 }
 0x1de   : > { %v682_v47 = vpop.f32.mrf.mxu0 }
 0x1df   : > { %v1980_v58 = vrot.slane %v682_v47, %v761_v53  ;;  %v1326_v47 = vld [vmem:[%s2382_s3] ss:$0 sm:$0xff] }
 0x1e0   : > { %v1477_v48 = vpop.f32.mrf.mxu0 }
 0x1e1   : > { %v763_v63 = vsub.f32 %v1710_v5, %v1980_v58  ;;  %v764_v4 = vsub.f32 %v1713_v6, %v1980_v58  ;;  %v765_v9 = vsub.f32 %v1716_v7, %v1980_v58  ;;  %v766_v11 = vsub.f32 %v1726_v10, %v1980_v58 }
 0x1e2   : > { %v767_v15 = vsub.f32 %v1735_v13, %v1980_v58  ;;  %v768_v17 = vsub.f32 %v1744_v16, %v1980_v58  ;;  %v769_v5 = vsub.f32 %v1753_v19, %v1980_v58  ;;  %v770_v18 = vsub.f32 %v1762_v22, %v1980_v58 }
 0x1e3   : > { %v771_v6 = vsub.f32 %v1775_v27, %v1980_v58  ;;  %v772_v7 = vsub.f32 %v1786_v31, %v1980_v58  ;;  %v773_v10 = vsub.f32 %v1797_v36, %v1980_v58  ;;  %v774_v13 = vsub.f32 %v1808_v41, %v1980_v58 }
 0x1e4   : > { %v775_v16 = vsub.f32 %v1819_v46, %v1980_v58  ;;  %v776_v19 = vsub.f32 %v1830_v51, %v1980_v58  ;;  %v777_v22 = vsub.f32 %v1843_v56, %v1980_v58  ;;  %v778_v27 = vsub.f32 %v1850_v60, %v1980_v58 }
 0x1e5   : > { %v779_v31 = vsub.f32 %v1859_v0, %v1980_v58  ;;  %v780_v36 = vsub.f32 %v1867_v8, %v1980_v58  ;;  %v781_v41 = vsub.f32 %v1873_v14, %v1980_v58  ;;  %v782_v46 = vsub.f32 %v1879_v20, %v1980_v58 }
 0x1e6   : > { %v783_v51 = vsub.f32 %v1885_v25, %v1980_v58  ;;  %v784_v56 = vsub.f32 %v1891_v30, %v1980_v58  ;;  %v785_v60 = vsub.f32 %v1897_v35, %v1980_v58  ;;  %v786_v0 = vsub.f32 %v1903_v40, %v1980_v58 }
 0x1e7   : > { %v787_v8 = vsub.f32 %v1909_v45, %v1980_v58  ;;  %v788_v14 = vsub.f32 %v1915_v50, %v1980_v58  ;;  %v789_v20 = vsub.f32 %v1921_v55, %v1980_v58  ;;  %v790_v25 = vsub.f32 %v1927_v61, %v1980_v58 }
 0x1e8   : > { %v791_v30 = vsub.f32 %v1933_v3, %v1980_v58  ;;  %v792_v35 = vsub.f32 %v1939_v12, %v1980_v58  ;;  %v793_v40 = vsub.f32 %v1945_v21, %v1980_v58  ;;  %v794_v45 = vsub.f32 %v1951_v28, %v1980_v58 }
 0x1f4   : > { %v755_v57 = vpop.f32.mrf.mxu1 }
 0x1f5   : > { %v798_v23 = vrot.slane %v755_v57, %v761_v53 }
 0x1f6   : > { %v1482_v62 = vpop.f32.mrf.mxu1 }
 0x1f7   : > { %v799_v24 = vmul.f32 %v798_v23, %v763_v63  ;;  %v800_v50 = vmul.f32 %v798_v23, %v764_v4  ;;  %v801_v26 = vmul.f32 %v798_v23, %v765_v9  ;;  %v802_v29 = vmul.f32 %v798_v23, %v766_v11 }
 0x1f8   : > { %v803_v55 = vmul.f32 %v798_v23, %v767_v15  ;;  %v804_v32 = vmul.f32 %v798_v23, %v768_v17  ;;  %v805_v33 = vmul.f32 %v798_v23, %v769_v5  ;;  %v806_v61 = vmul.f32 %v798_v23, %v770_v18 }
 0x1f9   : > { %v807_v34 = vmul.f32 %v798_v23, %v771_v6  ;;  %v808_v37 = vmul.f32 %v798_v23, %v772_v7  ;;  %v809_v3 = vmul.f32 %v798_v23, %v773_v10  ;;  %v810_v38 = vmul.f32 %v798_v23, %v774_v13 }
 0x1fa   : > { %v811_v39 = vmul.f32 %v798_v23, %v775_v16  ;;  %v812_v12 = vmul.f32 %v798_v23, %v776_v19  ;;  %v813_v42 = vmul.f32 %v798_v23, %v777_v22  ;;  %v814_v43 = vmul.f32 %v798_v23, %v778_v27 }
 0x1fb   : > { %v815_v21 = vmul.f32 %v798_v23, %v779_v31  ;;  %v816_v44 = vmul.f32 %v798_v23, %v780_v36  ;;  %v817_v1 = vmul.f32 %v798_v23, %v781_v41  ;;  %v818_v28 = vmul.f32 %v798_v23, %v782_v46 }
 0x1fc   : > { %v819_v48 = vmul.f32 %v798_v23, %v783_v51  ;;  %v820_v49 = vmul.f32 %v798_v23, %v784_v56  ;;  %v821_v52 = vmul.f32 %v798_v23, %v785_v60  ;;  %v822_v53 = vmul.f32 %v798_v23, %v786_v0  ;;  %v2054_v60 = vld [vmem:[%s2383_s4] ss:$0 sm:$0xff] }
 0x1fd   : > { %v823_v54 = vmul.f32 %v798_v23, %v787_v8  ;;  %v824_v57 = vmul.f32 %v798_v23, %v788_v14  ;;  %v825_v58 = vmul.f32 %v798_v23, %v789_v20  ;;  %v826_v59 = vmul.f32 %v798_v23, %v790_v25 }
 0x1fe   : > { %v827_v62 = vmul.f32 %v798_v23, %v791_v30  ;;  %v828_v63 = vmul.f32 %v798_v23, %v792_v35  ;;  %v829_v4 = vmul.f32 %v798_v23, %v793_v40  ;;  %v830_v9 = vmul.f32 %v798_v23, %v794_v45 }
 0x1ff   : > { %v837_v11 = vmul.f32 %v1326_v47, %v799_v24  ;;  %v838_v15 = vmul.f32 %v1326_v47, %v800_v50  ;;  %v839_v17 = vmul.f32 %v1326_v47, %v801_v26  ;;  %v840_v5 = vmul.f32 %v1326_v47, %v802_v29 }
 0x200   : > { %v841_v18 = vmul.f32 %v1326_v47, %v803_v55  ;;  %v842_v6 = vmul.f32 %v1326_v47, %v804_v32  ;;  %v843_v7 = vmul.f32 %v1326_v47, %v805_v33  ;;  %v844_v10 = vmul.f32 %v1326_v47, %v806_v61 }
 0x201   : > { %v845_v13 = vmul.f32 %v1326_v47, %v807_v34  ;;  %v846_v16 = vmul.f32 %v1326_v47, %v808_v37  ;;  %v847_v19 = vmul.f32 %v1326_v47, %v809_v3  ;;  %v848_v22 = vmul.f32 %v1326_v47, %v810_v38 }
 0x202   : > { %v849_v27 = vmul.f32 %v1326_v47, %v811_v39  ;;  %v850_v31 = vmul.f32 %v1326_v47, %v812_v12  ;;  %v851_v36 = vmul.f32 %v1326_v47, %v813_v42  ;;  %v852_v41 = vmul.f32 %v1326_v47, %v814_v43 }
 0x203   : > { %v853_v46 = vmul.f32 %v1326_v47, %v815_v21  ;;  %v854_v51 = vmul.f32 %v1326_v47, %v816_v44  ;;  %v855_v56 = vmul.f32 %v1326_v47, %v817_v1  ;;  %v856_v23 = vmul.f32 %v1326_v47, %v818_v28 }
 0x204   : > { %v857_v0 = vmul.f32 %v1326_v47, %v819_v48  ;;  %v858_v8 = vmul.f32 %v1326_v47, %v820_v49  ;;  %v859_v14 = vmul.f32 %v1326_v47, %v821_v52  ;;  %v860_v20 = vmul.f32 %v1326_v47, %v822_v53  ;;  %v2080_v52 = vld [vmem:[%s301_s10] ss:$0 sm:$0xff] }
 0x205   : > { %v861_v25 = vmul.f32 %v1326_v47, %v823_v54  ;;  %v862_v30 = vmul.f32 %v1326_v47, %v824_v57  ;;  %v863_v35 = vmul.f32 %v1326_v47, %v825_v58  ;;  %v864_v40 = vmul.f32 %v1326_v47, %v826_v59 }
 0x206   : > { %v865_v45 = vmul.f32 %v1326_v47, %v827_v62  ;;  %v866_v24 = vmul.f32 %v1326_v47, %v828_v63  ;;  %v867_v50 = vmul.f32 %v1326_v47, %v829_v4  ;;  %v868_v26 = vmul.f32 %v1326_v47, %v830_v9 }
 0x207   : > { %v875_v29 = vadd.f32 %v2054_v60, %v837_v11  ;;  %v876_v55 = vadd.f32 %v2054_v60, %v838_v15  ;;  %v877_v32 = vadd.f32 %v2054_v60, %v839_v17  ;;  %v878_v33 = vadd.f32 %v2054_v60, %v840_v5 }
 0x208   : > { %v879_v61 = vadd.f32 %v2054_v60, %v841_v18  ;;  %v880_v34 = vadd.f32 %v2054_v60, %v842_v6  ;;  %v881_v37 = vadd.f32 %v2054_v60, %v843_v7  ;;  %v882_v3 = vadd.f32 %v2054_v60, %v844_v10 }
 0x209   : > { %v883_v38 = vadd.f32 %v2054_v60, %v845_v13  ;;  %v884_v39 = vadd.f32 %v2054_v60, %v846_v16  ;;  %v885_v12 = vadd.f32 %v2054_v60, %v847_v19  ;;  %v886_v42 = vadd.f32 %v2054_v60, %v848_v22 }
 0x20a   : > { %v887_v43 = vadd.f32 %v2054_v60, %v849_v27  ;;  %v888_v21 = vadd.f32 %v2054_v60, %v850_v31  ;;  %v889_v44 = vadd.f32 %v2054_v60, %v851_v36  ;;  %v890_v1 = vadd.f32 %v2054_v60, %v852_v41 }
 0x20b   : > { %v891_v28 = vadd.f32 %v2054_v60, %v853_v46  ;;  %v915_v47 = vmul.f32 %v1984_v2, %v875_v29  ;;  %v916_v48 = vmul.f32 %v1984_v2, %v876_v55  ;;  %v917_v49 = vmul.f32 %v1984_v2, %v877_v32 }
 0x20c   : > { %v892_v53 = vadd.f32 %v2054_v60, %v854_v51  ;;  %v893_v54 = vadd.f32 %v2054_v60, %v855_v56  ;;  %v894_v57 = vadd.f32 %v2054_v60, %v856_v23  ;;  %v918_v58 = vmul.f32 %v1984_v2, %v878_v33 }
 0x20d   : > { %v2087_v59 = vadd.f32 %v2054_v60, %v857_v0  ;;  %v2090_v62 = vadd.f32 %v2054_v60, %v858_v8  ;;  %v2093_v63 = vadd.f32 %v2054_v60, %v859_v14  ;;  %v919_v4 = vmul.f32 %v1984_v2, %v879_v61 }
 0x20e   : > { %v2097_v9 = vadd.f32 %v2054_v60, %v860_v20  ;;  %v2100_v11 = vadd.f32 %v2054_v60, %v861_v25  ;;  %v2103_v15 = vadd.f32 %v2054_v60, %v862_v30  ;;  %v920_v17 = vmul.f32 %v1984_v2, %v880_v34 }
 0x20f   : > { %v921_v5 = vmul.f32 %v1984_v2, %v881_v37  ;;  %v2108_v18 = vadd.f32 %v2080_v52, %v915_v47  ;;  %v2111_v6 = vadd.f32 %v2080_v52, %v916_v48  ;;  %v2114_v7 = vadd.f32 %v2080_v52, %v917_v49 }
 0x210   : > { %v2117_v10 = vadd.f32 %v2054_v60, %v863_v35  ;;  %v2120_v13 = vadd.f32 %v2054_v60, %v864_v40  ;;  %v922_v16 = vmul.f32 %v1984_v2, %v882_v3  ;;  %v2124_v19 = vadd.f32 %v2080_v52, %v918_v58 }
 0x211   : > { %v2127_v22 = vadd.f32 %v2054_v60, %v865_v45  ;;  %v2130_v27 = vadd.f32 %v2054_v60, %v866_v24  ;;  %v923_v31 = vmul.f32 %v1984_v2, %v883_v38  ;;  %v2134_v36 = vadd.f32 %v2080_v52, %v919_v4 }
 0x212   : > { %v2137_v41 = vadd.f32 %v2054_v60, %v867_v50  ;;  %v924_v46 = vmul.f32 %v1984_v2, %v884_v39  ;;  %v925_v51 = vmul.f32 %v1984_v2, %v885_v12  ;;  %v2142_v56 = vadd.f32 %v2080_v52, %v920_v17 }
 0x213   : > { %v2145_v23 = vadd.f32 %v2080_v52, %v921_v5  ;;  %v1329_v0 = vmul.f32 -1.442695, %v2108_v18  ;;  %v1330_v8 = vmul.f32 -1.442695, %v2111_v6  ;;  %v1331_v14 = vmul.f32 -1.442695, %v2114_v7 }
 0x214   : > { %v2151_v20 = vadd.f32 %v2054_v60, %v868_v26  ;;  %v926_v25 = vmul.f32 %v1984_v2, %v886_v42  ;;  %v2155_v30 = vadd.f32 %v2080_v52, %v922_v16  ;;  %v1332_v35 = vmul.f32 -1.442695, %v2124_v19 }
 0x215   : > { %v927_v40 = vmul.f32 %v1984_v2, %v887_v43  ;;  %v2160_v45 = vadd.f32 %v2080_v52, %v923_v31  ;;  %1495 = vpow2.f32 %v1329_v0  ;;  %v1333_v24 = vmul.f32 -1.442695, %v2134_v36 }
 0x216   : > { %v928_v50 = vmul.f32 %v1984_v2, %v888_v21  ;;  %v2165_v60 = vadd.f32 %v2080_v52, %v924_v46  ;;  %1497 = vpow2.f32 %v1330_v8  ;;  %v1334_v26 = vmul.f32 -1.442695, %v2142_v56 }
 0x217   : > { %v929_v29 = vmul.f32 %v1984_v2, %v889_v44  ;;  %v2170_v55 = vadd.f32 %v2080_v52, %v925_v51  ;;  %1499 = vpow2.f32 %v1331_v14  ;;  %v1335_v32 = vmul.f32 -1.442695, %v2145_v23 }
 0x218   : > { %v930_v33 = vmul.f32 %v1984_v2, %v890_v1  ;;  %v2175_v61 = vadd.f32 %v2080_v52, %v926_v25  ;;  %1501 = vpow2.f32 %v1332_v35  ;;  %v1336_v34 = vmul.f32 -1.442695, %v2155_v30 }
 0x219   : > { %v931_v37 = vmul.f32 %v1984_v2, %v891_v28  ;;  %v2180_v3 = vadd.f32 %v2080_v52, %v927_v40  ;;  %1503 = vpow2.f32 %v1333_v24  ;;  %v1337_v38 = vmul.f32 -1.442695, %v2160_v45 }
 0x21a   : > { %v932_v39 = vmul.f32 %v1984_v2, %v892_v53  ;;  %v2185_v12 = vadd.f32 %v2080_v52, %v928_v50  ;;  %1505 = vpow2.f32 %v1334_v26  ;;  %v1338_v42 = vmul.f32 -1.442695, %v2165_v60 }
 0x21b   : > { %v933_v43 = vmul.f32 %v1984_v2, %v893_v54  ;;  %v2190_v21 = vadd.f32 %v2080_v52, %v929_v29  ;;  %1507 = vpow2.f32 %v1335_v32  ;;  %v1339_v44 = vmul.f32 -1.442695, %v2170_v55 }
 0x21c   : > { %v934_v1 = vmul.f32 %v1984_v2, %v894_v57  ;;  %v2195_v28 = vadd.f32 %v2080_v52, %v930_v33  ;;  %1509 = vpow2.f32 %v1336_v34  ;;  %v1340_v47 = vmul.f32 -1.442695, %v2175_v61 }
 0x21d   : > { %v935_v48 = vmul.f32 %v1984_v2, %v2087_v59  ;;  %v2201_v49 = vadd.f32 %v2080_v52, %v931_v37  ;;  %1511 = vpow2.f32 %v1337_v38  ;;  %v1341_v53 = vmul.f32 -1.442695, %v2180_v3 }
 0x21e   : > { %v936_v54 = vmul.f32 %v1984_v2, %v2090_v62  ;;  %v2207_v57 = vadd.f32 %v2080_v52, %v932_v39  ;;  %1513 = vpow2.f32 %v1338_v42  ;;  %v1342_v58 = vmul.f32 -1.442695, %v2185_v12 }
 0x21f   : > { %v937_v4 = vmul.f32 %v1984_v2, %v2093_v63  ;;  %v2213_v59 = vadd.f32 %v2080_v52, %v933_v43  ;;  %1515 = vpow2.f32 %v1339_v44  ;;  %v1343_v17 = vmul.f32 -1.442695, %v2190_v21 }
 0x220   : > { %v938_v5 = vmul.f32 %v1984_v2, %v2097_v9  ;;  %v2219_v62 = vadd.f32 %v2080_v52, %v934_v1  ;;  %1517 = vpow2.f32 %v1340_v47  ;;  %v1344_v16 = vmul.f32 -1.442695, %v2195_v28 }
 0x221   : > { %v939_v31 = vmul.f32 %v1984_v2, %v2100_v11  ;;  %v2225_v63 = vadd.f32 %v2080_v52, %v935_v48  ;;  %1519 = vpow2.f32 %v1341_v53  ;;  %v1345_v46 = vmul.f32 -1.442695, %v2201_v49 }
 0x222   : > { %v2228_v51 = vpop.eup %1495  ;;  %v940_v9 = vmul.f32 %v1984_v2, %v2103_v15  ;;  %v2233_v0 = vadd.f32 %v2080_v52, %v936_v54  ;;  %1521 = vpow2.f32 %v1342_v58  ;;  %v1346_v8 = vmul.f32 -1.442695, %v2207_v57 }
 0x223   : > { %v1498_v14 = vpop.eup %1497  ;;  %v941_v11 = vmul.f32 %v1984_v2, %v2117_v10  ;;  %v2239_v25 = vadd.f32 %v2080_v52, %v937_v4  ;;  %1523 = vpow2.f32 %v1343_v17  ;;  %v1347_v35 = vmul.f32 -1.442695, %v2213_v59 }
 0x224   : > { %v1500_v40 = vpop.eup %1499  ;;  %v942_v15 = vmul.f32 %v1984_v2, %v2120_v13  ;;  %v2245_v24 = vadd.f32 %v2080_v52, %v938_v5  ;;  %1525 = vpow2.f32 %v1344_v16  ;;  %v1348_v50 = vmul.f32 -1.442695, %v2219_v62 }
 0x225   : > { %v1502_v26 = vpop.eup %1501  ;;  %v943_v10 = vmul.f32 %v1984_v2, %v2127_v22  ;;  %v2251_v29 = vadd.f32 %v2080_v52, %v939_v31  ;;  %1527 = vpow2.f32 %v1345_v46  ;;  %v1349_v32 = vmul.f32 -1.442695, %v2225_v63 }
 0x226   : > { %v1504_v33 = vpop.eup %1503  ;;  %v944_v13 = vmul.f32 %v1984_v2, %v2130_v27  ;;  %v2257_v34 = vadd.f32 %v2080_v52, %v940_v9  ;;  %1529 = vpow2.f32 %v1346_v8  ;;  %v1350_v37 = vmul.f32 -1.442695, %v2233_v0 }
 0x227   : > { %v1506_v38 = vpop.eup %1505  ;;  %v945_v22 = vmul.f32 %v1984_v2, %v2137_v41  ;;  %v2263_v39 = vadd.f32 %v2080_v52, %v941_v11  ;;  %1531 = vpow2.f32 %v1347_v35  ;;  %v1351_v42 = vmul.f32 -1.442695, %v2239_v25 }
 0x228   : > { %v1508_v43 = vpop.eup %1507  ;;  %v946_v27 = vmul.f32 %v1984_v2, %v2151_v20  ;;  %v2269_v44 = vadd.f32 %v2080_v52, %v942_v15  ;;  %1533 = vpow2.f32 %v1348_v50  ;;  %v1352_v1 = vmul.f32 -1.442695, %v2245_v24 }
 0x229   : > { %v1510_v47 = vpop.eup %1509  ;;  %v2273_v48 = vadd.f32 %v2080_v52, %v943_v10  ;;  %1535 = vpow2.f32 %v1349_v32  ;;  %v1353_v41 = vmul.f32 -1.442695, %v2251_v29  ;;  %v2277_v54 = vadd.f32 %v2080_v52, %v944_v13 }
 0x22a   : > { %v1512_v53 = vpop.eup %1511  ;;  %1537 = vpow2.f32 %v1350_v37  ;;  %v1354_v2 = vmul.f32 -1.442695, %v2257_v34  ;;  %v2281_v58 = vadd.f32 %v2080_v52, %v945_v22  ;;  %v1355_v4 = vmul.f32 -1.442695, %v2263_v39 }
 0x22b   : > { %v1514_v20 = vpop.eup %1513  ;;  %1539 = vpow2.f32 %v1351_v42  ;;  %v2285_v5 = vadd.f32 %v2080_v52, %v946_v27  ;;  %v1356_v16 = vmul.f32 -1.442695, %v2269_v44  ;;  %v1357_v46 = vmul.f32 -1.442695, %v2273_v48 }
 0x22c   : > { %v1516_v17 = vpop.eup %1515  ;;  %1541 = vpow2.f32 %v1352_v1  ;;  %v1358_v8 = vmul.f32 -1.442695, %v2277_v54  ;;  %v1359_v35 = vmul.f32 -1.442695, %v2281_v58  ;;  %v1082_v10 = vadd.f32 1.0, %v2228_v51 }
 0x22d   : > { %2388 = vst [vmem:[#allocation2_spill] sm:$0xff] %v2285_v5  ;;  %v1518_v31 = vpop.eup %1517  ;;  %1543 = vpow2.f32 %v1353_v41  ;;  %v1360_v52 = vmul.f32 -1.442695, %v2285_v5  ;;  %v1083_v13 = vadd.f32 1.0, %v1498_v14  ;;  %v1084_v22 = vadd.f32 1.0, %v1500_v40 }
 0x22e   : > { %v1520_v9 = vpop.eup %1519  ;;  %1545 = vpow2.f32 %v1354_v2  ;;  %v1085_v27 = vadd.f32 1.0, %v1502_v26  ;;  %v1086_v41 = vadd.f32 1.0, %v1504_v33  ;;  %v1088_v5 = vadd.f32 1.0, %v1508_v43 }
 0x22f   : > { %v1522_v11 = vpop.eup %1521  ;;  %1547 = vpow2.f32 %v1355_v4  ;;  %v1087_v4 = vadd.f32 1.0, %v1506_v38  ;;  %v1089_v51 = vadd.f32 1.0, %v1510_v47  ;;  %v1090_v14 = vadd.f32 1.0, %v1512_v53 }
 0x230   : > { %v1524_v15 = vpop.eup %1523  ;;  %1549 = vpow2.f32 %v1356_v16  ;;  %v1091_v40 = vadd.f32 1.0, %v1514_v20  ;;  %v1092_v26 = vadd.f32 1.0, %v1516_v17  ;;  %v1095_v47 = vadd.f32 1.0, %v1522_v11 }
 0x231   : > { %v1526_v50 = vpop.eup %1525  ;;  %1551 = vpow2.f32 %v1357_v46  ;;  %v1096_v53 = vadd.f32 1.0, %v1524_v15 }
 0x232   : > { %v1528_v32 = vpop.eup %1527  ;;  %1553 = vpow2.f32 %v1358_v8 }
 0x233   : > { %v1530_v37 = vpop.eup %1529  ;;  %1555 = vpow2.f32 %v1359_v35 }
 0x234   : > { %v1532_v42 = vpop.eup %1531  ;;  %1557 = vpow2.f32 %v1360_v52 }
 0x235   : > { %v1534_v1 = vpop.eup %1533  ;;  %1559 = vrcp.f32 %v1082_v10  ;;  %v1093_v10 = vadd.f32 1.0, %v1518_v31  ;;  %v1100_v15 = vadd.f32 1.0, %v1532_v42 }
 0x236   : > { %v1536_v2 = vpop.eup %1535  ;;  %1561 = vrcp.f32 %v1083_v13  ;;  %v1094_v13 = vadd.f32 1.0, %v1520_v9  ;;  %v1099_v9 = vadd.f32 1.0, %v1530_v37 }
 0x237   : > { %v1538_v16 = vpop.eup %1537  ;;  %1563 = vrcp.f32 %v1084_v22 }
 0x238   : > { %v1540_v46 = vpop.eup %1539  ;;  %1565 = vrcp.f32 %v1085_v27  ;;  %v1097_v27 = vadd.f32 1.0, %v1526_v50 }
 0x239   : > { %v1542_v8 = vpop.eup %1541  ;;  %1567 = vrcp.f32 %v1086_v41 }
 0x23a   : > { %v1544_v35 = vpop.eup %1543  ;;  %1569 = vrcp.f32 %v1087_v4  ;;  %v1101_v4 = vadd.f32 1.0, %v1534_v1  ;;  %v1104_v1 = vadd.f32 1.0, %v1540_v46 }
 0x23b   : > { %v1546_v52 = vpop.eup %1545  ;;  %1571 = vrcp.f32 %v1088_v5  ;;  %v1098_v5 = vadd.f32 1.0, %v1528_v32 }
 0x23c   : > { %v1548_v33 = vpop.eup %1547  ;;  %1573 = vrcp.f32 %v1089_v51 }
 0x23d   : > { %v1550_v38 = vpop.eup %1549  ;;  %1575 = vrcp.f32 %v1090_v14  ;;  %v1102_v14 = vadd.f32 1.0, %v1536_v2  ;;  %v1105_v2 = vadd.f32 1.0, %v1542_v8 }
 0x23e   : > { %v2293_v43 = vpop.eup %1551  ;;  %1577 = vrcp.f32 %v1091_v40 }
 0x23f   : > { %v2295_v22 = vpop.eup %1553  ;;  %1579 = vrcp.f32 %v1092_v26  ;;  %v1103_v26 = vadd.f32 1.0, %v1538_v16 }
 0x240   : > { %v2297_v20 = vpop.eup %1555  ;;  %1581 = vrcp.f32 %v1093_v10 }
 0x241   : > { %v2299_v17 = vpop.eup %1557  ;;  %1583 = vrcp.f32 %v1094_v13  ;;  %v1106_v13 = vadd.f32 1.0, %v1544_v35 }
 0x242   : > { %v1560_v31 = vpop.eup %1559  ;;  %1585 = vrcp.f32 %v1095_v47  ;;  %v1107_v47 = vadd.f32 1.0, %v1546_v52 }
 0x243   : > { %v1562_v11 = vpop.eup %1561  ;;  %1587 = vrcp.f32 %v1096_v53  ;;  %v1178_v50 = vmul.f32 %v1560_v31, %v2108_v18  ;;  %v1108_v53 = vadd.f32 1.0, %v1548_v33 }
 0x244   : > { %v1564_v41 = vpop.eup %1563  ;;  %1589 = vrcp.f32 %v1097_v27  ;;  %v1179_v32 = vmul.f32 %v1562_v11, %v2111_v6  ;;  %v1109_v27 = vadd.f32 1.0, %v1550_v38 }
 0x245   : > { %v1566_v51 = vpop.eup %1565  ;;  %1591 = vrcp.f32 %v1098_v5  ;;  %v1180_v40 = vmul.f32 %v1564_v41, %v2114_v7  ;;  %1210 = vst [vmem:[%s2306_s13] sm:$0xff] %v1178_v50  ;;  %v1110_v5 = vadd.f32 1.0, %v2293_v43 }
 0x246   : > { %v1568_v37 = vpop.eup %1567  ;;  %1593 = vrcp.f32 %v1099_v9  ;;  %v1181_v42 = vmul.f32 %v1566_v51, %v2124_v19  ;;  %1211 = vst [vmem:[%s2306_s13 + $0x8] sm:$0xff] %v1179_v32 }
 0x247   : > { %v1570_v18 = vpop.eup %1569  ;;  %1595 = vrcp.f32 %v1100_v15  ;;  %v1182_v10 = vmul.f32 %v1568_v37, %v2134_v36  ;;  %1212 = vst [vmem:[%s2306_s13 + $0x10] sm:$0xff] %v1180_v40 }
 0x248   : > { %v1572_v6 = vpop.eup %1571  ;;  %1597 = vrcp.f32 %v1101_v4  ;;  %v1183_v7 = vmul.f32 %v1570_v18, %v2142_v56  ;;  %1213 = vst [vmem:[%s2306_s13 + $0x18] sm:$0xff] %v1181_v42 }
 0x249   : > { %v1574_v16 = vpop.eup %1573  ;;  %1599 = vrcp.f32 %v1102_v14  ;;  %v1184_v19 = vmul.f32 %v1572_v6, %v2145_v23  ;;  %1214 = vst [vmem:[%s2306_s13 + $0x20] sm:$0xff] %v1182_v10 }
 0x24a   : > { %v1576_v46 = vpop.eup %1575  ;;  %1601 = vrcp.f32 %v1103_v26  ;;  %v1185_v36 = vmul.f32 %v1574_v16, %v2155_v30  ;;  %1215 = vst [vmem:[%s2306_s13 + $0x28] sm:$0xff] %v1183_v7 }
 0x24b   : > { %v1578_v8 = vpop.eup %1577  ;;  %1603 = vrcp.f32 %v1104_v1  ;;  %v1186_v56 = vmul.f32 %v1576_v46, %v2160_v45  ;;  %1216 = vst [vmem:[%s2306_s13 + $0x30] sm:$0xff] %v1184_v19  ;;  %v1111_v45 = vadd.f32 1.0, %v2295_v22 }
 0x24c   : > { %v1580_v35 = vpop.eup %1579  ;;  %1605 = vrcp.f32 %v1105_v2  ;;  %v1187_v23 = vmul.f32 %v1578_v8, %v2165_v60  ;;  %1217 = vst [vmem:[%s2306_s13 + $0x38] sm:$0xff] %v1185_v36  ;;  %v1112_v60 = vadd.f32 1.0, %v2297_v20 }
 0x24d   : > { %v1582_v52 = vpop.eup %1581  ;;  %1607 = vrcp.f32 %v1106_v13  ;;  %v1188_v30 = vmul.f32 %v1580_v35, %v2170_v55  ;;  %1218 = vst [vmem:[%s2306_s13 + $0x40] sm:$0xff] %v1186_v56  ;;  %v1113_v55 = vadd.f32 1.0, %v2299_v17 }
 0x24e   : > { %v1584_v33 = vpop.eup %1583  ;;  %1609 = vrcp.f32 %v1107_v47  ;;  %v1189_v38 = vmul.f32 %v1582_v52, %v2175_v61  ;;  %1219 = vst [vmem:[%s2306_s13 + $0x48] sm:$0xff] %v1187_v23 }
 0x24f   : > { %v1586_v31 = vpop.eup %1585  ;;  %1611 = vrcp.f32 %v1108_v53  ;;  %v1190_v43 = vmul.f32 %v1584_v33, %v2180_v3  ;;  %1220 = vst [vmem:[%s2306_s13 + $0x50] sm:$0xff] %v1188_v30 }
 0x250   : > { %v1588_v9 = vpop.eup %1587  ;;  %1613 = vrcp.f32 %v1109_v27  ;;  %v1191_v22 = vmul.f32 %v1586_v31, %v2185_v12  ;;  %1221 = vst [vmem:[%s2306_s13 + $0x58] sm:$0xff] %v1189_v38 }
 0x251   : > { %v1590_v11 = vpop.eup %1589  ;;  %1615 = vrcp.f32 %v1110_v5  ;;  %v1192_v61 = vmul.f32 %v1588_v9, %v2190_v21  ;;  %1222 = vst [vmem:[%s2306_s13 + $0x60] sm:$0xff] %v1190_v43 }
 0x252   : > { %v1592_v20 = vpop.eup %1591  ;;  %1617 = vrcp.f32 %v1111_v45  ;;  %v1193_v3 = vmul.f32 %v1590_v11, %v2195_v28  ;;  %1223 = vst [vmem:[%s2306_s13 + $0x68] sm:$0xff] %v1191_v22 }
 0x253   : > { %v1594_v15 = vpop.eup %1593  ;;  %1619 = vrcp.f32 %v1112_v60  ;;  %v1194_v17 = vmul.f32 %v1592_v20, %v2201_v49  ;;  %1224 = vst [vmem:[%s2306_s13 + $0x70] sm:$0xff] %v1192_v61 }
 0x254   : > { %v1596_v12 = vpop.eup %1595  ;;  %1621 = vrcp.f32 %v1113_v55  ;;  %v1195_v50 = vmul.f32 %v1594_v15, %v2207_v57  ;;  %1225 = vst [vmem:[%s2306_s13 + $0x78] sm:$0xff] %v1193_v3 }
 0x255   : > { %v1598_v21 = vpop.eup %1597  ;;  %v1196_v41 = vmul.f32 %v1596_v12, %v2213_v59  ;;  %1226 = vst [vmem:[%s2306_s13 + $0x80] sm:$0xff] %v1194_v17 }
 0x256   : > { %v1600_v28 = vpop.eup %1599  ;;  %v1197_v4 = vmul.f32 %v1598_v21, %v2219_v62  ;;  %1227 = vst [vmem:[%s2306_s13 + $0x88] sm:$0xff] %v1195_v50 }
 0x257   : > { %v1602_v32 = vpop.eup %1601  ;;  %v1198_v49 = vmul.f32 %v1600_v28, %v2225_v63  ;;  %1228 = vst [vmem:[%s2306_s13 + $0x90] sm:$0xff] %v1196_v41 }
 0x258   : > { %v1604_v51 = vpop.eup %1603  ;;  %v1199_v57 = vmul.f32 %v1602_v32, %v2233_v0  ;;  %1229 = vst [vmem:[%s2306_s13 + $0x98] sm:$0xff] %v1197_v4 }
 0x259   : > { %v1606_v14 = vpop.eup %1605  ;;  %v1200_v59 = vmul.f32 %v1604_v51, %v2239_v25  ;;  %1230 = vst [vmem:[%s2306_s13 + $0xa0] sm:$0xff] %v1198_v49 }
 0x25a   : > { %v1608_v40 = vpop.eup %1607  ;;  %v1201_v62 = vmul.f32 %v1606_v14, %v2245_v24  ;;  %1231 = vst [vmem:[%s2306_s13 + $0xa8] sm:$0xff] %v1199_v57 }
 0x25b   : > { %v1610_v37 = vpop.eup %1609  ;;  %v1202_v63 = vmul.f32 %v1608_v40, %v2251_v29  ;;  %1232 = vst [vmem:[%s2306_s13 + $0xb0] sm:$0xff] %v1200_v59 }
 0x25c   : > { %v1612_v26 = vpop.eup %1611  ;;  %v1203_v0 = vmul.f32 %v1610_v37, %v2257_v34  ;;  %1233 = vst [vmem:[%s2306_s13 + $0xb8] sm:$0xff] %v1201_v62 }
 0x25d   : > { %v1614_v42 = vpop.eup %1613  ;;  %v1204_v25 = vmul.f32 %v1612_v26, %v2263_v39  ;;  %1234 = vst [vmem:[%s2306_s13 + $0xc0] sm:$0xff] %v1202_v63  ;;  %v2389_v39 = vld [vmem:[#allocation2_spill] sm:$0xff] }
 0x25e   : > { %v1616_v24 = vpop.eup %1615  ;;  %v1205_v18 = vmul.f32 %v1614_v42, %v2269_v44  ;;  %1235 = vst [vmem:[%s2306_s13 + $0xc8] sm:$0xff] %v1203_v0 }
 0x25f   : > { %v1618_v1 = vpop.eup %1617  ;;  %v1206_v29 = vmul.f32 %v1616_v24, %v2273_v48  ;;  %1236 = vst [vmem:[%s2306_s13 + $0xd0] sm:$0xff] %v1204_v25 }
 0x260   : > { %v1620_v10 = vpop.eup %1619  ;;  %v1207_v34 = vmul.f32 %v1618_v1, %v2277_v54  ;;  %1237 = vst [vmem:[%s2306_s13 + $0xd8] sm:$0xff] %v1205_v18 }
 0x261   : > { %v1622_v6 = vpop.eup %1621  ;;  %v1208_v2 = vmul.f32 %v1620_v10, %v2281_v58  ;;  %1238 = vst [vmem:[%s2306_s13 + $0xe0] sm:$0xff] %v1206_v29 }
 0x262   : > { %v1209_v7 = vmul.f32 %v1622_v6, %v2389_v39  ;;  %1239 = vst [vmem:[%s2306_s13 + $0xe8] sm:$0xff] %v1207_v34 }
 0x263   : > { %1240 = vst [vmem:[%s2306_s13 + $0xf0] sm:$0xff] %v1208_v2 }
 0x264   : > { %1241 = vst [vmem:[%s2306_s13 + $0xf8] sm:$0xff] %v1209_v7 }
 0x265 PF: > { %s17_s24 = sadd.s32 1, %s1629_s24  }
 0x266   : > { %p14_p4 = scmp.ge.s32.totalorder %s17_s24, 4  }
 0x268   :  { %16 = sbr.rel (!%p14_p4) target bundleno = 1 (0x1), region = 84 }

// kernel: resnet_block_forward.7
= control target key start
LH: loop header
LB: loop body
LE: loop exit
PB: predicated region body
PF: predicated region fallthrough
CT: control target
= control target key end

     0   :  { %s2128_s27 = smov 0   ;;  %s3087_s0 = inlined_call_operand.vmem [shape: f32[2,256,128], index: 0, kind: input, shape index: {}]   ;;  %s3088_s1 = inlined_call_operand.vmem [shape: bf16[2,256,128], index: 1, kind: input, shape index: {}]   ;;  %s3089_s2 = inlined_call_operand.vmem [shape: bf16[128,128], index: 2, kind: input, shape index: {}]   ;;  %s3090_s3 = inlined_call_operand.vmem [shape: f32[1,128], index: 3, kind: input, shape index: {}]   ;;  %s3091_s4 = inlined_call_operand.vmem [shape: f32[128,8], index: 4, kind: input, shape index: {}]   ;;  %s3092_s5 = inlined_call_operand.vmem [shape: f32[8,128], index: 5, kind: input, shape index: {}]   ;;  %s3093_s6 = inlined_call_operand.vmem [shape: f32[1,128], index: 6, kind: input, shape index: {}]   ;;  %s3094_s7 = inlined_call_operand.vmem [shape: f32[1,128], index: 7, kind: input, shape index: {}]   ;;  %s3095_s8 = inlined_call_operand.vmem [shape: f32[2,256,128], index: 8, kind: output, shape index: {}]  }
   0x1 LB: > { %s1642_s28 = sadd.s32 4294967295, %s2079_s27   ;;  %p1646_p0 = scmp.ge.s32.totalorder %s2079_s27, 1  ;;  %s2079_s27 = sphi %s2128_s27, %s18_s27  }
   0x2   : > { %p272_p1 = scmp.lt.s32.totalorder %s2079_s27, 3 }
   0x4   : > { %p273_p2 = pnand %p1646_p0, %p272_p1 }
   0x6   : > { %276 = sbr.rel (%p273_p2) target bundleno = 628 (0x274), region = 52 }
   0xb   : > { %v2139_v0 = vld [vmem:[%s3091_s4 + $0x78] sm:$0xff]  ;;  %p311_p3 = scmp.lt.s32.totalorder %s1642_s28, 1  ;;  %v3096_v1 = vmov 0.0   ;;  %v2145_v2 = vld [vmem:[%s3091_s4 + $0x70] sm:$0xff]  ;;  %vm2082_vm0 = vmmov 0   ;;  %v2156_v3 = vld [vmem:[%s3091_s4 + $0x68] sm:$0xff] }
   0xc   : > { %1781 = vmatprep.subr.mxu1 %v3096_v1  ;;  %1813 = vmatprep.mubr.msk.f32.mxu1 %vm2082_vm0, %v3096_v1  ;;  %v2164_v4 = vld [vmem:[%s3091_s4 + $0x60] sm:$0xff]  ;;  %v2187_v8 = vld [vmem:[%s3091_s4 + $0x58] sm:$0xff]  ;;  %v2205_v14 = vld [vmem:[%s3091_s4 + $0x50] sm:$0xff]  ;;  %vm632_vm1 = vcmask 64512  }
   0xd   : > { %1782 = vmatpush3.msra.mxu1 %v2139_v0  ;;  %s3160_s28 = smov (!%p311_p3, %s1642_s28), 1  ;;  %v2218_v19 = vld [vmem:[%s3091_s4 + $0x48] sm:$0xff]  ;;  %v2231_v24 = vld [vmem:[%s3091_s4 + $0x40] sm:$0xff]  ;;  %v2244_v29 = vld [vmem:[%s3091_s4 + $0x38] sm:$0xff] }
   0xe   : > { %1783 = vmatprep.subr.mxu1 %v3096_v1  ;;  %s1716_s13 = sshll.u32 %s3160_s28, 8  ;;  %v2249_v30 = vld [vmem:[%s3091_s4 + $0x30] sm:$0xff]  ;;  %v1919_v36 = vld [vmem:[%s3089_s2 + $0x38] sm:$0xff]   ;;  %v2268_v37 = vld [vmem:[%s3091_s4 + $0x28] sm:$0xff]  ;;  %s1717_s15 = sshll.u32 %s3160_s28, 7 }
   0xf   : > { %1784 = vmatpush3.msra.mxu1 %v2145_v2  ;;  %s2171_s18 = scalar_lea.vmem %s3087_s0, %s1716_s13  ;;  %v1920_v39 = vld [vmem:[%s3089_s2 + $0x30] sm:$0xff]   ;;  %1861 = vmatprep.subr.bf16.mxu0 %v1919_v36  ;;  %v2284_v43 = vld [vmem:[%s3091_s4 + $0x20] sm:$0xff]  ;;  %v2302_v51 = vld [vmem:[%s3091_s4 + $0x18] sm:$0xff]  ;;  %s2511_s21 = scalar_lea.vmem %s3088_s1, %s1717_s15 }
  0x10   : > { %1785 = vmatprep.subr.mxu1 %v3096_v1  ;;  %v2175_v5 = vld [vmem:[%s2171_s18] sm:$0xff]  ;;  %v2178_v6 = vld [vmem:[%s2171_s18 + $0x8] sm:$0xff]  ;;  %v2181_v7 = vld [vmem:[%s2171_s18 + $0x10] sm:$0xff]  ;;  %1862 = vmatpush3.bf16.msra.mxu0 %v1919_v36  ;;  %s2921_s16 = scalar_lea.vmem %s3095_s8, %s1716_s13 }
  0x11   : > { %1786 = vmatpush3.msra.mxu1 %v2156_v3  ;;  %v378_v9 = vadd.f32 %v2178_v6, %v2175_v5  ;;  %v415_v10 = vmul.f32 %v2175_v5, %v2175_v5  ;;  %v416_v11 = vmul.f32 %v2178_v6, %v2178_v6  ;;  %v2197_v12 = vld [vmem:[%s2171_s18 + $0x18] sm:$0xff]  ;;  %v417_v13 = vmul.f32 %v2181_v7, %v2181_v7  ;;  %v2210_v16 = vld [vmem:[%s2171_s18 + $0x20] sm:$0xff]  ;;  %v2223_v21 = vld [vmem:[%s2171_s18 + $0x28] sm:$0xff] }
  0x12   : > { %1787 = vmatprep.subr.mxu1 %v3096_v1  ;;  %v418_v17 = vmul.f32 %v2197_v12, %v2197_v12  ;;  %v419_v22 = vmul.f32 %v2210_v16, %v2210_v16  ;;  %v2236_v26 = vld [vmem:[%s2171_s18 + $0x30] sm:$0xff]  ;;  %v420_v27 = vmul.f32 %v2223_v21, %v2223_v21  ;;  %v2254_v32 = vld [vmem:[%s2171_s18 + $0x38] sm:$0xff]  ;;  %v2257_v33 = vld [vmem:[%s2171_s18 + $0x40] sm:$0xff]  ;;  %1863 = vmatprep.subr.bf16.mxu0 %v1920_v39 }
  0x13   : > { %1788 = vmatpush3.msra.mxu1 %v2164_v4  ;;  %v379_v15 = vadd.f32 %v378_v9, %v2181_v7  ;;  %v447_v18 = vadd.f32 %v416_v11, %v415_v10  ;;  %v421_v34 = vmul.f32 %v2236_v26, %v2236_v26  ;;  %v2276_v40 = vld [vmem:[%s2171_s18 + $0x48] sm:$0xff]  ;;  %v422_v41 = vmul.f32 %v2254_v32, %v2254_v32  ;;  %v2294_v48 = vld [vmem:[%s2171_s18 + $0x50] sm:$0xff]  ;;  %v2307_v53 = vld [vmem:[%s2171_s18 + $0x58] sm:$0xff] }
  0x14   : > { %1789 = vmatprep.subr.mxu1 %v3096_v1  ;;  %v423_v45 = vmul.f32 %v2257_v33, %v2257_v33  ;;  %v424_v49 = vmul.f32 %v2276_v40, %v2276_v40  ;;  %1864 = vmatpush3.bf16.msra.mxu0 %v1920_v39  ;;  %v425_v54 = vmul.f32 %v2294_v48, %v2294_v48  ;;  %v2315_v56 = vld [vmem:[%s3091_s4 + $0x10] sm:$0xff]  ;;  %v2320_v58 = vld [vmem:[%s2171_s18 + $0x60] sm:$0xff]  ;;  %v2328_v61 = vld [vmem:[%s3091_s4 + $0x8] sm:$0xff] }
  0x15   : > { %1790 = vmatpush3.msra.mxu1 %v2187_v8  ;;  %v380_v20 = vadd.f32 %v379_v15, %v2197_v12  ;;  %v448_v23 = vadd.f32 %v447_v18, %v417_v13  ;;  %v426_v59 = vmul.f32 %v2307_v53, %v2307_v53  ;;  %v2333_v63 = vld [vmem:[%s2171_s18 + $0x68] sm:$0xff]  ;;  %v427_v9 = vmul.f32 %v2320_v58, %v2320_v58  ;;  %v2341_v11 = vld [vmem:[%s3091_s4] sm:$0xff]  ;;  %v2346_v15 = vld [vmem:[%s2171_s18 + $0x70] sm:$0xff] }
  0x16   : > { %1791 = vmatprep.subr.mxu1 %v3096_v1  ;;  %v2367_v36 = vld [vmem:[%s2171_s18 + $0x88] sm:$0xff] }
  0x17   : > { %1792 = vmatpush3.msra.mxu1 %v2205_v14  ;;  %v381_v25 = vadd.f32 %v380_v20, %v2210_v16  ;;  %v449_v28 = vadd.f32 %v448_v23, %v418_v17  ;;  %v428_v17 = vmul.f32 %v2333_v63, %v2333_v63  ;;  %v429_v23 = vmul.f32 %v2346_v15, %v2346_v15 }
  0x18   : > { %1793 = vmatprep.subr.mxu1 %v3096_v1 }
  0x19   : > { %1794 = vmatpush3.msra.mxu1 %v2218_v19  ;;  %v382_v31 = vadd.f32 %v381_v25, %v2223_v21  ;;  %v450_v35 = vadd.f32 %v449_v28, %v419_v22  ;;  %v2354_v22 = vld [vmem:[%s2171_s18 + $0x78] sm:$0xff]  ;;  %v2361_v28 = vld [vmem:[%s2171_s18 + $0x80] sm:$0xff] }
  0x1a   : > { %1795 = vmatprep.subr.mxu1 %v3096_v1 }
  0x1b   : > { %1796 = vmatpush3.msra.mxu1 %v2231_v24  ;;  %v383_v38 = vadd.f32 %v382_v31, %v2236_v26  ;;  %v451_v42 = vadd.f32 %v450_v35, %v420_v27  ;;  %v430_v31 = vmul.f32 %v2354_v22, %v2354_v22 }
  0x1c   : > { %1797 = vmatprep.subr.mxu1 %v3096_v1 }
  0x1d   : > { %1798 = vmatpush3.msra.mxu1 %v2244_v29  ;;  %v384_v44 = vadd.f32 %v383_v38, %v2254_v32  ;;  %v452_v46 = vadd.f32 %v451_v42, %v421_v34  ;;  %v431_v38 = vmul.f32 %v2361_v28, %v2361_v28  ;;  %v2373_v42 = vld [vmem:[%s2171_s18 + $0x90] sm:$0xff] }
  0x1e   : > { %1799 = vmatprep.subr.mxu1 %v3096_v1 }
  0x1f   : > { %1800 = vmatpush3.msra.mxu1 %v2249_v30  ;;  %v385_v47 = vadd.f32 %v384_v44, %v2257_v33  ;;  %v453_v50 = vadd.f32 %v452_v46, %v422_v41  ;;  %v432_v44 = vmul.f32 %v2367_v36, %v2367_v36 }
  0x20   : > { %1801 = vmatprep.subr.mxu1 %v3096_v1 }
  0x21   : > { %1802 = vmatpush3.msra.mxu1 %v2268_v37  ;;  %v386_v52 = vadd.f32 %v385_v47, %v2276_v40  ;;  %v454_v55 = vadd.f32 %v453_v50, %v423_v45  ;;  %v2379_v47 = vld [vmem:[%s2171_s18 + $0x98] sm:$0xff] }
  0x22   : > { %1803 = vmatprep.subr.mxu1 %v3096_v1 }
  0x23   : > { %1804 = vmatpush3.msra.mxu1 %v2284_v43  ;;  %v387_v57 = vadd.f32 %v386_v52, %v2294_v48  ;;  %v455_v60 = vadd.f32 %v454_v55, %v424_v49  ;;  %v433_v49 = vmul.f32 %v2373_v42, %v2373_v42  ;;  %v434_v55 = vmul.f32 %v2379_v47, %v2379_v47 }
  0x24   : > { %1805 = vmatprep.subr.mxu1 %v3096_v1 }
  0x25   : > { %1806 = vmatpush3.msra.mxu1 %v2302_v51  ;;  %v388_v62 = vadd.f32 %v387_v57, %v2307_v53  ;;  %v456_v10 = vadd.f32 %v455_v60, %v425_v54  ;;  %v2385_v54 = vld [vmem:[%s2171_s18 + $0xa0] sm:$0xff]  ;;  %v2391_v60 = vld [vmem:[%s2171_s18 + $0xa8] sm:$0xff] }
  0x26   : > { %1807 = vmatprep.subr.mxu1 %v3096_v1 }
  0x27   : > { %1808 = vmatpush3.msra.mxu1 %v2315_v56  ;;  %v389_v13 = vadd.f32 %v388_v62, %v2320_v58  ;;  %v457_v18 = vadd.f32 %v456_v10, %v426_v59  ;;  %v435_v62 = vmul.f32 %v2385_v54, %v2385_v54 }
  0x28   : > { %1809 = vmatprep.subr.mxu1 %v3096_v1 }
  0x29   : > { %1810 = vmatpush3.msra.mxu1 %v2328_v61  ;;  %v390_v20 = vadd.f32 %v389_v13, %v2333_v63  ;;  %v458_v25 = vadd.f32 %v457_v18, %v427_v9  ;;  %v2397_v13 = vld [vmem:[%s2171_s18 + $0xb0] sm:$0xff] }
  0x2a   : > { %1811 = vmatprep.subr.mxu1 %v3096_v1 }
  0x2b   : > { %1812 = vmatpush3.msra.mxu1 %v2341_v11  ;;  %v391_v27 = vadd.f32 %v390_v20, %v2346_v15  ;;  %v459_v34 = vadd.f32 %v458_v25, %v428_v17  ;;  %v436_v17 = vmul.f32 %v2391_v60, %v2391_v60  ;;  %v437_v25 = vmul.f32 %v2397_v13, %v2397_v13 }
  0x2c   : > { %1816 = vmatprep.subr.mxu1 %v3096_v1 }
  0x2d   : > { %v392_v35 = vadd.f32 %v391_v27, %v2354_v22  ;;  %v460_v39 = vadd.f32 %v459_v34, %v429_v23  ;;  %v2403_v23 = vld [vmem:[%s2171_s18 + $0xb8] sm:$0xff]  ;;  %v2409_v34 = vld [vmem:[%s2171_s18 + $0xc0] sm:$0xff] }
  0x2f   : > { %v393_v41 = vadd.f32 %v392_v35, %v2361_v28  ;;  %v461_v45 = vadd.f32 %v460_v39, %v430_v31  ;;  %v438_v35 = vmul.f32 %v2403_v23, %v2403_v23 }
  0x31   : > { %v394_v46 = vadd.f32 %v393_v41, %v2367_v36  ;;  %v462_v50 = vadd.f32 %v461_v45, %v431_v38  ;;  %v2415_v41 = vld [vmem:[%s2171_s18 + $0xc8] sm:$0xff] }
  0x32   : > { %3111 = vst [vmem:[#allocation2_spill] sm:$0xff] %v2415_v41 }
  0x33   : > { %v395_v52 = vadd.f32 %v394_v46, %v2373_v42  ;;  %v463_v57 = vadd.f32 %v462_v50, %v432_v44  ;;  %v439_v46 = vmul.f32 %v2409_v34, %v2409_v34 }
  0x35   : > { %v396_v59 = vadd.f32 %v395_v52, %v2379_v47  ;;  %v464_v9 = vadd.f32 %v463_v57, %v433_v49  ;;  %v2421_v49 = vld [vmem:[%s2171_s18 + $0xd0] sm:$0xff] }
  0x37   : > { %v397_v10 = vadd.f32 %v396_v59, %v2385_v54  ;;  %v465_v18 = vadd.f32 %v464_v9, %v434_v55  ;;  %v2425_v55 = vld [vmem:[%s2171_s18 + $0xd8] sm:$0xff]  ;;  %v440_v59 = vmul.f32 %v2415_v41, %v2415_v41  ;;  %v2431_v9 = vld [vmem:[%s2171_s18 + $0xe0] sm:$0xff] }
  0x39   : > { %v398_v20 = vadd.f32 %v397_v10, %v2391_v60  ;;  %v466_v27 = vadd.f32 %v465_v18, %v435_v62 }
  0x3b   : > { %v399_v31 = vadd.f32 %v398_v20, %v2397_v13  ;;  %v467_v38 = vadd.f32 %v466_v27, %v436_v17  ;;  %v2435_v17 = vld [vmem:[%s2171_s18 + $0xe8] sm:$0xff]  ;;  %v441_v20 = vmul.f32 %v2421_v49, %v2421_v49  ;;  %v2441_v27 = vld [vmem:[%s2171_s18 + $0xf0] sm:$0xff] }
  0x3d   : > { %v400_v39 = vadd.f32 %v399_v31, %v2403_v23  ;;  %v468_v44 = vadd.f32 %v467_v38, %v437_v25 }
  0x3f   : > { %v401_v45 = vadd.f32 %v400_v39, %v2409_v34  ;;  %v469_v50 = vadd.f32 %v468_v44, %v438_v35  ;;  %v2445_v35 = vld [vmem:[%s2171_s18 + $0xf8] sm:$0xff]  ;;  %v442_v39 = vmul.f32 %v2425_v55, %v2425_v55 }
  0x41   : > { %v402_v52 = vadd.f32 %v401_v45, %v2415_v41  ;;  %v470_v62 = vadd.f32 %v469_v50, %v439_v46  ;;  %v443_v50 = vmul.f32 %v2431_v9, %v2431_v9 }
  0x43   : > { %v403_v57 = vadd.f32 %v402_v52, %v2421_v49  ;;  %v471_v25 = vadd.f32 %v470_v62, %v440_v59  ;;  %v444_v62 = vmul.f32 %v2435_v17, %v2435_v17 }
  0x45   : > { %v404_v10 = vadd.f32 %v403_v57, %v2425_v55  ;;  %v472_v44 = vadd.f32 %v471_v25, %v441_v20  ;;  %v446_v25 = vmul.f32 %v2445_v35, %v2445_v35 }
  0x47   : > { %v405_v18 = vadd.f32 %v404_v10, %v2431_v9  ;;  %v473_v52 = vadd.f32 %v472_v44, %v442_v39  ;;  %v3112_v39 = vmov 0.0  }
  0x49   : > { %v406_v31 = vadd.f32 %v405_v18, %v2435_v17  ;;  %v474_v10 = vadd.f32 %v473_v52, %v443_v50  ;;  %v1934_v50 = vld [vmem:[%s2511_s21 + $0x38] sm:$0xff]   ;;  %v1935_v52 = vld [vmem:[%s2511_s21 + $0x40] sm:$0xff]  }
  0x4b   : > { %v407_v38 = vadd.f32 %v406_v31, %v2441_v27  ;;  %v445_v31 = vmul.f32 %v2441_v27, %v2441_v27  ;;  %v475_v41 = vadd.f32 %v474_v10, %v444_v62  ;;  %v1938_v62 = vld [vmem:[%s2511_s21 + $0x58] sm:$0xff]   ;;  %v1939_v10 = vld [vmem:[%s2511_s21 + $0x60] sm:$0xff]  }
  0x4d   : > { %v408_v45 = vadd.f32 %v407_v38, %v2445_v35  ;;  %v476_v38 = vadd.f32 %v475_v41, %v445_v31  ;;  %v1931_v41 = vld [vmem:[%s2511_s21 + $0x20] sm:$0xff]   ;;  %v1941_v31 = vld [vmem:[%s2511_s21 + $0x70] sm:$0xff]  }
  0x4f   : > { %v409_v46 = vrot.slane %v408_v45, 4  ;;  %v477_v44 = vadd.f32 %v476_v38, %v446_v25 }
  0x51   : > { %v410_v57 = vadd.f32 %v409_v46, %v408_v45  ;;  %v1932_v45 = vld [vmem:[%s2511_s21 + $0x28] sm:$0xff]   ;;  %v1933_v46 = vld [vmem:[%s2511_s21 + $0x30] sm:$0xff]  }
  0x53   : > { %v411_v59 = vrot.slane %v410_v57, 2 }
  0x55   : > { %v412_v18 = vadd.f32 %v411_v59, %v410_v57  ;;  %v1936_v57 = vld [vmem:[%s2511_s21 + $0x48] sm:$0xff]   ;;  %v1937_v59 = vld [vmem:[%s2511_s21 + $0x50] sm:$0xff]  }
  0x57   : > { %v413_v1 = vrot.slane %v412_v18, 1 }
  0x59   : > { %v414_v20 = vadd.f32 %v413_v1, %v412_v18  ;;  %v478_v1 = vrot.slane %v477_v44, 4  ;;  %v1940_v18 = vld [vmem:[%s2511_s21 + $0x68] sm:$0xff]  }
  0x5b   : > { %1814 = vmatmul.mubr.f32.vlgmr.msra.gmra.mxu1 %v414_v20  ;;  %v1942_v20 = vld [vmem:[%s2511_s21 + $0x78] sm:$0xff]  }
  0x5c   : > { %1817 = vmatpush3.msra.mxu1 %v2139_v0  ;;  %1848 = vmatprep.mubr.msk.f32.mxu1 %vm2082_vm0, %v3112_v39  ;;  %v479_v0 = vadd.f32 %v478_v1, %v477_v44 }
  0x5d   : > { %1818 = vmatprep.subr.mxu1 %v3112_v39 }
  0x5e   : > { %1819 = vmatpush3.msra.mxu1 %v2145_v2  ;;  %v480_v2 = vrot.slane %v479_v0, 2 }
  0x5f   : > { %1820 = vmatprep.subr.mxu1 %v3112_v39 }
  0x60   : > { %1821 = vmatpush3.msra.mxu1 %v2156_v3  ;;  %v481_v3 = vadd.f32 %v480_v2, %v479_v0 }
  0x61   : > { %1822 = vmatprep.subr.mxu1 %v3112_v39 }
  0x62   : > { %1823 = vmatpush3.msra.mxu1 %v2164_v4  ;;  %v482_v4 = vrot.slane %v481_v3, 1 }
  0x63   : > { %1824 = vmatprep.subr.mxu1 %v3112_v39 }
  0x64   : > { %1825 = vmatpush3.msra.mxu1 %v2187_v8  ;;  %v483_v8 = vadd.f32 %v482_v4, %v481_v3 }
  0x65   : > { %1826 = vmatprep.subr.mxu1 %v3112_v39 }
  0x66   : > { %1827 = vmatpush3.msra.mxu1 %v2205_v14  ;;  %v1921_v14 = vld [vmem:[%s3089_s2 + $0x28] sm:$0xff]  }
  0x67   : > { %1828 = vmatprep.subr.mxu1 %v3112_v39  ;;  %1865 = vmatprep.subr.bf16.mxu0 %v1921_v14 }
  0x68   : > { %1829 = vmatpush3.msra.mxu1 %v2218_v19  ;;  %v375_v19 = vld [vmem:[%s3092_s5] sm:$0xff]  ;;  %1866 = vmatpush3.bf16.msra.mxu0 %v1921_v14 }
  0x69   : > { %1830 = vmatprep.subr.mxu1 %v3112_v39 }
  0x6a   : > { %1831 = vmatpush3.msra.mxu1 %v2231_v24  ;;  %v1922_v24 = vld [vmem:[%s3089_s2 + $0x20] sm:$0xff]  }
  0x6b   : > { %1832 = vmatprep.subr.mxu1 %v3112_v39  ;;  %1867 = vmatprep.subr.bf16.mxu0 %v1922_v24 }
  0x6c   : > { %1833 = vmatpush3.msra.mxu1 %v2244_v29  ;;  %v1923_v29 = vld [vmem:[%s3089_s2 + $0x18] sm:$0xff]   ;;  %1868 = vmatpush3.bf16.msra.mxu0 %v1922_v24 }
  0x6d   : > { %1834 = vmatprep.subr.mxu1 %v3112_v39  ;;  %1869 = vmatprep.subr.bf16.mxu0 %v1923_v29 }
  0x6e   : > { %1835 = vmatpush3.msra.mxu1 %v2249_v30  ;;  %v1927_v30 = vld [vmem:[%s2511_s21] sm:$0xff]  }
  0x6f   : > { %1836 = vmatprep.subr.mxu1 %v3112_v39  ;;  %1877 = vmatprep.mubr.bf16.mxu0 %v1927_v30 }
  0x70   : > { %1837 = vmatpush3.msra.mxu1 %v2268_v37  ;;  %v1924_v37 = vld [vmem:[%s3089_s2 + $0x10] sm:$0xff]   ;;  %1870 = vmatpush3.bf16.msra.mxu0 %v1923_v29 }
  0x71   : > { %1838 = vmatprep.subr.mxu1 %v3112_v39  ;;  %1871 = vmatprep.subr.bf16.mxu0 %v1924_v37 }
  0x72   : > { %1839 = vmatpush3.msra.mxu1 %v2284_v43  ;;  %v1925_v43 = vld [vmem:[%s3089_s2 + $0x8] sm:$0xff]  }
  0x73   : > { %1840 = vmatprep.subr.mxu1 %v3112_v39 }
  0x74   : > { %1841 = vmatpush3.msra.mxu1 %v2302_v51  ;;  %1872 = vmatpush3.bf16.msra.mxu0 %v1924_v37  ;;  %v1926_v51 = vld [vmem:[%s3089_s2] sm:$0xff]  }
  0x75   : > { %1842 = vmatprep.subr.mxu1 %v3112_v39  ;;  %1873 = vmatprep.subr.bf16.mxu0 %v1925_v43 }
  0x76   : > { %1843 = vmatpush3.msra.mxu1 %v2315_v56  ;;  %v1928_v56 = vld [vmem:[%s2511_s21 + $0x8] sm:$0xff]  }
  0x77   : > { %1844 = vmatprep.subr.mxu1 %v3112_v39 }
  0x78   : > { %1845 = vmatpush3.msra.mxu1 %v2328_v61  ;;  %1874 = vmatpush3.bf16.msra.mxu0 %v1925_v43  ;;  %v1929_v61 = vld [vmem:[%s2511_s21 + $0x10] sm:$0xff]  }
  0x79   : > { %1846 = vmatprep.subr.mxu1 %v3112_v39  ;;  %1875 = vmatprep.subr.bf16.mxu0 %v1926_v51 }
  0x7a   : > { %1847 = vmatpush3.msra.mxu1 %v2341_v11  ;;  %v1930_v11 = vld [vmem:[%s2511_s21 + $0x18] sm:$0xff]  }
  0x7b   : > { %1849 = vmatmul.mubr.f32.vlgmr.msra.gmra.mxu1 %v483_v8  ;;  %1851 = vmatprep.subr.mxu1 %v3112_v39 }
  0x7c   : > { %1853 = vmatprep.mubr.msk.f32.mxu1 %vm2082_vm0, %v3112_v39  ;;  %1852 = vmatpush3.msra.mxu1 %v375_v19 }
  0x7d   : > { %1856 = vmatprep.subr.mxu1 %v3112_v39  ;;  %1876 = vmatpush3.bf16.msra.mxu0 %v1926_v51 }
  0x80   : > { %1878 = vmatmul.mubr.bf16.vlgmr.msra.gmra.mxu0 %v1928_v56 }
  0x81   : > { %1881 = vmatprep.mubr.bf16.mxu0 %v1929_v61 }
  0x88   : > { %1882 = vmatmul.mubr.bf16.gmra.mxu0 %v1930_v11 }
  0x89   : > { %1885 = vmatprep.mubr.bf16.mxu0 %v1931_v41 }
  0x90   : > { %1886 = vmatmul.mubr.bf16.gmra.mxu0 %v1932_v45 }
  0x91   : > { %1889 = vmatprep.mubr.bf16.mxu0 %v1933_v46  ;;  %v779_v46 = vlaneseq }
  0x98   : > { %1890 = vmatmul.mubr.bf16.gmra.mxu0 %v1934_v50 }
  0x99   : > { %1893 = vmatprep.mubr.bf16.mxu0 %v1935_v52  ;;  %v780_v52 = vshrl.u32 %v779_v46, 7 }
  0xa0   : > { %1894 = vmatmul.mubr.bf16.gmra.mxu0 %v1936_v57 }
  0xa1   : > { %1897 = vmatprep.mubr.bf16.mxu0 %v1937_v59  ;;  %v781_v59 = vsub.s32 0, %v780_v52 }
  0xa8   : > { %1898 = vmatmul.mubr.bf16.gmra.mxu0 %v1938_v62  ;;  %v2544_v62 = vld [vmem:[%s3090_s3] ss:$0 sm:$0xff] }
  0xa9   : > { %1901 = vmatprep.mubr.bf16.mxu0 %v1939_v10 }
  0xb0   : > { %1902 = vmatmul.mubr.bf16.gmra.mxu0 %v1940_v18 }
  0xb1   : > { %1905 = vmatprep.mubr.bf16.mxu0 %v1941_v31 }
  0xb8   : > { %1906 = vmatmul.mubr.bf16.gmra.mxu0 %v1942_v20 }
 0x11b   : > { %v550_v25 = vpop.f32.mrf.mxu1 }
 0x11c   : > { %v625_v38 = vmul.f32 0.001953125, %v550_v25 }
 0x11d   : > { %v1815_v44 = vpop.f32.mrf.mxu1 }
 0x11e   : > { %1854 = vmatmul.mubr.msk.f32.vlgmr.msra.gmra.mxu1 %vm632_vm1, %v625_v38  ;;  %v627_v0 = vmul.f32 %v625_v38, %v625_v38 }
 0x11f   : > { %1857 = vmatpush3.msra.mxu1 %v375_v19  ;;  %1858 = vmatprep.mubr.msk.f32.mxu1 %vm2082_vm0, %v3112_v39 }
 0x13b   : > { %v620_v1 = vpop.f32.mrf.mxu1 }
 0x13c   : > { %v626_v2 = vmul.f32 0.001953125, %v620_v1 }
 0x13d   : > { %v1850_v3 = vpop.f32.mrf.mxu1 }
 0x13e   : > { %v628_v4 = vsub.f32 %v626_v2, %v627_v0 }
 0x140   : > { %v629_v8 = vmax.f32 %v628_v4, 0.0  ;;  %v1879_v29 = vpop.f32.mrf.mxu0 }
 0x141   : > { %v2549_v31 = vadd.f32 %v1879_v29, %v2544_v62 }
 0x142   : > { %v630_v14 = vadd.f32 1e-05, %v629_v8  ;;  %v1384_v37 = vpop.f32.mrf.mxu0 }
 0x143   : > { %v2552_v20 = vadd.f32 %v2544_v62, %v1384_v37 }
 0x144   : > { %1943 = vrsqrt.f32 %v630_v14  ;;  %v1880_v51 = vpop.f32.mrf.mxu0 }
 0x145   : > { %v2555_v25 = vadd.f32 %v1880_v51, %v2544_v62 }
 0x146   : > { %v1387_v56 = vpop.f32.mrf.mxu0 }
 0x147   : > { %v2558_v38 = vadd.f32 %v2544_v62, %v1387_v56 }
 0x148   : > { %v1883_v19 = vpop.f32.mrf.mxu0 }
 0x149   : > { %v2561_v44 = vadd.f32 %v1883_v19, %v2544_v62 }
 0x14a   : > { %v1400_v61 = vpop.f32.mrf.mxu0 }
 0x14b   : > { %v2564_v1 = vadd.f32 %v2544_v62, %v1400_v61 }
 0x14c   : > { %v1884_v11 = vpop.f32.mrf.mxu0 }
 0x14d   : > { %v2567_v0 = vadd.f32 %v1884_v11, %v2544_v62 }
 0x14e   : > { %v1403_v39 = vpop.f32.mrf.mxu0 }
 0x14f   : > { %v2570_v2 = vadd.f32 %v2544_v62, %v1403_v39 }
 0x150   : > { %v1887_v41 = vpop.f32.mrf.mxu0 }
 0x151   : > { %v1944_v24 = vpop.eup %1943  ;;  %v2573_v3 = vadd.f32 %v1887_v41, %v2544_v62 }
 0x152   : > { %1859 = vmatmul.mubr.msk.f32.vlgmr.msra.gmra.mxu1 %vm632_vm1, %v1944_v24  ;;  %v1416_v45 = vpop.f32.mrf.mxu0 }
 0x153   : > { %v2576_v4 = vadd.f32 %v2544_v62, %v1416_v45 }
 0x154   : > { %v1888_v50 = vpop.f32.mrf.mxu0 }
 0x155   : > { %v2579_v8 = vadd.f32 %v1888_v50, %v2544_v62 }
 0x156   : > { %v1419_v57 = vpop.f32.mrf.mxu0 }
 0x157   : > { %v2582_v14 = vadd.f32 %v2544_v62, %v1419_v57 }
 0x158   : > { %v1891_v10 = vpop.f32.mrf.mxu0 }
 0x159   : > { %v2585_v24 = vadd.f32 %v1891_v10, %v2544_v62 }
 0x15a   : > { %v1432_v29 = vpop.f32.mrf.mxu0 }
 0x15b   : > { %3113 = vst [vmem:[#allocation3_spill] sm:$0xff] %v2585_v24  ;;  %v2594_v51 = vadd.f32 %v2544_v62, %v1432_v29 }
 0x1de   : > { %v702_v30 = vpop.f32.mrf.mxu1 }
 0x1df   : > { %v2546_v18 = vrot.slane %v702_v30, %v781_v59 }
 0x1e0   : > { %v1855_v43 = vpop.f32.mrf.mxu1 }
 0x1e1   : > { %v783_v30 = vsub.f32 %v2175_v5, %v2546_v18  ;;  %v784_v37 = vsub.f32 %v2178_v6, %v2546_v18  ;;  %v785_v43 = vsub.f32 %v2181_v7, %v2546_v18  ;;  %v786_v56 = vsub.f32 %v2197_v12, %v2546_v18 }
 0x1e2   : > { %v787_v19 = vsub.f32 %v2210_v16, %v2546_v18  ;;  %v788_v61 = vsub.f32 %v2223_v21, %v2546_v18  ;;  %v789_v5 = vsub.f32 %v2236_v26, %v2546_v18  ;;  %v790_v6 = vsub.f32 %v2254_v32, %v2546_v18 }
 0x1e3   : > { %v791_v7 = vsub.f32 %v2257_v33, %v2546_v18  ;;  %v792_v11 = vsub.f32 %v2276_v40, %v2546_v18  ;;  %v793_v12 = vsub.f32 %v2294_v48, %v2546_v18  ;;  %v794_v16 = vsub.f32 %v2307_v53, %v2546_v18 }
 0x1e4   : > { %v795_v21 = vsub.f32 %v2320_v58, %v2546_v18  ;;  %v797_v26 = vsub.f32 %v2346_v15, %v2546_v18  ;;  %v798_v33 = vsub.f32 %v2354_v22, %v2546_v18  ;;  %v796_v40 = vsub.f32 %v2333_v63, %v2546_v18  ;;  %v2635_v22 = vld [vmem:[%s3093_s6] ss:$0 sm:$0xff] }
 0x1e5   : > { %v801_v48 = vsub.f32 %v2373_v42, %v2546_v18  ;;  %v799_v53 = vsub.f32 %v2361_v28, %v2546_v18  ;;  %v802_v50 = vsub.f32 %v2379_v47, %v2546_v18  ;;  %v3114_v42 = vsub.f32 %v2367_v36, %v2546_v18 }
 0x212   : > { %v775_v39 = vpop.f32.mrf.mxu1 }
 0x213   : > { %v2618_v32 = vrot.slane %v775_v39, %v781_v59  ;;  %v2661_v39 = vld [vmem:[%s3094_s7] ss:$0 sm:$0xff] }
 0x214   : > { %v1860_v41 = vpop.f32.mrf.mxu1 }
 0x215   : > { %v819_v58 = vmul.f32 %v2618_v32, %v783_v30  ;;  %v820_v45 = vmul.f32 %v2618_v32, %v784_v37  ;;  %v821_v15 = vmul.f32 %v2618_v32, %v785_v43  ;;  %v822_v46 = vmul.f32 %v2618_v32, %v786_v56 }
 0x216   : > { %v823_v63 = vmul.f32 %v2618_v32, %v787_v19  ;;  %v824_v59 = vmul.f32 %v2618_v32, %v788_v61  ;;  %v825_v37 = vmul.f32 %v2618_v32, %v789_v5  ;;  %v826_v61 = vmul.f32 %v2618_v32, %v790_v6 }
 0x217   : > { %v857_v43 = vmul.f32 %v2635_v22, %v819_v58  ;;  %v858_v41 = vmul.f32 %v2635_v22, %v820_v45  ;;  %v859_v30 = vmul.f32 %v2635_v22, %v821_v15  ;;  %v860_v5 = vmul.f32 %v2635_v22, %v822_v46 }
 0x218   : > { %v827_v58 = vmul.f32 %v2618_v32, %v791_v7  ;;  %v828_v56 = vmul.f32 %v2618_v32, %v792_v11  ;;  %v829_v29 = vmul.f32 %v2618_v32, %v793_v12  ;;  %v861_v19 = vmul.f32 %v2635_v22, %v823_v63 }
 0x219   : > { %v830_v6 = vmul.f32 %v2618_v32, %v794_v16  ;;  %v831_v10 = vmul.f32 %v2618_v32, %v795_v21  ;;  %v833_v57 = vmul.f32 %v2618_v32, %v797_v26  ;;  %v862_v45 = vmul.f32 %v2635_v22, %v824_v59 }
 0x21a   : > { %v863_v15 = vmul.f32 %v2635_v22, %v825_v37  ;;  %v2676_v46 = vadd.f32 %v2661_v39, %v857_v43  ;;  %v2679_v7 = vadd.f32 %v2661_v39, %v858_v41  ;;  %v834_v12 = vmul.f32 %v2618_v32, %v798_v33 }
 0x21b   : > { %v864_v16 = vmul.f32 %v2635_v22, %v826_v61  ;;  %v2686_v21 = vadd.f32 %v2661_v39, %v859_v30  ;;  %v2689_v26 = vadd.f32 %v2661_v39, %v860_v5  ;;  %v865_v63 = vmul.f32 %v2635_v22, %v827_v58 }
 0x21c   : > { %v866_v59 = vmul.f32 %v2635_v22, %v828_v56  ;;  %v867_v37 = vmul.f32 %v2635_v22, %v829_v29  ;;  %v2695_v43 = vadd.f32 %v2661_v39, %v861_v19  ;;  %v868_v41 = vmul.f32 %v2635_v22, %v830_v6 }
 0x21d   : > { %v869_v33 = vmul.f32 %v2635_v22, %v831_v10  ;;  %v871_v61 = vmul.f32 %v2635_v22, %v833_v57  ;;  %v2701_v30 = vadd.f32 %v2661_v39, %v862_v45  ;;  %v2704_v5 = vadd.f32 %v2661_v39, %v863_v15 }
 0x21e   : > { %v1657_v58 = vmul.f32 -1.442695, %v2676_v46  ;;  %v1658_v56 = vmul.f32 -1.442695, %v2679_v7  ;;  %v1659_v29 = vmul.f32 -1.442695, %v2686_v21  ;;  %v872_v19 = vmul.f32 %v2635_v22, %v834_v12 }
 0x21f   : > { %v2711_v6 = vadd.f32 %v2661_v39, %v864_v16  ;;  %v1660_v10 = vmul.f32 -1.442695, %v2689_v26  ;;  %v832_v57 = vmul.f32 %v2618_v32, %v796_v40  ;;  %v2716_v45 = vadd.f32 %v2661_v39, %v865_v63 }
 0x220   : > { %v2719_v15 = vadd.f32 %v2661_v39, %v866_v59  ;;  %1945 = vpow2.f32 %v1657_v58  ;;  %v1661_v11 = vmul.f32 -1.442695, %v2695_v43  ;;  %v2723_v52 = vadd.f32 %v2661_v39, %v867_v37 }
 0x221   : > { %v2726_v12 = vadd.f32 %v2661_v39, %v868_v41  ;;  %1947 = vpow2.f32 %v1658_v56  ;;  %v1662_v16 = vmul.f32 -1.442695, %v2701_v30  ;;  %v2730_v40 = vadd.f32 %v2661_v39, %v869_v33 }
 0x222   : > { %v2733_v63 = vadd.f32 %v2661_v39, %v871_v61  ;;  %1949 = vpow2.f32 %v1659_v29  ;;  %v1663_v59 = vmul.f32 -1.442695, %v2704_v5  ;;  %v1664_v58 = vmul.f32 -1.442695, %v2711_v6 }
 0x223   : > { %1951 = vpow2.f32 %v1660_v10  ;;  %v870_v37 = vmul.f32 %v2635_v22, %v832_v57  ;;  %v837_v41 = vmul.f32 %v2618_v32, %v801_v48  ;;  %v1665_v33 = vmul.f32 -1.442695, %v2716_v45  ;;  %v2764_v57 = vpop.f32.mrf.mxu0 }
 0x224   : > { %1953 = vpow2.f32 %v1661_v11  ;;  %v1666_v56 = vmul.f32 -1.442695, %v2719_v15  ;;  %v835_v61 = vmul.f32 %v2618_v32, %v799_v53  ;;  %v838_v29 = vmul.f32 %v2618_v32, %v802_v50 }
 0x225   : > { %1955 = vpow2.f32 %v1662_v16  ;;  %v836_v48 = vmul.f32 %v2618_v32, %v3114_v42  ;;  %v3115_v11 = vsub.f32 %v2397_v13, %v2546_v18  ;;  %v2761_v28 = vadd.f32 %v2661_v39, %v872_v19  ;;  %v3117_v13 = vld [vmem:[#allocation2_spill] sm:$0xff]  ;;  %v2780_v24 = vpop.f32.mrf.mxu0 }
 0x226   : > { %1957 = vpow2.f32 %v1663_v59  ;;  %v1667_v53 = vmul.f32 -1.442695, %v2723_v52  ;;  %v875_v47 = vmul.f32 %v2635_v22, %v837_v41  ;;  %v1668_v36 = vmul.f32 -1.442695, %v2726_v12  ;;  %3118 = vst [vmem:[#allocation2_spill] sm:$0xff] %v2780_v24 }
 0x227   : > { %v841_v10 = vmul.f32 %v2618_v32, %v3115_v11  ;;  %1959 = vpow2.f32 %v1664_v58  ;;  %v2769_v50 = vadd.f32 %v2661_v39, %v870_v37  ;;  %v1669_v19 = vmul.f32 -1.442695, %v2730_v40 }
 0x228   : > { %1961 = vpow2.f32 %v1665_v33  ;;  %v1671_v59 = vmul.f32 -1.442695, %v2733_v63  ;;  %v873_v42 = vmul.f32 %v2635_v22, %v835_v61  ;;  %v876_v11 = vmul.f32 %v2635_v22, %v838_v29 }
 0x229   : > { %3116 = vst [vmem:[#allocation4_spill] sm:$0xff] %v2769_v50  ;;  %1963 = vpow2.f32 %v1666_v56  ;;  %v874_v58 = vmul.f32 %v2635_v22, %v836_v48  ;;  %v879_v41 = vmul.f32 %v2635_v22, %v841_v10  ;;  %v1672_v37 = vmul.f32 -1.442695, %v2761_v28 }
 0x22a   : > { %1965 = vpow2.f32 %v1667_v53  ;;  %v2783_v33 = vadd.f32 %v2661_v39, %v875_v47  ;;  %v1670_v56 = vmul.f32 -1.442695, %v2769_v50  ;;  %v3120_v61 = vsub.f32 %v2385_v54, %v2546_v18  ;;  %v2813_v53 = vpop.f32.mrf.mxu0 }
 0x22b   : > { %1967 = vpow2.f32 %v1668_v36  ;;  %v2795_v10 = vadd.f32 %v2661_v39, %v873_v42  ;;  %v2802_v16 = vadd.f32 %v2661_v39, %v876_v11  ;;  %v2805_v54 = vadd.f32 %v2661_v39, %v874_v58  ;;  %3125 = vst [vmem:[#allocation10_spill] sm:$0xff] %v2813_v53 }
 0x22c   : > { %3119 = vst [vmem:[#allocation5_spill] sm:$0xff] %v2783_v33  ;;  %v839_v29 = vmul.f32 %v2618_v32, %v3120_v61  ;;  %1969 = vpow2.f32 %v1669_v19  ;;  %v2808_v61 = vadd.f32 %v2661_v39, %v879_v41  ;;  %v2811_v48 = vmul.f32 -1.442695, %v2783_v33 }
 0x22d   : > { %3121 = vst [vmem:[#allocation6_spill] sm:$0xff] %v2795_v10  ;;  %v1946_v36 = vpop.eup %1945  ;;  %1971 = vpow2.f32 %v1671_v59  ;;  %3122 = vst [vmem:[#allocation7_spill] sm:$0xff] %v2802_v16  ;;  %v3126_v59 = vsub.f32 %v2403_v23, %v2546_v18  ;;  %v3127_v41 = vsub.f32 %v2391_v60, %v2546_v18  ;;  %v2825_v53 = vmul.f32 -1.442695, %v2795_v10  ;;  %v2838_v10 = vpop.f32.mrf.mxu0 }
 0x22e   : > { %3123 = vst [vmem:[#allocation8_spill] sm:$0xff] %v2805_v54  ;;  %3124 = vst [vmem:[#allocation9_spill] sm:$0xff] %v2808_v61  ;;  %v1948_v19 = vpop.eup %1947  ;;  %1973 = vpow2.f32 %v1672_v37  ;;  %v1023_v42 = vadd.f32 1.0, %v1946_v36  ;;  %v877_v58 = vmul.f32 %v2635_v22, %v839_v29  ;;  %v3128_v23 = vsub.f32 %v2421_v49, %v2546_v18 }
 0x22f   : > { %v842_v11 = vmul.f32 %v2618_v32, %v3126_v59  ;;  %v1950_v47 = vpop.eup %1949  ;;  %v1024_v24 = vadd.f32 1.0, %v1948_v19  ;;  %1975 = vpow2.f32 %v1670_v56  ;;  %v840_v37 = vmul.f32 %v2618_v32, %v3127_v41  ;;  %3130 = vst [vmem:[#allocation11_spill] sm:$0xff] %v2838_v10 }
 0x230   : > { %v1952_v36 = vpop.eup %1951  ;;  %v1025_v33 = vadd.f32 1.0, %v1950_v47  ;;  %1977 = vrcp.f32 %v1023_v42  ;;  %v845_v59 = vmul.f32 %v2618_v32, %v3128_v23  ;;  %v2832_v29 = vmul.f32 -1.442695, %v2802_v16 }
 0x231   : > { %v1954_v19 = vpop.eup %1953  ;;  %v1026_v56 = vadd.f32 1.0, %v1952_v36  ;;  %1979 = vrcp.f32 %v1024_v24  ;;  %v3129_v60 = vsub.f32 %v2409_v34, %v2546_v18  ;;  %v880_v49 = vmul.f32 %v2635_v22, %v842_v11 }
 0x232   : > { %v1956_v42 = vpop.eup %1955  ;;  %v1027_v41 = vadd.f32 1.0, %v1954_v19  ;;  %1981 = vrcp.f32 %v1025_v33  ;;  %v3131_v23 = vsub.f32 %v2425_v55, %v2546_v18  ;;  %v2846_v50 = vadd.f32 %v2661_v39, %v877_v58 }
 0x233   : > { %v843_v47 = vmul.f32 %v2618_v32, %v3129_v60  ;;  %v1958_v36 = vpop.eup %1957  ;;  %v1028_v16 = vadd.f32 1.0, %v1956_v42  ;;  %1983 = vrcp.f32 %v1026_v56  ;;  %v878_v34 = vmul.f32 %v2635_v22, %v840_v37  ;;  %v2857_v37 = vpop.f32.mrf.mxu0 }
 0x234   : > { %v846_v24 = vmul.f32 %v2618_v32, %v3131_v23  ;;  %3132 = vst [vmem:[#allocation12_spill] sm:$0xff] %v2846_v50  ;;  %v1960_v60 = vpop.eup %1959  ;;  %v1029_v19 = vadd.f32 1.0, %v1958_v36  ;;  %1985 = vrcp.f32 %v1027_v41  ;;  %v2850_v33 = vmul.f32 -1.442695, %v2805_v54 }
 0x235   : > { %v883_v11 = vmul.f32 %v2635_v22, %v845_v59  ;;  %v1962_v10 = vpop.eup %1961  ;;  %v1030_v55 = vadd.f32 1.0, %v1960_v60  ;;  %1987 = vrcp.f32 %v1028_v16  ;;  %v2854_v23 = vmul.f32 -1.442695, %v2808_v61 }
 0x236   : > { %v881_v56 = vmul.f32 %v2635_v22, %v843_v47  ;;  %v1964_v58 = vpop.eup %1963  ;;  %v1031_v42 = vadd.f32 1.0, %v1962_v10  ;;  %1989 = vrcp.f32 %v1029_v19  ;;  %v2860_v41 = vadd.f32 %v2661_v39, %v880_v49 }
 0x237   : > { %v884_v36 = vmul.f32 %v2635_v22, %v846_v24  ;;  %v1966_v54 = vpop.eup %1965  ;;  %v1032_v59 = vadd.f32 1.0, %v1964_v58  ;;  %1991 = vrcp.f32 %v1030_v55  ;;  %v2864_v16 = vmul.f32 -1.442695, %v2846_v50 }
 0x238   : > { %3133 = vst [vmem:[#allocation13_spill] sm:$0xff] %v2860_v41  ;;  %v2867_v60 = vadd.f32 %v2661_v39, %v878_v34  ;;  %v1968_v47 = vpop.eup %1967  ;;  %v1033_v61 = vadd.f32 1.0, %v1966_v54  ;;  %1993 = vrcp.f32 %v1031_v42  ;;  %v2870_v10 = vadd.f32 %v2661_v39, %v883_v11  ;;  %v2883_v11 = vpop.f32.mrf.mxu0 }
 0x239   : > { %v3135_v49 = vsub.f32 %v3117_v13, %v2546_v18  ;;  %v1970_v19 = vpop.eup %1969  ;;  %v1034_v58 = vadd.f32 1.0, %v1968_v47  ;;  %1995 = vrcp.f32 %v1032_v59  ;;  %v2877_v55 = vadd.f32 %v2661_v39, %v881_v56  ;;  %3138 = vst [vmem:[#allocation16_spill] sm:$0xff] %v2883_v11 }
 0x23a   : > { %3134 = vst [vmem:[#allocation14_spill] sm:$0xff] %v2867_v60  ;;  %v3137_v34 = vsub.f32 %v2441_v27, %v2546_v18  ;;  %v1972_v42 = vpop.eup %1971  ;;  %v1035_v50 = vadd.f32 1.0, %v1970_v19  ;;  %1997 = vrcp.f32 %v1033_v61  ;;  %v2886_v13 = vmul.f32 -1.442695, %v2860_v41 }
 0x23b   : > { %v844_v24 = vmul.f32 %v2618_v32, %v3135_v49  ;;  %3136 = vst [vmem:[#allocation15_spill] sm:$0xff] %v2877_v55  ;;  %v2889_v49 = vadd.f32 %v2661_v39, %v884_v36  ;;  %v1974_v59 = vpop.eup %1973  ;;  %v1037_v47 = vadd.f32 1.0, %v1972_v42  ;;  %1999 = vrcp.f32 %v1034_v58 }
 0x23c   : > { %v849_v54 = vmul.f32 %v2618_v32, %v3137_v34  ;;  %v2892_v56 = vmul.f32 -1.442695, %v2867_v60  ;;  %v3140_v27 = vsub.f32 %v2431_v9, %v2546_v18  ;;  %v1976_v61 = vpop.eup %1975  ;;  %v1038_v34 = vadd.f32 1.0, %v1974_v59  ;;  %v2907_v59 = vpop.f32.mrf.mxu0 }
 0x23d   : > { %3139 = vst [vmem:[#allocation17_spill] sm:$0xff] %v2889_v49  ;;  %2001 = vrcp.f32 %v1035_v50  ;;  %v2899_v41 = vmul.f32 -1.442695, %v2870_v10  ;;  %v882_v36 = vmul.f32 %v2635_v22, %v844_v24  ;;  %v1978_v11 = vpop.eup %1977  ;;  %v1036_v58 = vadd.f32 1.0, %v1976_v61 }
 0x23e   : > { %v847_v19 = vmul.f32 %v2618_v32, %v3140_v27  ;;  %2003 = vrcp.f32 %v1037_v47  ;;  %v2903_v42 = vmul.f32 -1.442695, %v2877_v55  ;;  %v887_v60 = vmul.f32 %v2635_v22, %v849_v54  ;;  %v1980_v9 = vpop.eup %1979 }
 0x23f   : > { %2005 = vrcp.f32 %v1038_v34  ;;  %v1119_v27 = vmul.f32 %v1978_v11, %v2676_v46  ;;  %v2910_v50 = vmul.f32 -1.442695, %v2889_v49  ;;  %v3141_v24 = vsub.f32 %v2445_v35, %v2546_v18  ;;  %v1982_v61 = vpop.eup %1981 }
 0x240   : > { %v1120_v54 = vmul.f32 %v1980_v9, %v2679_v7  ;;  %2007 = vrcp.f32 %v1036_v58  ;;  %v885_v46 = vmul.f32 %v2635_v22, %v847_v19  ;;  %v3142_v11 = vsub.f32 %v2435_v17, %v2546_v18  ;;  %v1984_v34 = vpop.eup %1983 }
 0x241   : > { %v850_v47 = vmul.f32 %v2618_v32, %v3141_v24  ;;  %v1121_v24 = vmul.f32 %v1982_v61, %v2686_v21  ;;  %v1511_v49 = vadd.f32 %v2552_v20, %v1119_v27  ;;  %2009 = vpow2.f32 %v2811_v48  ;;  %v1986_v7 = vpop.eup %1985  ;;  %v2945_v21 = vpop.f32.mrf.mxu0 }
 0x242   : > { %v848_v35 = vmul.f32 %v2618_v32, %v3142_v11  ;;  %v2933_v55 = vadd.f32 %v2661_v39, %v882_v36  ;;  %v1122_v58 = vmul.f32 %v1984_v34, %v2689_v26  ;;  %v1512_v19 = vadd.f32 %v2558_v38, %v1120_v54  ;;  %v1988_v18 = vpop.eup %1987 }
 0x243   : > { %2011 = vpow2.f32 %v2825_v53  ;;  %v2939_v17 = vadd.f32 %v2661_v39, %v887_v60  ;;  %v1123_v20 = vmul.f32 %v1986_v7, %v2695_v43  ;;  %v1513_v32 = vadd.f32 %v2549_v31, %v1121_v24  ;;  %1543 = vst [vmem:[%s2921_s16] sm:$0xff] %v1511_v49  ;;  %v1990_v38 = vpop.eup %1989  ;;  %v2969_v36 = vpop.f32.mrf.mxu0  ;;  %v3145_v7 = vld [vmem:[#allocation2_spill] sm:$0xff] }
 0x244   : > { %2013 = vpow2.f32 %v2832_v29  ;;  %v888_v26 = vmul.f32 %v2635_v22, %v850_v47  ;;  %v1124_v48 = vmul.f32 %v1988_v18, %v2701_v30  ;;  %v1514_v53 = vadd.f32 %v2555_v25, %v1122_v58  ;;  %1544 = vst [vmem:[%s2921_s16 + $0x8] sm:$0xff] %v1512_v19  ;;  %v1992_v31 = vpop.eup %1991 }
 0x245   : > { %2015 = vpow2.f32 %v2850_v33  ;;  %v886_v43 = vmul.f32 %v2635_v22, %v848_v35  ;;  %v1125_v60 = vmul.f32 %v1990_v38, %v2704_v5  ;;  %v1515_v29 = vadd.f32 %v2564_v1, %v1123_v20  ;;  %1545 = vst [vmem:[%s2921_s16 + $0x10] sm:$0xff] %v1513_v32  ;;  %v1994_v30 = vpop.eup %1993 }
 0x246   : > { %2017 = vpow2.f32 %v2854_v23  ;;  %v2958_v49 = vadd.f32 %v2661_v39, %v885_v46  ;;  %v1126_v25 = vmul.f32 %v1992_v31, %v2711_v6  ;;  %v1516_v33 = vadd.f32 %v2570_v2, %v1124_v48  ;;  %1546 = vst [vmem:[%s2921_s16 + $0x18] sm:$0xff] %v1514_v53  ;;  %v1996_v5 = vpop.eup %1995 }
 0x247   : > { %2019 = vpow2.f32 %v2864_v16  ;;  %v1682_v22 = vmul.f32 -1.442695, %v2933_v55  ;;  %v1127_v1 = vmul.f32 %v1994_v30, %v2716_v45  ;;  %v1517_v23 = vadd.f32 %v2561_v44, %v1125_v60  ;;  %1547 = vst [vmem:[%s2921_s16 + $0x20] sm:$0xff] %v1515_v29  ;;  %v1998_v2 = vpop.eup %1997 }
 0x248   : > { %2021 = vpow2.f32 %v2886_v13  ;;  %v2972_v6 = vadd.f32 %v2661_v39, %v888_v26  ;;  %v1128_v16 = vmul.f32 %v1996_v5, %v2719_v15  ;;  %v1518_v9 = vadd.f32 %v2567_v0, %v1126_v25  ;;  %1548 = vst [vmem:[%s2921_s16 + $0x28] sm:$0xff] %v1516_v33  ;;  %v2000_v44 = vpop.eup %1999 }
 0x249   : > { %2023 = vpow2.f32 %v2892_v56  ;;  %v2979_v45 = vadd.f32 %v2661_v39, %v886_v43  ;;  %v1129_v13 = vmul.f32 %v1998_v2, %v2723_v52  ;;  %v1519_v27 = vadd.f32 %v2576_v4, %v1127_v1  ;;  %1549 = vst [vmem:[%s2921_s16 + $0x30] sm:$0xff] %v1517_v23 }
 0x24a   : > { %2025 = vpow2.f32 %v2899_v41  ;;  %v1687_v47 = vmul.f32 -1.442695, %v2939_v17  ;;  %v2002_v15 = vpop.eup %2001  ;;  %v1130_v0 = vmul.f32 %v2000_v44, %v2726_v12  ;;  %v1520_v56 = vadd.f32 %v2582_v14, %v1128_v16  ;;  %1550 = vst [vmem:[%s2921_s16 + $0x38] sm:$0xff] %v1518_v9  ;;  %v2994_v41 = vpop.f32.mrf.mxu0 }
 0x24b   : > { %2027 = vpow2.f32 %v2903_v42  ;;  %v1685_v39 = vmul.f32 -1.442695, %v2958_v49  ;;  %v2004_v61 = vpop.eup %2003  ;;  %v1131_v52 = vmul.f32 %v2002_v15, %v2730_v40  ;;  %v1521_v4 = vadd.f32 %v2573_v3, %v1129_v13  ;;  %1551 = vst [vmem:[%s2921_s16 + $0x40] sm:$0xff] %v1519_v27 }
 0x24c   : > { %2029 = vpow2.f32 %v2910_v50  ;;  %v1688_v12 = vmul.f32 -1.442695, %v2972_v6  ;;  %v2006_v14 = vpop.eup %2005  ;;  %v1133_v54 = vmul.f32 %v2004_v61, %v2733_v63  ;;  %v1522_v42 = vadd.f32 %v2579_v8, %v1130_v0  ;;  %1552 = vst [vmem:[%s2921_s16 + $0x48] sm:$0xff] %v1520_v56  ;;  %v3143_v63 = vld [vmem:[#allocation3_spill] sm:$0xff]  ;;  %v3144_v8 = vld [vmem:[#allocation4_spill] sm:$0xff] }
 0x24d   : > { %2031 = vpow2.f32 %v1682_v22  ;;  %v1686_v40 = vmul.f32 -1.442695, %v2979_v45  ;;  %v2008_v46 = vpop.eup %2007  ;;  %v1134_v3 = vmul.f32 %v2006_v14, %v2761_v28  ;;  %v1444_v11 = vadd.f32 %v2764_v57, %v2544_v62  ;;  %1553 = vst [vmem:[%s2921_s16 + $0x50] sm:$0xff] %v1521_v4 }
 0x24e   : > { %v1523_v50 = vadd.f32 %v2594_v51, %v1131_v52  ;;  %2033 = vpow2.f32 %v1687_v47  ;;  %v2010_v35 = vpop.eup %2009  ;;  %v1525_v34 = vadd.f32 %v3143_v63, %v1133_v54  ;;  %1554 = vst [vmem:[%s2921_s16 + $0x58] sm:$0xff] %v1522_v42  ;;  %v1132_v24 = vmul.f32 %v2008_v46, %v3144_v8  ;;  %v3013_v51 = vpop.f32.mrf.mxu0  ;;  %v3146_v42 = vld [vmem:[#allocation5_spill] sm:$0xff]  ;;  %v3147_v46 = vld [vmem:[#allocation10_spill] sm:$0xff] }
 0x24f   : > { %v1436_v58 = vadd.f32 %v2544_v62, %v3145_v7  ;;  %2035 = vpow2.f32 %v1685_v39  ;;  %v1526_v19 = vadd.f32 %v1444_v11, %v1134_v3  ;;  %v1041_v57 = vadd.f32 1.0, %v2010_v35  ;;  %v3148_v35 = vld [vmem:[#allocation6_spill] sm:$0xff] }
 0x250   : > { %v2012_v28 = vpop.eup %2011  ;;  %1555 = vst [vmem:[%s2921_s16 + $0x60] sm:$0xff] %v1523_v50  ;;  %2037 = vpow2.f32 %v1688_v12  ;;  %1557 = vst [vmem:[%s2921_s16 + $0x70] sm:$0xff] %v1525_v34  ;;  %v3018_v60 = vpop.f32.mrf.mxu0  ;;  %v1457_v3 = vadd.f32 %v3147_v46, %v2544_v62  ;;  %v3149_v34 = vld [vmem:[#allocation11_spill] sm:$0xff] }
 0x251   : > { %v2014_v18 = vpop.eup %2013  ;;  %v1524_v20 = vadd.f32 %v1436_v58, %v1132_v24  ;;  %v1039_v32 = vadd.f32 1.0, %v2012_v28  ;;  %2039 = vpow2.f32 %v1686_v40  ;;  %1558 = vst [vmem:[%s2921_s16 + $0x78] sm:$0xff] %v1526_v19  ;;  %v1449_v8 = vadd.f32 %v2544_v62, %v3149_v34  ;;  %v3150_v58 = vld [vmem:[#allocation7_spill] sm:$0xff] }
 0x252   : > { %v2016_v26 = vpop.eup %2015  ;;  %2041 = vrcp.f32 %v1041_v57  ;;  %v1042_v38 = vadd.f32 1.0, %v2014_v18  ;;  %v3020_v2 = vpop.f32.mrf.mxu0  ;;  %v1460_v19 = vadd.f32 %v2857_v37, %v2544_v62 }
 0x253   : > { %v2018_v48 = vpop.eup %2017  ;;  %1556 = vst [vmem:[%s2921_s16 + $0x68] sm:$0xff] %v1524_v20  ;;  %2043 = vrcp.f32 %v1039_v32  ;;  %v1040_v53 = vadd.f32 1.0, %v2016_v26  ;;  %v3151_v20 = vld [vmem:[#allocation8_spill] sm:$0xff] }
 0x254   : > { %v2020_v43 = vpop.eup %2019  ;;  %2045 = vrcp.f32 %v1042_v38  ;;  %v1045_v31 = vadd.f32 1.0, %v2018_v48  ;;  %v3022_v0 = vpop.f32.mrf.mxu0  ;;  %v3152_v26 = vld [vmem:[#allocation16_spill] sm:$0xff] }
 0x255   : > { %v2022_v29 = vpop.eup %2021  ;;  %2047 = vrcp.f32 %v1040_v53  ;;  %v1043_v30 = vadd.f32 1.0, %v2020_v43  ;;  %v1452_v38 = vadd.f32 %v2544_v62, %v3152_v26  ;;  %v3153_v43 = vld [vmem:[#allocation9_spill] sm:$0xff] }
 0x256   : > { %v2024_v25 = vpop.eup %2023  ;;  %2049 = vrcp.f32 %v1045_v31  ;;  %v1046_v33 = vadd.f32 1.0, %v2022_v29  ;;  %v1907_v11 = vpop.f32.mrf.mxu0  ;;  %v1473_v29 = vadd.f32 %v2907_v59, %v2544_v62 }
 0x257   : > { %v2026_v22 = vpop.eup %2025  ;;  %2051 = vrcp.f32 %v1043_v30  ;;  %v1044_v5 = vadd.f32 1.0, %v2024_v25 }
 0x258   : > { %v2028_v1 = vpop.eup %2027  ;;  %2053 = vrcp.f32 %v1046_v33  ;;  %v1049_v23 = vadd.f32 1.0, %v2026_v22  ;;  %v1496_v30 = vpop.f32.mrf.mxu0  ;;  %v3154_v33 = vld [vmem:[#allocation12_spill] sm:$0xff] }
 0x259   : > { %v2030_v16 = vpop.eup %2029  ;;  %2055 = vrcp.f32 %v1044_v5  ;;  %v1047_v9 = vadd.f32 1.0, %v2028_v1  ;;  %v1465_v5 = vadd.f32 %v2544_v62, %v2945_v21 }
 0x25a   : > { %v2032_v44 = vpop.eup %2031  ;;  %2057 = vrcp.f32 %v1049_v23  ;;  %v1050_v13 = vadd.f32 1.0, %v2030_v16  ;;  %v3155_v16 = vld [vmem:[#allocation13_spill] sm:$0xff] }
 0x25b   : > { %v2034_v27 = vpop.eup %2033  ;;  %2059 = vrcp.f32 %v1047_v9  ;;  %v1048_v47 = vadd.f32 1.0, %v2032_v44  ;;  %v1476_v44 = vadd.f32 %v2969_v36, %v2544_v62 }
 0x25c   : > { %v2036_v15 = vpop.eup %2035  ;;  %2061 = vrcp.f32 %v1050_v13  ;;  %v1053_v56 = vadd.f32 1.0, %v2034_v27  ;;  %v3156_v27 = vld [vmem:[#allocation14_spill] sm:$0xff] }
 0x25d   : > { %v2038_v39 = vpop.eup %2037  ;;  %2063 = vrcp.f32 %v1048_v47  ;;  %v1051_v61 = vadd.f32 1.0, %v2036_v15  ;;  %v1468_v15 = vadd.f32 %v2544_v62, %v2994_v41 }
 0x25e   : > { %v2040_v52 = vpop.eup %2039  ;;  %2065 = vrcp.f32 %v1053_v56  ;;  %v1054_v4 = vadd.f32 1.0, %v2038_v39 }
 0x25f   : > { %v2042_v12 = vpop.eup %2041  ;;  %2067 = vrcp.f32 %v1051_v61  ;;  %v1052_v14 = vadd.f32 1.0, %v2040_v52  ;;  %v1489_v61 = vadd.f32 %v3013_v51, %v2544_v62  ;;  %v1908_v52 = vpop.f32.mrf.mxu0 }
 0x260   : > { %v2044_v54 = vpop.eup %2043  ;;  %v1137_v40 = vmul.f32 %v2042_v12, %v3146_v42  ;;  %2069 = vrcp.f32 %v1054_v4  ;;  %v3157_v12 = vld [vmem:[#allocation15_spill] sm:$0xff] }
 0x261   : > { %v2046_v50 = vpop.eup %2045  ;;  %v1135_v63 = vmul.f32 %v2044_v54, %v3148_v35  ;;  %2071 = vrcp.f32 %v1052_v14  ;;  %v1481_v54 = vadd.f32 %v2544_v62, %v3018_v60  ;;  %v1484_v35 = vadd.f32 %v2544_v62, %v3022_v0 }
 0x262   : > { %v2048_v24 = vpop.eup %2047  ;;  %v1529_v7 = vadd.f32 %v1457_v3, %v1137_v40  ;;  %v1138_v28 = vmul.f32 %v2046_v50, %v3150_v58  ;;  %v3158_v40 = vld [vmem:[#allocation17_spill] sm:$0xff]  ;;  %v1497_v0 = vadd.f32 %v2544_v62, %v1496_v30 }
 0x263   : > { %v2050_v57 = vpop.eup %2049  ;;  %v1527_v18 = vadd.f32 %v1449_v8, %v1135_v63  ;;  %v1136_v32 = vmul.f32 %v2048_v24, %v3151_v20  ;;  %v1505_v8 = vadd.f32 %v1907_v11, %v2544_v62  ;;  %v1499_v24 = vpop.f32.mrf.mxu0 }
 0x264   : > { %v2052_v48 = vpop.eup %2051  ;;  %1561 = vst [vmem:[%s2921_s16 + $0x90] sm:$0xff] %v1529_v7  ;;  %v1530_v53 = vadd.f32 %v1460_v19, %v1138_v28  ;;  %v1141_v31 = vmul.f32 %v2050_v57, %v3153_v43 }
 0x265   : > { %v2054_v25 = vpop.eup %2053  ;;  %1559 = vst [vmem:[%s2921_s16 + $0x80] sm:$0xff] %v1527_v18  ;;  %v1528_v37 = vadd.f32 %v1452_v38, %v1136_v32  ;;  %v1139_v22 = vmul.f32 %v2052_v48, %v3154_v33  ;;  %v1500_v18 = vadd.f32 %v2544_v62, %v1499_v24 }
 0x266   : > { %v2056_v1 = vpop.eup %2055  ;;  %1562 = vst [vmem:[%s2921_s16 + $0x98] sm:$0xff] %v1530_v53  ;;  %v1533_v23 = vadd.f32 %v1473_v29, %v1141_v31  ;;  %v1142_v9 = vmul.f32 %v2054_v25, %v3155_v16 }
 0x267   : > { %v2058_v59 = vpop.eup %2057  ;;  %1560 = vst [vmem:[%s2921_s16 + $0x88] sm:$0xff] %v1528_v37  ;;  %v1531_v13 = vadd.f32 %v1465_v5, %v1139_v22  ;;  %v1140_v47 = vmul.f32 %v2056_v1, %v3156_v27 }
 0x268   : > { %v2060_v56 = vpop.eup %2059  ;;  %1565 = vst [vmem:[%s2921_s16 + $0xb0] sm:$0xff] %v1533_v23  ;;  %v1534_v21 = vadd.f32 %v1476_v44, %v1142_v9  ;;  %v1145_v39 = vmul.f32 %v2058_v59, %v2870_v10  ;;  %v1492_v10 = vadd.f32 %v3020_v2, %v2544_v62 }
 0x269   : > { %v2062_v36 = vpop.eup %2061  ;;  %1563 = vst [vmem:[%s2921_s16 + $0xa0] sm:$0xff] %v1531_v13  ;;  %v1532_v4 = vadd.f32 %v1468_v15, %v1140_v47  ;;  %v1143_v14 = vmul.f32 %v2060_v56, %v3157_v12 }
 0x26a   : > { %v2064_v41 = vpop.eup %2063  ;;  %1566 = vst [vmem:[%s2921_s16 + $0xb8] sm:$0xff] %v1534_v21  ;;  %v1537_v42 = vadd.f32 %v1489_v61, %v1145_v39  ;;  %v1146_v46 = vmul.f32 %v2062_v36, %v3158_v40 }
 0x26b   : > { %v2066_v51 = vpop.eup %2065  ;;  %1564 = vst [vmem:[%s2921_s16 + $0xa8] sm:$0xff] %v1532_v4  ;;  %v1535_v3 = vadd.f32 %v1481_v54, %v1143_v14  ;;  %v1144_v50 = vmul.f32 %v2064_v41, %v2933_v55 }
 0x26c   : > { %v2068_v63 = vpop.eup %2067  ;;  %1569 = vst [vmem:[%s2921_s16 + $0xd0] sm:$0xff] %v1537_v42  ;;  %v1538_v60 = vadd.f32 %v1492_v10, %v1146_v46  ;;  %v1149_v34 = vmul.f32 %v2066_v51, %v2939_v17  ;;  %v1508_v17 = vadd.f32 %v1908_v52, %v2544_v62 }
 0x26d   : > { %v2070_v2 = vpop.eup %2069  ;;  %1567 = vst [vmem:[%s2921_s16 + $0xc0] sm:$0xff] %v1535_v3  ;;  %v1536_v7 = vadd.f32 %v1484_v35, %v1144_v50  ;;  %v1147_v55 = vmul.f32 %v2068_v63, %v2958_v49 }
 0x26e   : > { %v2072_v58 = vpop.eup %2071  ;;  %1570 = vst [vmem:[%s2921_s16 + $0xd8] sm:$0xff] %v1538_v60  ;;  %v1541_v28 = vadd.f32 %v1505_v8, %v1149_v34  ;;  %v1150_v19 = vmul.f32 %v2070_v2, %v2972_v6 }
 0x26f   : > { %1568 = vst [vmem:[%s2921_s16 + $0xc8] sm:$0xff] %v1536_v7  ;;  %v1539_v11 = vadd.f32 %v1497_v0, %v1147_v55  ;;  %v1148_v57 = vmul.f32 %v2072_v58, %v2979_v45 }
 0x270   : > { %1573 = vst [vmem:[%s2921_s16 + $0xf0] sm:$0xff] %v1541_v28  ;;  %v1542_v20 = vadd.f32 %v1508_v17, %v1150_v19 }
 0x271   : > { %1571 = vst [vmem:[%s2921_s16 + $0xe0] sm:$0xff] %v1539_v11  ;;  %v1540_v49 = vadd.f32 %v1500_v18, %v1148_v57 }
 0x272   : > { %1574 = vst [vmem:[%s2921_s16 + $0xf8] sm:$0xff] %v1542_v20 }
 0x273   : > { %1572 = vst [vmem:[%s2921_s16 + $0xe8] sm:$0xff] %v1540_v49 }
 0x274 PF: > { %s18_s27 = sadd.s32 1, %s2079_s27  }
 0x275   : > { %p15_p4 = scmp.ge.s32.totalorder %s18_s27, 4  }
 0x277   :  { %17 = sbr.rel (!%p15_p4) target bundleno = 1 (0x1), region = 85 }

// kernel: resnet_block_forward.4
= control target key start
LH: loop header
LB: loop body
LE: loop exit
PB: predicated region body
PF: predicated region fallthrough
CT: control target
= control target key end

     0   :  { %s4909_s12 = smov 0   ;;  %s4911_s13 = smov 0   ;;  %s6091_s0 = inlined_call_operand.vmem [shape: f32[2,18,18,128], index: 0, kind: input, shape index: {}]   ;;  %s6092_s1 = inlined_call_operand.vmem [shape: bf16[3,3,128,128], index: 1, kind: input, shape index: {}]   ;;  %s6093_s2 = inlined_call_operand.vmem [shape: f32[1,128], index: 2, kind: input, shape index: {}]   ;;  %s6094_s3 = inlined_call_operand.vmem [shape: f32[2,16,16,128], index: 3, kind: output, shape index: {}]  }
   0x1   :  { %s4913_s14 = smov 0  }
   0x2 LB: > { %s25_s15 = sadd.s32 1, %s4883_s13  ;;  %p3704_p0 = scmp.ge.s32.totalorder %s4887_s14, 1  ;;  %s4887_s14 = sphi %s4913_s14, %s13_s14   ;;  %s4883_s13 = sphi %s4911_s13, %s6176_s13   ;;  %s4879_s12 = sphi %s4909_s12, %s6175_s12  }
   0x3   : > { %p27_p1 = scmp.ge.s32.totalorder %s25_s15, 2  ;;  %p168_p2 = scmp.lt.s32.totalorder %s4887_s14, 3 }
   0x5   : > { %s6178_s15 = smov (%p27_p1, %s25_s15), 0  ;;  %p169_p3 = pnand %p3704_p0, %p168_p2 }
   0x7   : > { %172 = sbr.rel (%p169_p3) target bundleno = 531 (0x213), region = 32 }
   0xc   : > { %v4793_v0 = vld [vmem:[%s6092_s1 + $0x38] sm:$0xff]   ;;  %p202_p4 = scmp.lt.s32.totalorder %s4879_s12, 1  ;;  %v4794_v1 = vld [vmem:[%s6092_s1 + $0x30] sm:$0xff]   ;;  %v4795_v2 = vld [vmem:[%s6092_s1 + $0x28] sm:$0xff]  }
   0xd   : > { %4320 = vmatprep.subr.bf16.mxu0 %v4793_v0  ;;  %4752 = vmatprep.subr.bf16.mxu1 %v4793_v0  ;;  %v4796_v3 = vld [vmem:[%s6092_s1 + $0x20] sm:$0xff]   ;;  %v4797_v10 = vld [vmem:[%s6092_s1 + $0x18] sm:$0xff]   ;;  %v4798_v11 = vld [vmem:[%s6092_s1 + $0x10] sm:$0xff]  }
   0xe   : > { %s6180_s12 = smov (!%p202_p4, %s4879_s12), 1  ;;  %4321 = vmatpush3.bf16.msra.mxu0 %v4793_v0  ;;  %4760 = vmatpush3.bf16.msra.mxu1 %v4793_v0  ;;  %v4799_v12 = vld [vmem:[%s6092_s1 + $0x8] sm:$0xff]   ;;  %v4800_v13 = vld [vmem:[%s6092_s1] sm:$0xff]   ;;  %v4801_v18 = vld [vmem:[%s6092_s1 + $0x78] sm:$0xff]  }
   0xf   : > { %4322 = vmatprep.subr.bf16.mxu0 %v4794_v1  ;;  %4753 = vmatprep.subr.bf16.mxu1 %v4794_v1  ;;  %s4768_s22 = smul.u32 432, %s6180_s12  ;;  %v4802_v19 = vld [vmem:[%s6092_s1 + $0xb8] sm:$0xff]   ;;  %v4803_v26 = vld [vmem:[%s6092_s1 + $0x70] sm:$0xff]   ;;  %v4805_v34 = vld [vmem:[%s6092_s1 + $0x68] sm:$0xff]  }
  0x10   : > { %v4804_v27 = vld [vmem:[%s6092_s1 + $0xb0] sm:$0xff]   ;;  %v4806_v35 = vld [vmem:[%s6092_s1 + $0xa8] sm:$0xff]   ;;  %v4807_v42 = vld [vmem:[%s6092_s1 + $0x60] sm:$0xff]  }
  0x11   : > { %s4942_s25 = scalar_lea.vmem %s6091_s0, %s4768_s22  ;;  %v4808_v43 = vld [vmem:[%s6092_s1 + $0xa0] sm:$0xff]   ;;  %v4809_v50 = vld [vmem:[%s6092_s1 + $0x58] sm:$0xff]   ;;  %v4811_v58 = vld [vmem:[%s6092_s1 + $0x50] sm:$0xff]  }
  0x12   : > { %4323 = vmatpush3.bf16.msra.mxu0 %v4794_v1  ;;  %4761 = vmatpush3.bf16.msra.mxu1 %v4794_v1  ;;  %v223_v4 = vld [vmem:[%s4942_s25] sm:$0xff]  ;;  %v224_v5 = vld [vmem:[%s4942_s25 + $0x8] sm:$0xff]  ;;  %v225_v14 = vld [vmem:[%s4942_s25 + $0x18] sm:$0xff] }
  0x13   : > { %4324 = vmatprep.subr.bf16.mxu0 %v4795_v2  ;;  %4754 = vmatprep.subr.bf16.mxu1 %v4795_v2  ;;  %v239_v6 = vld [vmem:[%s4942_s25 + $0xc0] sm:$0xff]  ;;  %v255_v7 = vpack.c.bf16 %v224_v5, %v223_v4  ;;  %v240_v8 = vld [vmem:[%s4942_s25 + $0xc8] sm:$0xff]  ;;  %v241_v16 = vld [vmem:[%s4942_s25 + $0xd8] sm:$0xff] }
  0x14   : > { %v4951_v9 = vpack.c.bf16 %v240_v8, %v239_v6  ;;  %v226_v15 = vld [vmem:[%s4942_s25 + $0x20] sm:$0xff]  ;;  %v227_v20 = vld [vmem:[%s4942_s25 + $0x30] sm:$0xff]  ;;  %v228_v21 = vld [vmem:[%s4942_s25 + $0x38] sm:$0xff] }
  0x15   : > { %4336 = vmatprep.mubr.bf16.mxu0 %v255_v7  ;;  %v242_v17 = vld [vmem:[%s4942_s25 + $0xe0] sm:$0xff]  ;;  %v4978_v22 = vpack.c.bf16 %v226_v15, %v225_v14  ;;  %v243_v24 = vld [vmem:[%s4942_s25 + $0xf0] sm:$0xff]  ;;  %v244_v25 = vld [vmem:[%s4942_s25 + $0xf8] sm:$0xff]  ;;  %v4990_v28 = vpack.c.bf16 %v228_v21, %v227_v20 }
  0x16   : > { %4325 = vmatpush3.bf16.msra.mxu0 %v4795_v2  ;;  %4762 = vmatpush3.bf16.msra.mxu1 %v4795_v2  ;;  %v4980_v23 = vpack.c.bf16 %v242_v17, %v241_v16  ;;  %v4992_v29 = vpack.c.bf16 %v244_v25, %v243_v24  ;;  %v229_v30 = vld [vmem:[%s4942_s25 + $0x48] sm:$0xff]  ;;  %v230_v31 = vld [vmem:[%s4942_s25 + $0x50] sm:$0xff]  ;;  %v231_v36 = vld [vmem:[%s4942_s25 + $0x60] sm:$0xff] }
  0x17   : > { %4326 = vmatprep.subr.bf16.mxu0 %v4796_v3  ;;  %4755 = vmatprep.subr.bf16.mxu1 %v4796_v3  ;;  %v245_v32 = vld [vmem:[%s4942_s25 + $0x108] sm:$0xff]  ;;  %v246_v33 = vld [vmem:[%s4942_s25 + $0x110] sm:$0xff]  ;;  %v247_v38 = vld [vmem:[%s4942_s25 + $0x120] sm:$0xff]  ;;  %v5011_v39 = vpack.c.bf16 %v230_v31, %v229_v30 }
  0x18   : > { %4352 = vmatprep.mubr.bf16.mxu1 %v4951_v9  ;;  %v232_v37 = vld [vmem:[%s4942_s25 + $0x68] sm:$0xff]  ;;  %v5013_v40 = vpack.c.bf16 %v246_v33, %v245_v32  ;;  %v233_v46 = vld [vmem:[%s4942_s25 + $0x78] sm:$0xff]  ;;  %v234_v47 = vld [vmem:[%s4942_s25 + $0x80] sm:$0xff] }
  0x19   : > { %v248_v41 = vld [vmem:[%s4942_s25 + $0x128] sm:$0xff]  ;;  %v5022_v44 = vpack.c.bf16 %v232_v37, %v231_v36  ;;  %v249_v48 = vld [vmem:[%s4942_s25 + $0x138] sm:$0xff]  ;;  %v250_v49 = vld [vmem:[%s4942_s25 + $0x140] sm:$0xff]  ;;  %v5042_v54 = vpack.c.bf16 %v234_v47, %v233_v46 }
  0x1a   : > { %4327 = vmatpush3.bf16.msra.mxu0 %v4796_v3  ;;  %4763 = vmatpush3.bf16.msra.mxu1 %v4796_v3  ;;  %v5024_v45 = vpack.c.bf16 %v248_v41, %v247_v38  ;;  %v4810_v51 = vld [vmem:[%s6092_s1 + $0x98] sm:$0xff]   ;;  %v235_v52 = vld [vmem:[%s4942_s25 + $0x90] sm:$0xff]  ;;  %v5044_v55 = vpack.c.bf16 %v250_v49, %v249_v48  ;;  %v237_v62 = vld [vmem:[%s4942_s25 + $0xa8] sm:$0xff] }
  0x1b   : > { %4328 = vmatprep.subr.bf16.mxu0 %v4797_v10  ;;  %4756 = vmatprep.subr.bf16.mxu1 %v4797_v10  ;;  %v236_v53 = vld [vmem:[%s4942_s25 + $0x98] sm:$0xff]  ;;  %v251_v56 = vld [vmem:[%s4942_s25 + $0x150] sm:$0xff]  ;;  %v253_v0 = vld [vmem:[%s4942_s25 + $0x168] sm:$0xff] }
  0x1c   : > { %v252_v57 = vld [vmem:[%s4942_s25 + $0x158] sm:$0xff]  ;;  %v4812_v59 = vld [vmem:[%s6092_s1 + $0x90] sm:$0xff]   ;;  %v5054_v60 = vpack.c.bf16 %v236_v53, %v235_v52  ;;  %v4813_v2 = vld [vmem:[%s6092_s1 + $0x48] sm:$0xff]  }
  0x1d   : > { %v5056_v61 = vpack.c.bf16 %v252_v57, %v251_v56  ;;  %v238_v63 = vld [vmem:[%s4942_s25 + $0xb0] sm:$0xff]  ;;  %v4814_v3 = vld [vmem:[%s6092_s1 + $0x88] sm:$0xff]   ;;  %v530_v15 = vld [vmem:[%s4942_s25 + $0x19] sm:$0xff] }
  0x1e   : > { %4329 = vmatpush3.bf16.msra.mxu0 %v4797_v10  ;;  %4764 = vmatpush3.bf16.msra.mxu1 %v4797_v10  ;;  %v254_v1 = vld [vmem:[%s4942_s25 + $0x170] sm:$0xff]  ;;  %v528_v4 = vld [vmem:[%s4942_s25 + $0x1] sm:$0xff]  ;;  %v5073_v5 = vpack.c.bf16 %v238_v63, %v237_v62  ;;  %v4818_v20 = vld [vmem:[%s6092_s1 + $0x138] sm:$0xff]  }
  0x1f   : > { %4330 = vmatprep.subr.bf16.mxu0 %v4798_v11  ;;  %4757 = vmatprep.subr.bf16.mxu1 %v4798_v11  ;;  %v5075_v6 = vpack.c.bf16 %v254_v1, %v253_v0  ;;  %v529_v7 = vld [vmem:[%s4942_s25 + $0x9] sm:$0xff]  ;;  %v531_v16 = vld [vmem:[%s4942_s25 + $0x21] sm:$0xff]  ;;  %v532_v21 = vld [vmem:[%s4942_s25 + $0x31] sm:$0xff] }
  0x20   : > { %v898_v8 = vld [vmem:[%s4942_s25 + $0x2] sm:$0xff]  ;;  %v899_v10 = vld [vmem:[%s4942_s25 + $0xa] sm:$0xff]  ;;  %v900_v17 = vld [vmem:[%s4942_s25 + $0x1a] sm:$0xff] }
  0x21   : > { %v930_v14 = vpack.c.bf16 %v899_v10, %v898_v8  ;;  %v533_v24 = vld [vmem:[%s4942_s25 + $0x39] sm:$0xff]  ;;  %v4819_v33 = vld [vmem:[%s6092_s1 + $0xf0] sm:$0xff]   ;;  %v536_v41 = vld [vmem:[%s4942_s25 + $0x61] sm:$0xff] }
  0x22   : > { %4331 = vmatpush3.bf16.msra.mxu0 %v4798_v11  ;;  %4765 = vmatpush3.bf16.msra.mxu1 %v4798_v11  ;;  %v4815_v11 = vld [vmem:[%s6092_s1 + $0x40] sm:$0xff]   ;;  %v902_v25 = vld [vmem:[%s4942_s25 + $0x32] sm:$0xff]  ;;  %v5106_v31 = vpack.c.bf16 %v533_v24, %v532_v21  ;;  %v904_v36 = vld [vmem:[%s4942_s25 + $0x4a] sm:$0xff] }
  0x23   : > { %4332 = vmatprep.subr.bf16.mxu0 %v4799_v12  ;;  %4758 = vmatprep.subr.bf16.mxu1 %v4799_v12  ;;  %v4820_v37 = vld [vmem:[%s6092_s1 + $0x130] sm:$0xff]   ;;  %v4821_v47 = vld [vmem:[%s6092_s1 + $0xe8] sm:$0xff]   ;;  %v4823_v53 = vld [vmem:[%s6092_s1 + $0xe0] sm:$0xff]  }
  0x24   : > { %v905_v38 = vld [vmem:[%s4942_s25 + $0x52] sm:$0xff]  ;;  %v907_v46 = vld [vmem:[%s4942_s25 + $0x6a] sm:$0xff]  ;;  %v539_v57 = vld [vmem:[%s4942_s25 + $0x81] sm:$0xff] }
  0x25   : > { %v4822_v48 = vld [vmem:[%s6092_s1 + $0x128] sm:$0xff]   ;;  %v538_v56 = vld [vmem:[%s4942_s25 + $0x79] sm:$0xff]  ;;  %v540_v63 = vld [vmem:[%s4942_s25 + $0x91] sm:$0xff] }
  0x26   : > { %4333 = vmatpush3.bf16.msra.mxu0 %v4799_v12  ;;  %4766 = vmatpush3.bf16.msra.mxu1 %v4799_v12  ;;  %v4816_v12 = vld [vmem:[%s6092_s1 + $0x80] sm:$0xff]   ;;  %v910_v1 = vld [vmem:[%s4942_s25 + $0x92] sm:$0xff]  ;;  %v915_v21 = vld [vmem:[%s4942_s25 + $0xca] sm:$0xff] }
  0x27   : > { %4334 = vmatprep.subr.bf16.mxu0 %v4800_v13  ;;  %4759 = vmatprep.subr.bf16.mxu1 %v4800_v13  ;;  %v4824_v62 = vld [vmem:[%s6092_s1 + $0x120] sm:$0xff]   ;;  %v4829_v24 = vld [vmem:[%s6092_s1 + $0xc8] sm:$0xff]  }
  0x28   : > { %v541_v0 = vld [vmem:[%s4942_s25 + $0x99] sm:$0xff] }
  0x29   : > { %v5170_v10 = vpack.c.bf16 %v541_v0, %v540_v63  ;;  %v550_v0 = vld [vmem:[%s4942_s25 + $0x109] sm:$0xff] }
  0x2a   : > { %4335 = vmatpush3.bf16.msra.mxu0 %v4800_v13  ;;  %4767 = vmatpush3.bf16.msra.mxu1 %v4800_v13  ;;  %v560_v13 = vpack.c.bf16 %v529_v7, %v528_v4  ;;  %v4826_v4 = vld [vmem:[%s6092_s1 + $0x118] sm:$0xff]   ;;  %v5166_v7 = vpack.c.bf16 %v539_v57, %v538_v56 }
  0x2b   : > { %4368 = vmatprep.subr.bf16.mxu1 %v4801_v18  ;;  %4416 = vmatprep.subr.bf16.mxu0 %v4802_v19  ;;  %v4833_v56 = vld [vmem:[%s6092_s1 + $0x178] sm:$0xff]  }
  0x2c   : > { %v4834_v57 = vld [vmem:[%s6092_s1 + $0x1b8] sm:$0xff]  }
  0x2d   : > { %4337 = vmatmul.mubr.bf16.vlgmr.msra.gmra.mxu0 %v4978_v22  ;;  %4353 = vmatmul.mubr.bf16.vlgmr.msra.gmra.mxu1 %v4980_v23 }
  0x2e   : > { %4369 = vmatpush3.bf16.msra.mxu1 %v4801_v18  ;;  %4417 = vmatpush3.bf16.msra.mxu0 %v4802_v19  ;;  %v901_v18 = vld [vmem:[%s4942_s25 + $0x22] sm:$0xff]  ;;  %v4817_v19 = vld [vmem:[%s6092_s1 + $0xf8] sm:$0xff]  }
  0x2f   : > { %4370 = vmatprep.subr.bf16.mxu1 %v4803_v26  ;;  %4418 = vmatprep.subr.bf16.mxu0 %v4804_v27  ;;  %v5104_v30 = vpack.c.bf16 %v901_v18, %v900_v17  ;;  %v4828_v17 = vld [vmem:[%s6092_s1 + $0x110] sm:$0xff]   ;;  %v544_v18 = vld [vmem:[%s4942_s25 + $0xc1] sm:$0xff] }
  0x30   : > { %4340 = vmatprep.mubr.bf16.mxu0 %v4990_v28  ;;  %4356 = vmatprep.mubr.bf16.mxu1 %v4992_v29 }
  0x32   : > { %4371 = vmatpush3.bf16.msra.mxu1 %v4803_v26  ;;  %4419 = vmatpush3.bf16.msra.mxu0 %v4804_v27  ;;  %v903_v26 = vld [vmem:[%s4942_s25 + $0x3a] sm:$0xff]  ;;  %v5102_v27 = vpack.c.bf16 %v531_v16, %v530_v15  ;;  %v912_v15 = vld [vmem:[%s4942_s25 + $0xaa] sm:$0xff]  ;;  %v913_v16 = vld [vmem:[%s4942_s25 + $0xb2] sm:$0xff] }
  0x33   : > { %4372 = vmatprep.subr.bf16.mxu1 %v4805_v34  ;;  %4420 = vmatprep.subr.bf16.mxu0 %v4806_v35  ;;  %v5108_v32 = vpack.c.bf16 %v903_v26, %v902_v25  ;;  %v4830_v25 = vld [vmem:[%s6092_s1 + $0x108] sm:$0xff]  }
  0x35   : > { %4341 = vmatmul.mubr.bf16.gmra.mxu0 %v5011_v39  ;;  %4357 = vmatmul.mubr.bf16.gmra.mxu1 %v5013_v40 }
  0x36   : > { %4373 = vmatpush3.bf16.msra.mxu1 %v4805_v34  ;;  %4421 = vmatpush3.bf16.msra.mxu0 %v4806_v35  ;;  %v534_v34 = vld [vmem:[%s4942_s25 + $0x49] sm:$0xff]  ;;  %v535_v35 = vld [vmem:[%s4942_s25 + $0x51] sm:$0xff] }
  0x37   : > { %4374 = vmatprep.subr.bf16.mxu1 %v4807_v42  ;;  %4422 = vmatprep.subr.bf16.mxu0 %v4808_v43  ;;  %v5134_v49 = vpack.c.bf16 %v535_v35, %v534_v34 }
  0x38   : > { %4344 = vmatprep.mubr.bf16.mxu0 %v5022_v44  ;;  %4360 = vmatprep.mubr.bf16.mxu1 %v5024_v45 }
  0x3a   : > { %4375 = vmatpush3.bf16.msra.mxu1 %v4807_v42  ;;  %4423 = vmatpush3.bf16.msra.mxu0 %v4808_v43  ;;  %v537_v42 = vld [vmem:[%s4942_s25 + $0x69] sm:$0xff] }
  0x3b   : > { %4376 = vmatprep.subr.bf16.mxu1 %v4809_v50  ;;  %4424 = vmatprep.subr.bf16.mxu0 %v4810_v51  ;;  %v906_v43 = vld [vmem:[%s4942_s25 + $0x62] sm:$0xff] }
  0x3c   : > { %v5140_v52 = vpack.c.bf16 %v907_v46, %v906_v43  ;;  %v917_v43 = vld [vmem:[%s4942_s25 + $0xe2] sm:$0xff]  ;;  %v548_v46 = vld [vmem:[%s4942_s25 + $0xf1] sm:$0xff] }
  0x3d   : > { %4345 = vmatmul.mubr.bf16.gmra.mxu0 %v5042_v54  ;;  %4361 = vmatmul.mubr.bf16.gmra.mxu1 %v5044_v55 }
  0x3e   : > { %4377 = vmatpush3.bf16.msra.mxu1 %v4809_v50  ;;  %4425 = vmatpush3.bf16.msra.mxu0 %v4810_v51  ;;  %v5136_v50 = vpack.c.bf16 %v905_v38, %v904_v36  ;;  %v5138_v51 = vpack.c.bf16 %v537_v42, %v536_v41  ;;  %v546_v36 = vld [vmem:[%s4942_s25 + $0xd9] sm:$0xff] }
  0x3f   : > { %4378 = vmatprep.subr.bf16.mxu1 %v4811_v58  ;;  %4426 = vmatprep.subr.bf16.mxu0 %v4812_v59  ;;  %v916_v38 = vld [vmem:[%s4942_s25 + $0xda] sm:$0xff] }
  0x40   : > { %4348 = vmatprep.mubr.bf16.mxu0 %v5054_v60  ;;  %4364 = vmatprep.mubr.bf16.mxu1 %v5056_v61  ;;  %v4831_v41 = vld [vmem:[%s6092_s1 + $0xc0] sm:$0xff]  }
  0x41   : > { %v4832_v42 = vld [vmem:[%s6092_s1 + $0x100] sm:$0xff]  }
  0x42   : > { %4379 = vmatpush3.bf16.msra.mxu1 %v4811_v58  ;;  %4427 = vmatpush3.bf16.msra.mxu0 %v4812_v59  ;;  %v908_v58 = vld [vmem:[%s4942_s25 + $0x7a] sm:$0xff]  ;;  %v909_v59 = vld [vmem:[%s4942_s25 + $0x82] sm:$0xff] }
  0x43   : > { %4380 = vmatprep.subr.bf16.mxu1 %v4813_v2  ;;  %4428 = vmatprep.subr.bf16.mxu0 %v4814_v3  ;;  %v5168_v8 = vpack.c.bf16 %v909_v59, %v908_v58  ;;  %v5232_v59 = vpack.c.bf16 %v917_v43, %v916_v38  ;;  %v927_v38 = vld [vmem:[%s4942_s25 + $0x15a] sm:$0xff] }
  0x45   : > { %4349 = vmatmul.mubr.bf16.gmra.mxu0 %v5073_v5  ;;  %4365 = vmatmul.mubr.bf16.gmra.mxu1 %v5075_v6 }
  0x46   : > { %4381 = vmatpush3.bf16.msra.mxu1 %v4813_v2  ;;  %4429 = vmatpush3.bf16.msra.mxu0 %v4814_v3  ;;  %v911_v2 = vld [vmem:[%s4942_s25 + $0x9a] sm:$0xff] }
  0x47   : > { %4382 = vmatprep.subr.bf16.mxu1 %v4815_v11  ;;  %4430 = vmatprep.subr.bf16.mxu0 %v4816_v12  ;;  %v4825_v3 = vld [vmem:[%s6092_s1 + $0xd8] sm:$0xff]  }
  0x48   : > { %4384 = vmatprep.mubr.bf16.mxu1 %v560_v13  ;;  %4432 = vmatprep.mubr.bf16.mxu0 %v930_v14  ;;  %v542_v13 = vld [vmem:[%s4942_s25 + $0xa9] sm:$0xff]  ;;  %v543_v14 = vld [vmem:[%s4942_s25 + $0xb1] sm:$0xff] }
  0x49   : > { %v5198_v26 = vpack.c.bf16 %v543_v14, %v542_v13  ;;  %v922_v13 = vld [vmem:[%s4942_s25 + $0x122] sm:$0xff]  ;;  %v923_v14 = vld [vmem:[%s4942_s25 + $0x12a] sm:$0xff] }
  0x4a   : > { %4383 = vmatpush3.bf16.msra.mxu1 %v4815_v11  ;;  %4431 = vmatpush3.bf16.msra.mxu0 %v4816_v12  ;;  %v5172_v11 = vpack.c.bf16 %v911_v2, %v910_v1  ;;  %v4827_v12 = vld [vmem:[%s6092_s1 + $0xd0] sm:$0xff]  }
  0x4b   : > { %4464 = vmatprep.subr.bf16.mxu1 %v4817_v19  ;;  %4512 = vmatprep.subr.bf16.mxu0 %v4818_v20  ;;  %v551_v1 = vld [vmem:[%s4942_s25 + $0x111] sm:$0xff] }
  0x4c   : > { %v920_v2 = vld [vmem:[%s4942_s25 + $0x10a] sm:$0xff] }
  0x4d   : > { %4385 = vmatmul.mubr.bf16.vlgmr.msra.gmra.mxu1 %v5102_v27  ;;  %4433 = vmatmul.mubr.bf16.vlgmr.msra.gmra.mxu0 %v5104_v30 }
  0x4e   : > { %4465 = vmatpush3.bf16.msra.mxu1 %v4817_v19  ;;  %4513 = vmatpush3.bf16.msra.mxu0 %v4818_v20  ;;  %v545_v19 = vld [vmem:[%s4942_s25 + $0xc9] sm:$0xff] }
  0x4f   : > { %4388 = vmatprep.mubr.bf16.mxu1 %v5106_v31  ;;  %4436 = vmatprep.mubr.bf16.mxu0 %v5108_v32  ;;  %v914_v20 = vld [vmem:[%s4942_s25 + $0xc2] sm:$0xff]  ;;  %v5202_v34 = vpack.c.bf16 %v545_v19, %v544_v18  ;;  %v5256_v18 = vpack.c.bf16 %v923_v14, %v922_v13  ;;  %v554_v19 = vld [vmem:[%s4942_s25 + $0x139] sm:$0xff] }
  0x50   : > { %4466 = vmatprep.subr.bf16.mxu1 %v4819_v33  ;;  %4514 = vmatprep.subr.bf16.mxu0 %v4820_v37  ;;  %v5204_v35 = vpack.c.bf16 %v915_v21, %v914_v20  ;;  %v555_v20 = vld [vmem:[%s4942_s25 + $0x141] sm:$0xff] }
  0x51   : > { %v924_v21 = vld [vmem:[%s4942_s25 + $0x13a] sm:$0xff]  ;;  %v3937_v13 = vld [vmem:[%s4942_s25 + $0x68] sm:$0xff] }
  0x52   : > { %4467 = vmatpush3.bf16.msra.mxu1 %v4819_v33  ;;  %4515 = vmatpush3.bf16.msra.mxu0 %v4820_v37  ;;  %v5200_v33 = vpack.c.bf16 %v913_v16, %v912_v15  ;;  %v547_v37 = vld [vmem:[%s4942_s25 + $0xe1] sm:$0xff]  ;;  %v5250_v15 = vpack.c.bf16 %v551_v1, %v550_v0  ;;  %v929_v0 = vld [vmem:[%s4942_s25 + $0x172] sm:$0xff] }
  0x53   : > { %4468 = vmatprep.subr.bf16.mxu1 %v4821_v47  ;;  %4516 = vmatprep.subr.bf16.mxu0 %v4822_v48  ;;  %v5230_v58 = vpack.c.bf16 %v547_v37, %v546_v36  ;;  %v557_v36 = vld [vmem:[%s4942_s25 + $0x159] sm:$0xff] }
  0x54   : > { %v926_v37 = vld [vmem:[%s4942_s25 + $0x152] sm:$0xff] }
  0x55   : > { %4389 = vmatmul.mubr.bf16.gmra.mxu1 %v5134_v49  ;;  %4437 = vmatmul.mubr.bf16.gmra.mxu0 %v5136_v50 }
  0x56   : > { %4392 = vmatprep.mubr.bf16.mxu1 %v5138_v51  ;;  %4440 = vmatprep.mubr.bf16.mxu0 %v5140_v52 }
  0x57   : > { %4469 = vmatpush3.bf16.msra.mxu1 %v4821_v47  ;;  %4517 = vmatpush3.bf16.msra.mxu0 %v4822_v48  ;;  %v549_v47 = vld [vmem:[%s4942_s25 + $0xf9] sm:$0xff] }
  0x58   : > { %4470 = vmatprep.subr.bf16.mxu1 %v4823_v53  ;;  %4518 = vmatprep.subr.bf16.mxu0 %v4824_v62  ;;  %v918_v48 = vld [vmem:[%s4942_s25 + $0xf2] sm:$0xff] }
  0x5b   : > { %4471 = vmatpush3.bf16.msra.mxu1 %v4823_v53  ;;  %4519 = vmatpush3.bf16.msra.mxu0 %v4824_v62  ;;  %v919_v53 = vld [vmem:[%s4942_s25 + $0xfa] sm:$0xff]  ;;  %v5234_v62 = vpack.c.bf16 %v549_v47, %v548_v46  ;;  %v5276_v46 = vpack.c.bf16 %v927_v38, %v926_v37  ;;  %v558_v47 = vld [vmem:[%s4942_s25 + $0x169] sm:$0xff] }
  0x5c   : > { %4472 = vmatprep.subr.bf16.mxu1 %v4825_v3  ;;  %4520 = vmatprep.subr.bf16.mxu0 %v4826_v4  ;;  %v5236_v63 = vpack.c.bf16 %v919_v53, %v918_v48  ;;  %v559_v48 = vld [vmem:[%s4942_s25 + $0x171] sm:$0xff]  ;;  %v3945_v37 = vld [vmem:[%s4942_s25 + $0xc8] sm:$0xff] }
  0x5d   : > { %4393 = vmatmul.mubr.bf16.gmra.mxu1 %v5166_v7  ;;  %4441 = vmatmul.mubr.bf16.gmra.mxu0 %v5168_v8  ;;  %v928_v53 = vld [vmem:[%s4942_s25 + $0x16a] sm:$0xff]  ;;  %v5286_v1 = vpack.c.bf16 %v559_v48, %v558_v47  ;;  %v4857_v38 = vld [vmem:[%s6092_s1 + $0x1d8] sm:$0xff]   ;;  %v3947_v47 = vld [vmem:[%s4942_s25 + $0xe0] sm:$0xff] }
  0x5e   : > { %4396 = vmatprep.mubr.bf16.mxu1 %v5170_v10  ;;  %4444 = vmatprep.mubr.bf16.mxu0 %v5172_v11  ;;  %v3948_v48 = vld [vmem:[%s4942_s25 + $0xf0] sm:$0xff] }
  0x5f   : > { %4473 = vmatpush3.bf16.msra.mxu1 %v4825_v3  ;;  %4521 = vmatpush3.bf16.msra.mxu0 %v4826_v4  ;;  %v921_v3 = vld [vmem:[%s4942_s25 + $0x112] sm:$0xff]  ;;  %v552_v4 = vld [vmem:[%s4942_s25 + $0x121] sm:$0xff] }
  0x60   : > { %4474 = vmatprep.subr.bf16.mxu1 %v4827_v12  ;;  %4522 = vmatprep.subr.bf16.mxu0 %v4828_v17  ;;  %v5252_v16 = vpack.c.bf16 %v921_v3, %v920_v2  ;;  %v5288_v2 = vpack.c.bf16 %v929_v0, %v928_v53  ;;  %v4835_v3 = vld [vmem:[%s6092_s1 + $0x170] sm:$0xff]   ;;  %v3949_v53 = vld [vmem:[%s4942_s25 + $0xf8] sm:$0xff]  ;;  %v4861_v0 = vld [vmem:[%s6092_s1 + $0x1c8] sm:$0xff]  }
  0x63   : > { %4475 = vmatpush3.bf16.msra.mxu1 %v4827_v12  ;;  %4523 = vmatpush3.bf16.msra.mxu0 %v4828_v17  ;;  %v553_v12 = vld [vmem:[%s4942_s25 + $0x129] sm:$0xff] }
  0x64   : > { %4476 = vmatprep.subr.bf16.mxu1 %v4829_v24  ;;  %4524 = vmatprep.subr.bf16.mxu0 %v4830_v25  ;;  %v5254_v17 = vpack.c.bf16 %v553_v12, %v552_v4  ;;  %v4836_v4 = vld [vmem:[%s6092_s1 + $0x1b0] sm:$0xff]   ;;  %v3936_v12 = vld [vmem:[%s4942_s25 + $0x60] sm:$0xff] }
  0x65   : > { %4397 = vmatmul.mubr.bf16.gmra.mxu1 %v5198_v26  ;;  %4445 = vmatmul.mubr.bf16.gmra.mxu0 %v5200_v33 }
  0x66   : > { %4400 = vmatprep.mubr.bf16.mxu1 %v5202_v34  ;;  %4448 = vmatprep.mubr.bf16.mxu0 %v5204_v35 }
  0x67   : > { %4477 = vmatpush3.bf16.msra.mxu1 %v4829_v24  ;;  %4525 = vmatpush3.bf16.msra.mxu0 %v4830_v25  ;;  %v925_v24 = vld [vmem:[%s4942_s25 + $0x142] sm:$0xff]  ;;  %v556_v25 = vld [vmem:[%s4942_s25 + $0x151] sm:$0xff] }
  0x68   : > { %4478 = vmatprep.subr.bf16.mxu1 %v4831_v41  ;;  %4526 = vmatprep.subr.bf16.mxu0 %v4832_v42  ;;  %v5274_v43 = vpack.c.bf16 %v557_v36, %v556_v25  ;;  %v4856_v25 = vld [vmem:[%s6092_s1 + $0x220] sm:$0xff]  }
  0x69   : > { %v3944_v36 = vld [vmem:[%s4942_s25 + $0xc0] sm:$0xff] }
  0x6b   : > { %4479 = vmatpush3.bf16.msra.mxu1 %v4831_v41  ;;  %4527 = vmatpush3.bf16.msra.mxu0 %v4832_v42  ;;  %v5270_v41 = vpack.c.bf16 %v555_v20, %v554_v19  ;;  %v5272_v42 = vpack.c.bf16 %v925_v24, %v924_v21  ;;  %v4852_v19 = vld [vmem:[%s6092_s1 + $0x230] sm:$0xff]   ;;  %v3939_v20 = vld [vmem:[%s4942_s25 + $0x80] sm:$0xff]  ;;  %v4853_v21 = vld [vmem:[%s6092_s1 + $0x1e8] sm:$0xff]  }
  0x6c   : > { %4560 = vmatprep.subr.bf16.mxu1 %v4833_v56  ;;  %4608 = vmatprep.subr.bf16.mxu0 %v4834_v57  ;;  %v4854_v24 = vld [vmem:[%s6092_s1 + $0x228] sm:$0xff]  }
  0x6d   : > { %4401 = vmatmul.mubr.bf16.gmra.mxu1 %v5230_v58  ;;  %4449 = vmatmul.mubr.bf16.gmra.mxu0 %v5232_v59 }
  0x6e   : > { %4404 = vmatprep.mubr.bf16.mxu1 %v5234_v62  ;;  %4452 = vmatprep.mubr.bf16.mxu0 %v5236_v63 }
  0x75   : > { %4405 = vmatmul.mubr.bf16.gmra.mxu1 %v5250_v15  ;;  %4453 = vmatmul.mubr.bf16.gmra.mxu0 %v5252_v16 }
  0x76   : > { %4408 = vmatprep.mubr.bf16.mxu1 %v5254_v17  ;;  %4456 = vmatprep.mubr.bf16.mxu0 %v5256_v18 }
  0x7d   : > { %4409 = vmatmul.mubr.bf16.gmra.mxu1 %v5270_v41  ;;  %4457 = vmatmul.mubr.bf16.gmra.mxu0 %v5272_v42 }
  0x7e   : > { %4412 = vmatprep.mubr.bf16.mxu1 %v5274_v43  ;;  %4460 = vmatprep.mubr.bf16.mxu0 %v5276_v46 }
  0x85   : > { %4413 = vmatmul.mubr.bf16.gmra.mxu1 %v5286_v1  ;;  %4461 = vmatmul.mubr.bf16.gmra.mxu0 %v5288_v2 }
  0x86   : > { %4480 = vmatprep.mubr.bf16.mxu1 %v4978_v22  ;;  %4528 = vmatprep.mubr.bf16.mxu0 %v5102_v27  ;;  %v4837_v22 = vld [vmem:[%s6092_s1 + $0x168] sm:$0xff]  }
  0x87   : > { %v4838_v27 = vld [vmem:[%s6092_s1 + $0x1a8] sm:$0xff]  }
  0x8d   : > { %4481 = vmatmul.mubr.bf16.vlgmr.msra.gmra.mxu1 %v4990_v28  ;;  %4529 = vmatmul.mubr.bf16.vlgmr.msra.gmra.mxu0 %v5106_v31  ;;  %v4839_v28 = vld [vmem:[%s6092_s1 + $0x160] sm:$0xff]   ;;  %v4841_v31 = vld [vmem:[%s6092_s1 + $0x158] sm:$0xff]  }
  0x8e   : > { %4561 = vmatpush3.bf16.msra.mxu1 %v4833_v56  ;;  %4609 = vmatpush3.bf16.msra.mxu0 %v4834_v57  ;;  %v4849_v56 = vld [vmem:[%s6092_s1 + $0x1f8] sm:$0xff]  }
  0x8f   : > { %4484 = vmatprep.mubr.bf16.mxu1 %v5011_v39  ;;  %4532 = vmatprep.mubr.bf16.mxu0 %v5134_v49  ;;  %v4840_v39 = vld [vmem:[%s6092_s1 + $0x1a0] sm:$0xff]   ;;  %v4842_v49 = vld [vmem:[%s6092_s1 + $0x198] sm:$0xff]  }
  0x90   : > { %4562 = vmatprep.subr.bf16.mxu1 %v4835_v3  ;;  %4610 = vmatprep.subr.bf16.mxu0 %v4836_v4  ;;  %v4850_v57 = vld [vmem:[%s6092_s1 + $0x238] sm:$0xff]  }
  0x92   : > { %4563 = vmatpush3.bf16.msra.mxu1 %v4835_v3  ;;  %4611 = vmatpush3.bf16.msra.mxu0 %v4836_v4  ;;  %v4864_v3 = vld [vmem:[%s6092_s1 + $0x200] sm:$0xff]   ;;  %v3950_v4 = vld [vmem:[%s4942_s25 + $0x108] sm:$0xff] }
  0x93   : > { %4564 = vmatprep.subr.bf16.mxu1 %v4837_v22  ;;  %4612 = vmatprep.subr.bf16.mxu0 %v4838_v27 }
  0x95   : > { %4485 = vmatmul.mubr.bf16.gmra.mxu1 %v5022_v44  ;;  %4533 = vmatmul.mubr.bf16.gmra.mxu0 %v5138_v51  ;;  %v4843_v44 = vld [vmem:[%s6092_s1 + $0x150] sm:$0xff]   ;;  %v4845_v51 = vld [vmem:[%s6092_s1 + $0x148] sm:$0xff]  }
  0x96   : > { %4488 = vmatprep.mubr.bf16.mxu1 %v5042_v54  ;;  %4536 = vmatprep.mubr.bf16.mxu0 %v5166_v7  ;;  %v4844_v54 = vld [vmem:[%s6092_s1 + $0x190] sm:$0xff]   ;;  %v4846_v7 = vld [vmem:[%s6092_s1 + $0x188] sm:$0xff]  }
  0x97   : > { %4565 = vmatpush3.bf16.msra.mxu1 %v4837_v22  ;;  %4613 = vmatpush3.bf16.msra.mxu0 %v4838_v27  ;;  %v3951_v22 = vld [vmem:[%s4942_s25 + $0x110] sm:$0xff]  ;;  %v3952_v27 = vld [vmem:[%s4942_s25 + $0x120] sm:$0xff] }
  0x98   : > { %4566 = vmatprep.subr.bf16.mxu1 %v4839_v28  ;;  %4614 = vmatprep.subr.bf16.mxu0 %v4840_v39 }
  0x9b   : > { %4567 = vmatpush3.bf16.msra.mxu1 %v4839_v28  ;;  %4615 = vmatpush3.bf16.msra.mxu0 %v4840_v39  ;;  %v3953_v28 = vld [vmem:[%s4942_s25 + $0x128] sm:$0xff]  ;;  %v2421_v39 = vpack.c.bf16 %v3951_v22, %v3950_v4 }
  0x9c   : > { %4568 = vmatprep.subr.bf16.mxu1 %v4841_v31  ;;  %4616 = vmatprep.subr.bf16.mxu0 %v4842_v49 }
  0x9d   : > { %4489 = vmatmul.mubr.bf16.gmra.mxu1 %v5054_v60  ;;  %4537 = vmatmul.mubr.bf16.gmra.mxu0 %v5170_v10  ;;  %v4847_v10 = vld [vmem:[%s6092_s1 + $0x140] sm:$0xff]  }
  0x9e   : > { %4492 = vmatprep.mubr.bf16.mxu1 %v5073_v5  ;;  %4540 = vmatprep.mubr.bf16.mxu0 %v5198_v26  ;;  %v4848_v26 = vld [vmem:[%s6092_s1 + $0x180] sm:$0xff]  }
  0x9f   : > { %4569 = vmatpush3.bf16.msra.mxu1 %v4841_v31  ;;  %4617 = vmatpush3.bf16.msra.mxu0 %v4842_v49  ;;  %v2422_v31 = vpack.c.bf16 %v3953_v28, %v3952_v27  ;;  %v3954_v49 = vld [vmem:[%s4942_s25 + $0x138] sm:$0xff] }
  0xa0   : > { %4570 = vmatprep.subr.bf16.mxu1 %v4843_v44  ;;  %4618 = vmatprep.subr.bf16.mxu0 %v4844_v54 }
  0xa3   : > { %4571 = vmatpush3.bf16.msra.mxu1 %v4843_v44  ;;  %4619 = vmatpush3.bf16.msra.mxu0 %v4844_v54  ;;  %v3955_v44 = vld [vmem:[%s4942_s25 + $0x140] sm:$0xff] }
  0xa4   : > { %4572 = vmatprep.subr.bf16.mxu1 %v4845_v51  ;;  %4620 = vmatprep.subr.bf16.mxu0 %v4846_v7 }
  0xa5   : > { %4493 = vmatmul.mubr.bf16.gmra.mxu1 %v4951_v9  ;;  %4541 = vmatmul.mubr.bf16.gmra.mxu0 %v5202_v34  ;;  %v3794_v9 = vld [vmem:[%s4942_s25 + $0x180] sm:$0xff] }
  0xa6   : > { %4496 = vmatprep.mubr.bf16.mxu1 %v4980_v23  ;;  %4544 = vmatprep.mubr.bf16.mxu0 %v5230_v58  ;;  %v3795_v23 = vld [vmem:[%s4942_s25 + $0x188] sm:$0xff] }
  0xa7   : > { %4573 = vmatpush3.bf16.msra.mxu1 %v4845_v51  ;;  %4621 = vmatpush3.bf16.msra.mxu0 %v4846_v7  ;;  %v5376_v34 = vpack.c.bf16 %v3795_v23, %v3794_v9  ;;  %v3956_v7 = vld [vmem:[%s4942_s25 + $0x150] sm:$0xff] }
  0xa8   : > { %4574 = vmatprep.subr.bf16.mxu1 %v4847_v10  ;;  %4622 = vmatprep.subr.bf16.mxu0 %v4848_v26 }
  0xab   : > { %4575 = vmatpush3.bf16.msra.mxu1 %v4847_v10  ;;  %4623 = vmatpush3.bf16.msra.mxu0 %v4848_v26  ;;  %v3957_v10 = vld [vmem:[%s4942_s25 + $0x158] sm:$0xff] }
  0xac   : > { %4656 = vmatprep.subr.bf16.mxu1 %v4849_v56  ;;  %4704 = vmatprep.subr.bf16.mxu0 %v4850_v57 }
  0xad   : > { %4497 = vmatmul.mubr.bf16.gmra.mxu1 %v4992_v29  ;;  %4545 = vmatmul.mubr.bf16.gmra.mxu0 %v5234_v62  ;;  %v3850_v29 = vld [vmem:[%s4942_s25 + $0x181] sm:$0xff]  ;;  %v3935_v62 = vld [vmem:[%s4942_s25 + $0x50] sm:$0xff] }
  0xae   : > { %4500 = vmatprep.mubr.bf16.mxu1 %v5013_v40  ;;  %4548 = vmatprep.mubr.bf16.mxu0 %v5250_v15  ;;  %v3851_v40 = vld [vmem:[%s4942_s25 + $0x189] sm:$0xff]  ;;  %v2414_v15 = vpack.c.bf16 %v3937_v13, %v3936_v12 }
  0xaf   : > { %v5378_v58 = vpack.c.bf16 %v3851_v40, %v3850_v29  ;;  %v3958_v40 = vld [vmem:[%s4942_s25 + $0x168] sm:$0xff] }
  0xb5   : > { %4501 = vmatmul.mubr.bf16.gmra.mxu1 %v5024_v45  ;;  %4549 = vmatmul.mubr.bf16.gmra.mxu0 %v5254_v17  ;;  %v3932_v45 = vld [vmem:[%s4942_s25 + $0x30] sm:$0xff] }
  0xb6   : > { %4504 = vmatprep.mubr.bf16.mxu1 %v5044_v55  ;;  %4552 = vmatprep.mubr.bf16.mxu0 %v5270_v41  ;;  %v3933_v55 = vld [vmem:[%s4942_s25 + $0x38] sm:$0xff]  ;;  %v4851_v17 = vld [vmem:[%s6092_s1 + $0x1f0] sm:$0xff]  }
  0xb7   : > { %v4860_v41 = vld [vmem:[%s6092_s1 + $0x210] sm:$0xff]  }
  0xbd   : > { %4505 = vmatmul.mubr.bf16.gmra.mxu1 %v5056_v61  ;;  %4553 = vmatmul.mubr.bf16.gmra.mxu0 %v5274_v43  ;;  %v2412_v61 = vpack.c.bf16 %v3933_v55, %v3932_v45  ;;  %v3946_v43 = vld [vmem:[%s4942_s25 + $0xd8] sm:$0xff]  ;;  %v3959_v45 = vld [vmem:[%s4942_s25 + $0x170] sm:$0xff] }
  0xbe   : > { %4508 = vmatprep.mubr.bf16.mxu1 %v5075_v6  ;;  %4556 = vmatprep.mubr.bf16.mxu0 %v5286_v1  ;;  %v3934_v6 = vld [vmem:[%s4942_s25 + $0x48] sm:$0xff]  ;;  %v4863_v1 = vld [vmem:[%s6092_s1 + $0x1c0] sm:$0xff]  }
  0xbf   : > { %v2413_v14 = vpack.c.bf16 %v3935_v62, %v3934_v6 }
  0xc5   : > { %4509 = vmatmul.mubr.bf16.gmra.mxu1 %v5376_v34  ;;  %4557 = vmatmul.mubr.bf16.gmra.mxu0 %v5378_v58 }
  0xc6   : > { %4576 = vmatprep.mubr.bf16.mxu1 %v5104_v30  ;;  %4624 = vmatprep.mubr.bf16.mxu0 %v2412_v61  ;;  %v3938_v30 = vld [vmem:[%s4942_s25 + $0x78] sm:$0xff] }
  0xcd   : > { %4577 = vmatmul.mubr.bf16.vlgmr.msra.gmra.mxu1 %v5108_v32  ;;  %4625 = vmatmul.mubr.bf16.vlgmr.msra.gmra.mxu0 %v2413_v14  ;;  %v2415_v32 = vpack.c.bf16 %v3939_v20, %v3938_v30  ;;  %v3963_v30 = vld [vmem:[%s4942_s25 + $0x1a0] sm:$0xff]  ;;  %v3988_v20 = vld [vmem:[%s4942_s25 + $0x31] sm:$0xff] }
  0xce   : > { %4657 = vmatpush3.bf16.msra.mxu1 %v4849_v56  ;;  %4705 = vmatpush3.bf16.msra.mxu0 %v4850_v57  ;;  %v2423_v57 = vpack.c.bf16 %v3955_v44, %v3954_v49 }
  0xcf   : > { %4580 = vmatprep.mubr.bf16.mxu1 %v5136_v50  ;;  %4628 = vmatprep.mubr.bf16.mxu0 %v2414_v15  ;;  %v4855_v50 = vld [vmem:[%s6092_s1 + $0x1e0] sm:$0xff]  }
  0xd0   : > { %4658 = vmatprep.subr.bf16.mxu1 %v4851_v17  ;;  %4706 = vmatprep.subr.bf16.mxu0 %v4852_v19  ;;  %v3906_v15 = vld [vmem:[%s4942_s25 + $0x182] sm:$0xff] }
  0xd2   : > { %4659 = vmatpush3.bf16.msra.mxu1 %v4851_v17  ;;  %4707 = vmatpush3.bf16.msra.mxu0 %v4852_v19  ;;  %v3907_v17 = vld [vmem:[%s4942_s25 + $0x18a] sm:$0xff]  ;;  %v3962_v19 = vld [vmem:[%s4942_s25 + $0x198] sm:$0xff] }
  0xd3   : > { %4660 = vmatprep.subr.bf16.mxu1 %v4853_v21  ;;  %4708 = vmatprep.subr.bf16.mxu0 %v4854_v24 }
  0xd5   : > { %4581 = vmatmul.mubr.bf16.gmra.mxu1 %v5140_v52  ;;  %4629 = vmatmul.mubr.bf16.gmra.mxu0 %v2415_v32  ;;  %v4858_v52 = vld [vmem:[%s6092_s1 + $0x218] sm:$0xff]  }
  0xd6   : > { %4584 = vmatprep.mubr.bf16.mxu1 %v5168_v8  ;;  %4632 = vmatprep.mubr.bf16.mxu0 %v5054_v60  ;;  %v2418_v8 = vpack.c.bf16 %v3945_v37, %v3944_v36  ;;  %v4859_v60 = vld [vmem:[%s6092_s1 + $0x1d0] sm:$0xff]   ;;  %v3989_v32 = vld [vmem:[%s4942_s25 + $0x39] sm:$0xff] }
  0xd7   : > { %4661 = vmatpush3.bf16.msra.mxu1 %v4853_v21  ;;  %4709 = vmatpush3.bf16.msra.mxu0 %v4854_v24  ;;  %v2782_v37 = vpack.c.bf16 %v3989_v32, %v3988_v20  ;;  %v4052_v20 = vld [vmem:[%s4942_s25 + $0x92] sm:$0xff]  ;;  %v4053_v32 = vld [vmem:[%s4942_s25 + $0x9a] sm:$0xff] }
  0xd8   : > { %4662 = vmatprep.subr.bf16.mxu1 %v4855_v50  ;;  %4710 = vmatprep.subr.bf16.mxu0 %v4856_v25 }
  0xdb   : > { %4663 = vmatpush3.bf16.msra.mxu1 %v4855_v50  ;;  %4711 = vmatpush3.bf16.msra.mxu0 %v4856_v25  ;;  %v4044_v50 = vld [vmem:[%s4942_s25 + $0x32] sm:$0xff]  ;;  %v4045_v25 = vld [vmem:[%s4942_s25 + $0x3a] sm:$0xff] }
  0xdc   : > { %4664 = vmatprep.subr.bf16.mxu1 %v4857_v38  ;;  %4712 = vmatprep.subr.bf16.mxu0 %v4858_v52 }
  0xdd   : > { %4585 = vmatmul.mubr.bf16.gmra.mxu1 %v5172_v11  ;;  %4633 = vmatmul.mubr.bf16.gmra.mxu0 %v5073_v5  ;;  %v4862_v5 = vld [vmem:[%s6092_s1 + $0x208] sm:$0xff]   ;;  %v2419_v11 = vpack.c.bf16 %v3947_v47, %v3946_v43  ;;  %v3991_v47 = vld [vmem:[%s4942_s25 + $0x51] sm:$0xff] }
  0xde   : > { %4588 = vmatprep.mubr.bf16.mxu1 %v5200_v33  ;;  %4636 = vmatprep.mubr.bf16.mxu0 %v2418_v8  ;;  %v2420_v33 = vpack.c.bf16 %v3949_v53, %v3948_v48  ;;  %v3990_v43 = vld [vmem:[%s4942_s25 + $0x49] sm:$0xff]  ;;  %v4047_v53 = vld [vmem:[%s4942_s25 + $0x52] sm:$0xff] }
  0xdf   : > { %4665 = vmatpush3.bf16.msra.mxu1 %v4857_v38  ;;  %4713 = vmatpush3.bf16.msra.mxu0 %v4858_v52  ;;  %v3152_v38 = vpack.c.bf16 %v4045_v25, %v4044_v50  ;;  %v4046_v48 = vld [vmem:[%s4942_s25 + $0x4a] sm:$0xff]  ;;  %v2783_v27 = vpack.c.bf16 %v3991_v47, %v3990_v43 }
  0xe0   : > { %4666 = vmatprep.subr.bf16.mxu1 %v4859_v60  ;;  %4714 = vmatprep.subr.bf16.mxu0 %v4860_v41  ;;  %v3153_v28 = vpack.c.bf16 %v4047_v53, %v4046_v48  ;;  %v3156_v53 = vpack.c.bf16 %v4053_v32, %v4052_v20 }
  0xe3   : > { %4667 = vmatpush3.bf16.msra.mxu1 %v4859_v60  ;;  %4715 = vmatpush3.bf16.msra.mxu0 %v4860_v41 }
  0xe4   : > { %4668 = vmatprep.subr.bf16.mxu1 %v4861_v0  ;;  %4716 = vmatprep.subr.bf16.mxu0 %v4862_v5 }
  0xe5   : > { %4589 = vmatmul.mubr.bf16.gmra.mxu1 %v5204_v35  ;;  %4637 = vmatmul.mubr.bf16.gmra.mxu0 %v2419_v11 }
  0xe6   : > { %4592 = vmatprep.mubr.bf16.mxu1 %v5232_v59  ;;  %4640 = vmatprep.mubr.bf16.mxu0 %v2420_v33  ;;  %v3993_v33 = vld [vmem:[%s4942_s25 + $0x69] sm:$0xff] }
  0xe7   : > { %4669 = vmatpush3.bf16.msra.mxu1 %v4861_v0  ;;  %4717 = vmatpush3.bf16.msra.mxu0 %v4862_v5  ;;  %v3992_v0 = vld [vmem:[%s4942_s25 + $0x61] sm:$0xff] }
  0xe8   : > { %4670 = vmatprep.subr.bf16.mxu1 %v4863_v1  ;;  %4718 = vmatprep.subr.bf16.mxu0 %v4864_v3 }
  0xeb   : > { %4671 = vmatpush3.bf16.msra.mxu1 %v4863_v1  ;;  %4719 = vmatpush3.bf16.msra.mxu0 %v4864_v3  ;;  %v4048_v1 = vld [vmem:[%s4942_s25 + $0x62] sm:$0xff]  ;;  %v4049_v3 = vld [vmem:[%s4942_s25 + $0x6a] sm:$0xff] }
  0xed   : > { %v5451_v35 = vpop.f32.mrf.mxu0  ;;  %v5453_v59 = vpop.f32.mrf.mxu1  ;;  %4593 = vmatmul.mubr.bf16.gmra.mxu1 %v5236_v63  ;;  %4641 = vmatmul.mubr.bf16.gmra.mxu0 %v2421_v39  ;;  %v2424_v63 = vpack.c.bf16 %v3957_v10, %v3956_v7  ;;  %v2784_v39 = vpack.c.bf16 %v3993_v33, %v3992_v0 }
  0xee   : > { %4596 = vmatprep.mubr.bf16.mxu1 %v5252_v16  ;;  %4644 = vmatprep.mubr.bf16.mxu0 %v2422_v31  ;;  %v3154_v31 = vpack.c.bf16 %v4049_v3, %v4048_v1 }
  0xef   : > { %v5459_v54 = vpop.f32.mrf.mxu0  ;;  %v5461_v51 = vpop.f32.mrf.mxu1 }
  0xf1   : > { %v5465_v26 = vpop.f32.mrf.mxu0  ;;  %v5467_v56 = vpop.f32.mrf.mxu1 }
  0xf3   : > { %v5469_v9 = vpop.f32.mrf.mxu0  ;;  %v5471_v16 = vpop.f32.mrf.mxu1 }
  0xf5   : > { %v5473_v23 = vpop.f32.mrf.mxu0  ;;  %v5475_v29 = vpop.f32.mrf.mxu1  ;;  %4597 = vmatmul.mubr.bf16.gmra.mxu1 %v5256_v18  ;;  %4645 = vmatmul.mubr.bf16.gmra.mxu0 %v2423_v57  ;;  %v2425_v18 = vpack.c.bf16 %v3959_v45, %v3958_v40  ;;  %v3994_v57 = vld [vmem:[%s4942_s25 + $0x79] sm:$0xff] }
  0xf6   : > { %4600 = vmatprep.mubr.bf16.mxu1 %v5272_v42  ;;  %4648 = vmatprep.mubr.bf16.mxu0 %v2424_v63  ;;  %v3995_v63 = vld [vmem:[%s4942_s25 + $0x81] sm:$0xff] }
  0xf7   : > { %v5481_v55 = vpop.f32.mrf.mxu0  ;;  %v5483_v61 = vpop.f32.mrf.mxu1  ;;  %v4050_v45 = vld [vmem:[%s4942_s25 + $0x7a] sm:$0xff] }
  0xf9   : > { %v5485_v6 = vpop.f32.mrf.mxu0  ;;  %v5487_v62 = vpop.f32.mrf.mxu1 }
  0xfb   : > { %v5489_v12 = vpop.f32.mrf.mxu0  ;;  %v5491_v42 = vpop.f32.mrf.mxu1 }
  0xfd   : > { %v5493_v13 = vpop.f32.mrf.mxu0  ;;  %v5495_v14 = vpop.f32.mrf.mxu1  ;;  %4601 = vmatmul.mubr.bf16.gmra.mxu1 %v5276_v46  ;;  %4649 = vmatmul.mubr.bf16.gmra.mxu0 %v2425_v18  ;;  %v4051_v18 = vld [vmem:[%s4942_s25 + $0x82] sm:$0xff] }
  0xfe   : > { %4604 = vmatprep.mubr.bf16.mxu1 %v5288_v2  ;;  %4652 = vmatprep.mubr.bf16.mxu0 %v5376_v34  ;;  %v5516_v2 = vpack.c.bf16 %v3907_v17, %v3906_v15  ;;  %v2427_v34 = vpack.c.bf16 %v3963_v30, %v3962_v19  ;;  %v3996_v15 = vld [vmem:[%s4942_s25 + $0x91] sm:$0xff]  ;;  %v3997_v30 = vld [vmem:[%s4942_s25 + $0x99] sm:$0xff] }
  0xff   : > { %v5505_v21 = vpop.f32.mrf.mxu0  ;;  %v5507_v24 = vpop.f32.mrf.mxu1  ;;  %v2786_v48 = vpack.c.bf16 %v3997_v30, %v3996_v15 }
 0x101   : > { %v5512_v46 = vpop.f32.mrf.mxu0  ;;  %v5514_v36 = vpop.f32.mrf.mxu1 }
 0x103   : > { %v5518_v52 = vpop.f32.mrf.mxu0  ;;  %v5520_v8 = vpop.f32.mrf.mxu1 }
 0x105   : > { %v5522_v60 = vpop.f32.mrf.mxu0  ;;  %v5524_v41 = vpop.f32.mrf.mxu1  ;;  %4605 = vmatmul.mubr.bf16.gmra.mxu1 %v5516_v2  ;;  %4653 = vmatmul.mubr.bf16.gmra.mxu0 %v2427_v34 }
 0x106   : > { %4672 = vmatprep.mubr.bf16.mxu1 %v2782_v37  ;;  %4720 = vmatprep.mubr.bf16.mxu0 %v3152_v38  ;;  %v2785_v38 = vpack.c.bf16 %v3995_v63, %v3994_v57  ;;  %v4000_v57 = vld [vmem:[%s4942_s25 + $0xc1] sm:$0xff] }
 0x107   : > { %v5532_v5 = vpop.f32.mrf.mxu0  ;;  %v5534_v11 = vpop.f32.mrf.mxu1 }
 0x109   : > { %v5539_v4 = vpop.f32.mrf.mxu0  ;;  %v5541_v22 = vpop.f32.mrf.mxu1 }
 0x10b   : > { %v5543_v49 = vpop.f32.mrf.mxu0  ;;  %v5545_v44 = vpop.f32.mrf.mxu1 }
 0x10d   : > { %v4386_v7 = vpop.f32.mrf.mxu1  ;;  %v4434_v10 = vpop.f32.mrf.mxu0  ;;  %4673 = vmatmul.mubr.bf16.vlgmr.msra.gmra.mxu1 %v2783_v27  ;;  %4721 = vmatmul.mubr.bf16.vlgmr.msra.gmra.mxu0 %v3153_v28  ;;  %v3998_v28 = vld [vmem:[%s4942_s25 + $0xa9] sm:$0xff] }
 0x10e   : > { %v836_v40 = vadd.f32 %v4386_v7, %v5451_v35  ;;  %4676 = vmatprep.mubr.bf16.mxu1 %v2784_v39  ;;  %4724 = vmatprep.mubr.bf16.mxu0 %v3154_v31  ;;  %v3155_v35 = vpack.c.bf16 %v4051_v18, %v4050_v45  ;;  %v4054_v7 = vld [vmem:[%s4942_s25 + $0xaa] sm:$0xff]  ;;  %v4056_v45 = vld [vmem:[%s4942_s25 + $0xc2] sm:$0xff] }
 0x10f   : > { %v675_v17 = vpop.f32.mrf.mxu1  ;;  %v1045_v19 = vpop.f32.mrf.mxu0  ;;  %v4057_v18 = vld [vmem:[%s4942_s25 + $0xca] sm:$0xff] }
 0x110   : > { %v5556_v50 = vadd.f32 %v4434_v10, %v836_v40  ;;  %v834_v25 = vadd.f32 %v675_v17, %v5459_v54  ;;  %v4055_v10 = vld [vmem:[%s4942_s25 + $0xb2] sm:$0xff]  ;;  %v4001_v40 = vld [vmem:[%s4942_s25 + $0xc9] sm:$0xff] }
 0x111   : > { %v4387_v34 = vpop.f32.mrf.mxu1  ;;  %v4435_v37 = vpop.f32.mrf.mxu0 }
 0x112   : > { %v5559_v43 = vadd.f32 %v1045_v19, %v834_v25  ;;  %v837_v47 = vadd.f32 %v4387_v34, %v5465_v26  ;;  %v3999_v26 = vld [vmem:[%s4942_s25 + $0xb1] sm:$0xff]  ;;  %v2788_v34 = vpack.c.bf16 %v4001_v40, %v4000_v57 }
 0x113   : > { %v678_v0 = vpop.f32.mrf.mxu1  ;;  %v1048_v33 = vpop.f32.mrf.mxu0  ;;  %v2787_v20 = vpack.c.bf16 %v3999_v26, %v3998_v28  ;;  %v4004_v28 = vld [vmem:[%s4942_s25 + $0xf1] sm:$0xff] }
 0x114   : > { %v5562_v1 = vadd.f32 %v4435_v37, %v837_v47  ;;  %v835_v54 = vadd.f32 %v678_v0, %v5469_v9  ;;  %v3158_v37 = vpack.c.bf16 %v4057_v18, %v4056_v45  ;;  %v4002_v0 = vld [vmem:[%s4942_s25 + $0xd9] sm:$0xff] }
 0x115   : > { %v4390_v3 = vpop.f32.mrf.mxu1  ;;  %v4438_v27 = vpop.f32.mrf.mxu0  ;;  %4677 = vmatmul.mubr.bf16.gmra.mxu1 %v2785_v38  ;;  %4725 = vmatmul.mubr.bf16.gmra.mxu0 %v3155_v35 }
 0x116   : > { %v5567_v39 = vadd.f32 %v1048_v33, %v835_v54  ;;  %v840_v31 = vadd.f32 %v4390_v3, %v5473_v23  ;;  %4680 = vmatprep.mubr.bf16.mxu1 %v2786_v48  ;;  %4728 = vmatprep.mubr.bf16.mxu0 %v3156_v53  ;;  %v3157_v23 = vpack.c.bf16 %v4055_v10, %v4054_v7  ;;  %v4058_v3 = vld [vmem:[%s4942_s25 + $0xda] sm:$0xff]  ;;  %v4060_v7 = vld [vmem:[%s4942_s25 + $0xf2] sm:$0xff] }
 0x117   : > { %v691_v63 = vpop.f32.mrf.mxu1  ;;  %v1061_v9 = vpop.f32.mrf.mxu0  ;;  %v4061_v10 = vld [vmem:[%s4942_s25 + $0xfa] sm:$0xff] }
 0x118   : > { %v5576_v15 = vadd.f32 %v4438_v27, %v840_v31  ;;  %v838_v17 = vadd.f32 %v691_v63, %v5481_v55  ;;  %v4059_v27 = vld [vmem:[%s4942_s25 + $0xe2] sm:$0xff]  ;;  %v4005_v31 = vld [vmem:[%s4942_s25 + $0xf9] sm:$0xff] }
 0x119   : > { %v4391_v19 = vpop.f32.mrf.mxu1  ;;  %v4439_v30 = vpop.f32.mrf.mxu0 }
 0x11a   : > { %v5579_v32 = vadd.f32 %v1061_v9, %v838_v17  ;;  %v841_v25 = vadd.f32 %v4391_v19, %v5485_v6  ;;  %v4003_v6 = vld [vmem:[%s4942_s25 + $0xe1] sm:$0xff]  ;;  %v2790_v19 = vpack.c.bf16 %v4005_v31, %v4004_v28 }
 0x11b   : > { %v694_v38 = vpop.f32.mrf.mxu1  ;;  %v1064_v35 = vpop.f32.mrf.mxu0  ;;  %v2789_v45 = vpack.c.bf16 %v4003_v6, %v4002_v0  ;;  %v4008_v0 = vld [vmem:[%s4942_s25 + $0x121] sm:$0xff] }
 0x11c   : > { %v5582_v47 = vadd.f32 %v4439_v30, %v841_v25  ;;  %v839_v55 = vadd.f32 %v694_v38, %v5489_v12  ;;  %v3160_v30 = vpack.c.bf16 %v4061_v10, %v4060_v7  ;;  %v4006_v38 = vld [vmem:[%s4942_s25 + $0x109] sm:$0xff] }
 0x11d   : > { %v4394_v48 = vpop.f32.mrf.mxu1  ;;  %v4442_v53 = vpop.f32.mrf.mxu0  ;;  %4681 = vmatmul.mubr.bf16.gmra.mxu1 %v2787_v20  ;;  %4729 = vmatmul.mubr.bf16.gmra.mxu0 %v3157_v23 }
 0x11e   : > { %v5587_v33 = vadd.f32 %v1064_v35, %v839_v55  ;;  %v844_v54 = vadd.f32 %v4394_v48, %v5493_v13  ;;  %4684 = vmatprep.mubr.bf16.mxu1 %v2788_v34  ;;  %4732 = vmatprep.mubr.bf16.mxu0 %v3158_v37  ;;  %v3159_v13 = vpack.c.bf16 %v4059_v27, %v4058_v3  ;;  %v4062_v48 = vld [vmem:[%s4942_s25 + $0x10a] sm:$0xff]  ;;  %v4064_v3 = vld [vmem:[%s4942_s25 + $0x122] sm:$0xff] }
 0x11f   : > { %v707_v26 = vpop.f32.mrf.mxu1  ;;  %v1077_v12 = vpop.f32.mrf.mxu0  ;;  %v4065_v27 = vld [vmem:[%s4942_s25 + $0x12a] sm:$0xff] }
 0x120   : > { %v5596_v57 = vadd.f32 %v4442_v53, %v844_v54  ;;  %v842_v63 = vadd.f32 %v707_v26, %v5505_v21  ;;  %v4063_v53 = vld [vmem:[%s4942_s25 + $0x112] sm:$0xff]  ;;  %v4009_v54 = vld [vmem:[%s4942_s25 + $0x129] sm:$0xff] }
 0x121   : > { %v4395_v9 = vpop.f32.mrf.mxu1  ;;  %v4443_v40 = vpop.f32.mrf.mxu0 }
 0x122   : > { %v5599_v18 = vadd.f32 %v1077_v12, %v842_v63  ;;  %v845_v17 = vadd.f32 %v4395_v9, %v5512_v46  ;;  %v4007_v46 = vld [vmem:[%s4942_s25 + $0x111] sm:$0xff]  ;;  %v2792_v9 = vpack.c.bf16 %v4009_v54, %v4008_v0 }
 0x123   : > { %v710_v20 = vpop.f32.mrf.mxu1  ;;  %v1080_v23 = vpop.f32.mrf.mxu0  ;;  %v2791_v7 = vpack.c.bf16 %v4007_v46, %v4006_v38  ;;  %v4012_v38 = vld [vmem:[%s4942_s25 + $0x151] sm:$0xff] }
 0x124   : > { %v5602_v25 = vadd.f32 %v4443_v40, %v845_v17  ;;  %v843_v21 = vadd.f32 %v710_v20, %v5518_v52  ;;  %v3162_v40 = vpack.c.bf16 %v4065_v27, %v4064_v3  ;;  %v4010_v20 = vld [vmem:[%s4942_s25 + $0x139] sm:$0xff] }
 0x125   : > { %v4398_v34 = vpop.f32.mrf.mxu1  ;;  %v4446_v37 = vpop.f32.mrf.mxu0  ;;  %4685 = vmatmul.mubr.bf16.gmra.mxu1 %v2789_v45  ;;  %4733 = vmatmul.mubr.bf16.gmra.mxu0 %v3159_v13 }
 0x126   : > { %v5607_v35 = vadd.f32 %v1080_v23, %v843_v21  ;;  %v848_v55 = vadd.f32 %v4398_v34, %v5522_v60  ;;  %4688 = vmatprep.mubr.bf16.mxu1 %v2790_v19  ;;  %4736 = vmatprep.mubr.bf16.mxu0 %v3160_v30  ;;  %v3161_v60 = vpack.c.bf16 %v4063_v53, %v4062_v48  ;;  %v4066_v34 = vld [vmem:[%s4942_s25 + $0x13a] sm:$0xff]  ;;  %v4068_v48 = vld [vmem:[%s4942_s25 + $0x152] sm:$0xff] }
 0x127   : > { %v723_v6 = vpop.f32.mrf.mxu1  ;;  %v1093_v52 = vpop.f32.mrf.mxu0  ;;  %v4069_v53 = vld [vmem:[%s4942_s25 + $0x15a] sm:$0xff] }
 0x128   : > { %v5616_v28 = vadd.f32 %v4446_v37, %v848_v55  ;;  %v846_v26 = vadd.f32 %v723_v6, %v5532_v5  ;;  %v4067_v37 = vld [vmem:[%s4942_s25 + $0x142] sm:$0xff]  ;;  %v4013_v55 = vld [vmem:[%s4942_s25 + $0x159] sm:$0xff] }
 0x129   : > { %v4399_v12 = vpop.f32.mrf.mxu1  ;;  %v4447_v31 = vpop.f32.mrf.mxu0  ;;  %v3163_v27 = vpack.c.bf16 %v4067_v37, %v4066_v34 }
 0x12a   : > { %v5619_v10 = vadd.f32 %v1093_v52, %v846_v26  ;;  %v849_v63 = vadd.f32 %v4399_v12, %v5539_v4  ;;  %v4011_v4 = vld [vmem:[%s4942_s25 + $0x141] sm:$0xff]  ;;  %v2794_v12 = vpack.c.bf16 %v4013_v55, %v4012_v38 }
 0x12b   : > { %v726_v45 = vpop.f32.mrf.mxu1  ;;  %v1096_v13 = vpop.f32.mrf.mxu0  ;;  %v2793_v3 = vpack.c.bf16 %v4011_v4, %v4010_v20 }
 0x12c   : > { %v5622_v17 = vadd.f32 %v4447_v31, %v849_v63  ;;  %v847_v5 = vadd.f32 %v726_v45, %v5543_v49  ;;  %v3164_v31 = vpack.c.bf16 %v4069_v53, %v4068_v48  ;;  %v4014_v45 = vld [vmem:[%s4942_s25 + $0x169] sm:$0xff] }
 0x12d   : > { %v4402_v19 = vpop.f32.mrf.mxu1  ;;  %v4450_v30 = vpop.f32.mrf.mxu0  ;;  %4689 = vmatmul.mubr.bf16.gmra.mxu1 %v2791_v7  ;;  %4737 = vmatmul.mubr.bf16.gmra.mxu0 %v3161_v60 }
 0x12e   : > { %v5627_v23 = vadd.f32 %v1096_v13, %v847_v5  ;;  %v852_v21 = vadd.f32 %v4402_v19, %v5453_v59  ;;  %4692 = vmatprep.mubr.bf16.mxu1 %v2792_v9  ;;  %4740 = vmatprep.mubr.bf16.mxu0 %v3162_v40  ;;  %v4015_v5 = vld [vmem:[%s4942_s25 + $0x171] sm:$0xff] }
 0x12f   : > { %v739_v46 = vpop.f32.mrf.mxu1  ;;  %v1109_v49 = vpop.f32.mrf.mxu0  ;;  %v4070_v19 = vld [vmem:[%s4942_s25 + $0x16a] sm:$0xff]  ;;  %v2795_v38 = vpack.c.bf16 %v4015_v5, %v4014_v45 }
 0x130   : > { %v5636_v0 = vadd.f32 %v4450_v30, %v852_v21  ;;  %v850_v6 = vadd.f32 %v739_v46, %v5461_v51  ;;  %v4071_v30 = vld [vmem:[%s4942_s25 + $0x172] sm:$0xff] }
 0x131   : > { %v4403_v52 = vpop.f32.mrf.mxu1  ;;  %v4451_v54 = vpop.f32.mrf.mxu0  ;;  %v3165_v46 = vpack.c.bf16 %v4071_v30, %v4070_v19 }
 0x132   : > { %v5639_v59 = vadd.f32 %v1109_v49, %v850_v6  ;;  %v853_v26 = vadd.f32 %v4403_v52, %v5467_v56 }
 0x133   : > { %v742_v7 = vpop.f32.mrf.mxu1  ;;  %v1112_v60 = vpop.f32.mrf.mxu0 }
 0x134   : > { %v5642_v63 = vadd.f32 %v4451_v54, %v853_v26  ;;  %v851_v51 = vadd.f32 %v742_v7, %v5471_v16  ;;  %v4074_v26 = vld [vmem:[%s4942_s25 + $0x19a] sm:$0xff] }
 0x135   : > { %v4406_v9 = vpop.f32.mrf.mxu1  ;;  %v4454_v40 = vpop.f32.mrf.mxu0  ;;  %4693 = vmatmul.mubr.bf16.gmra.mxu1 %v2793_v3  ;;  %4741 = vmatmul.mubr.bf16.gmra.mxu0 %v3163_v27 }
 0x136   : > { %v5646_v13 = vadd.f32 %v1112_v60, %v851_v51  ;;  %v856_v56 = vadd.f32 %v4406_v9, %v5475_v29  ;;  %4696 = vmatprep.mubr.bf16.mxu1 %v2794_v12  ;;  %4744 = vmatprep.mubr.bf16.mxu0 %v3164_v31  ;;  %v4075_v12 = vld [vmem:[%s4942_s25 + $0x1a2] sm:$0xff] }
 0x137   : > { %v755_v20 = vpop.f32.mrf.mxu1  ;;  %v1125_v4 = vpop.f32.mrf.mxu0  ;;  %v3167_v45 = vpack.c.bf16 %v4075_v12, %v4074_v26 }
 0x138   : > { %v5652_v21 = vadd.f32 %v4454_v40, %v856_v56  ;;  %v854_v16 = vadd.f32 %v755_v20, %v5483_v61  ;;  %v4018_v61 = vld [vmem:[%s4942_s25 + $0x199] sm:$0xff] }
 0x139   : > { %v4407_v34 = vpop.f32.mrf.mxu1  ;;  %v4455_v37 = vpop.f32.mrf.mxu0 }
 0x13a   : > { %v5655_v49 = vadd.f32 %v1125_v4, %v854_v16  ;;  %v857_v29 = vadd.f32 %v4407_v34, %v5487_v62  ;;  %v4019_v62 = vld [vmem:[%s4942_s25 + $0x1a1] sm:$0xff]  ;;  %s4103_s25 = sshll.u32 %s6180_s12, 8 }
 0x13b   : > { %v758_v55 = vpop.f32.mrf.mxu1  ;;  %v1128_v48 = vpop.f32.mrf.mxu0  ;;  %v2797_v40 = vpack.c.bf16 %v4019_v62, %v4018_v61  ;;  %s5935_s12 = scalar_lea.vmem %s6094_s3, %s4103_s25 }
 0x13c   : > { %v5658_v53 = vadd.f32 %v4455_v37, %v857_v29  ;;  %v855_v6 = vadd.f32 %v758_v55, %v5491_v42 }
 0x13d   : > { %v4410_v52 = vpop.f32.mrf.mxu1  ;;  %v4458_v54 = vpop.f32.mrf.mxu0  ;;  %4697 = vmatmul.mubr.bf16.gmra.mxu1 %v2795_v38  ;;  %4745 = vmatmul.mubr.bf16.gmra.mxu0 %v3165_v46 }
 0x13e   : > { %v5662_v3 = vadd.f32 %v1128_v48, %v855_v6  ;;  %v860_v27 = vadd.f32 %v4410_v52, %v5495_v14  ;;  %4700 = vmatprep.mubr.bf16.mxu1 %v5378_v58  ;;  %4748 = vmatprep.mubr.bf16.mxu0 %v5516_v2 }
 0x13f   : > { %v771_v31 = vpop.f32.mrf.mxu1  ;;  %v1141_v7 = vpop.f32.mrf.mxu0 }
 0x140   : > { %v5670_v60 = vadd.f32 %v4458_v54, %v860_v27  ;;  %v858_v42 = vadd.f32 %v771_v31, %v5507_v24 }
 0x141   : > { %v4411_v51 = vpop.f32.mrf.mxu1  ;;  %v4459_v9 = vpop.f32.mrf.mxu0 }
 0x142   : > { %v5673_v56 = vadd.f32 %v1141_v7, %v858_v42  ;;  %v861_v14 = vadd.f32 %v4411_v51, %v5514_v36 }
 0x143   : > { %v774_v58 = vpop.f32.mrf.mxu1  ;;  %v1144_v5 = vpop.f32.mrf.mxu0 }
 0x144   : > { %v5676_v2 = vadd.f32 %v4459_v9, %v861_v14  ;;  %v859_v19 = vadd.f32 %v774_v58, %v5520_v8 }
 0x145   : > { %v4414_v30 = vpop.f32.mrf.mxu1  ;;  %v4462_v20 = vpop.f32.mrf.mxu0  ;;  %4701 = vmatmul.mubr.bf16.gmra.mxu1 %v2797_v40  ;;  %4749 = vmatmul.mubr.bf16.gmra.mxu0 %v3167_v45 }
 0x146   : > { %v5679_v4 = vadd.f32 %v1144_v5, %v859_v19  ;;  %v864_v24 = vadd.f32 %v4414_v30, %v5524_v41 }
 0x147   : > { %v787_v16 = vpop.f32.mrf.mxu1  ;;  %v1157_v34 = vpop.f32.mrf.mxu0 }
 0x148   : > { %v5682_v37 = vadd.f32 %v4462_v20, %v864_v24  ;;  %v862_v36 = vadd.f32 %v787_v16, %v5534_v11 }
 0x149   : > { %v4415_v38 = vpop.f32.mrf.mxu1  ;;  %v4463_v46 = vpop.f32.mrf.mxu0 }
 0x14a   : > { %v5685_v29 = vadd.f32 %v1157_v34, %v862_v36  ;;  %v865_v8 = vadd.f32 %v4415_v38, %v5541_v22 }
 0x14b   : > { %v790_v55 = vpop.f32.mrf.mxu1  ;;  %v1160_v48 = vpop.f32.mrf.mxu0 }
 0x14c   : > { %v5688_v6 = vadd.f32 %v4463_v46, %v865_v8  ;;  %v863_v52 = vadd.f32 %v790_v55, %v5545_v44 }
 0x14d   : > { %v4482_v54 = vpop.f32.mrf.mxu1  ;;  %v4530_v41 = vpop.f32.mrf.mxu0 }
 0x14e   : > { %v5691_v61 = vadd.f32 %v1160_v48, %v863_v52  ;;  %v1577_v27 = vadd.f32 %v4482_v54, %v5556_v50 }
 0x14f   : > { %v1416_v62 = vpop.f32.mrf.mxu1  ;;  %v1786_v11 = vpop.f32.mrf.mxu0 }
 0x150   : > { %v5694_v26 = vadd.f32 %v4530_v41, %v1577_v27  ;;  %v1575_v12 = vadd.f32 %v1416_v62, %v5559_v43 }
 0x151   : > { %v4483_v31 = vpop.f32.mrf.mxu1  ;;  %v4531_v22 = vpop.f32.mrf.mxu0 }
 0x152   : > { %v5697_v7 = vadd.f32 %v1786_v11, %v1575_v12  ;;  %v1578_v42 = vadd.f32 %v4483_v31, %v5562_v1 }
 0x153   : > { %v1419_v51 = vpop.f32.mrf.mxu1  ;;  %v1789_v44 = vpop.f32.mrf.mxu0 }
 0x154   : > { %v5700_v9 = vadd.f32 %v4531_v22, %v1578_v42  ;;  %v1576_v40 = vadd.f32 %v1419_v51, %v5567_v39 }
 0x155   : > { %v4486_v45 = vpop.f32.mrf.mxu1  ;;  %v4534_v50 = vpop.f32.mrf.mxu0 }
 0x156   : > { %v5703_v14 = vadd.f32 %v1789_v44, %v1576_v40  ;;  %v1581_v58 = vadd.f32 %v4486_v45, %v5576_v15 }
 0x157   : > { %v1432_v5 = vpop.f32.mrf.mxu1  ;;  %v1802_v43 = vpop.f32.mrf.mxu0 }
 0x158   : > { %v5706_v19 = vadd.f32 %v4534_v50, %v1581_v58  ;;  %v1579_v30 = vadd.f32 %v1432_v5, %v5579_v32 }
 0x159   : > { %v4487_v20 = vpop.f32.mrf.mxu1  ;;  %v4535_v1 = vpop.f32.mrf.mxu0 }
 0x15a   : > { %v5709_v24 = vadd.f32 %v1802_v43, %v1579_v30  ;;  %v1582_v16 = vadd.f32 %v4487_v20, %v5582_v47 }
 0x15b   : > { %v1435_v34 = vpop.f32.mrf.mxu1  ;;  %v1805_v39 = vpop.f32.mrf.mxu0 }
 0x15c   : > { %v5712_v36 = vadd.f32 %v4535_v1, %v1582_v16  ;;  %v1580_v38 = vadd.f32 %v1435_v34, %v5587_v33 }
 0x15d   : > { %v4490_v46 = vpop.f32.mrf.mxu1  ;;  %v4538_v15 = vpop.f32.mrf.mxu0 }
 0x15e   : > { %v5715_v8 = vadd.f32 %v1805_v39, %v1580_v38  ;;  %v1585_v55 = vadd.f32 %v4490_v46, %v5596_v57 }
 0x15f   : > { %v1448_v48 = vpop.f32.mrf.mxu1  ;;  %v1818_v32 = vpop.f32.mrf.mxu0 }
 0x160   : > { %v5718_v52 = vadd.f32 %v4538_v15, %v1585_v55  ;;  %v1583_v54 = vadd.f32 %v1448_v48, %v5599_v18 }
 0x161   : > { %v4491_v41 = vpop.f32.mrf.mxu1  ;;  %v4539_v47 = vpop.f32.mrf.mxu0 }
 0x162   : > { %v5721_v27 = vadd.f32 %v1818_v32, %v1583_v54  ;;  %v1586_v62 = vadd.f32 %v4491_v41, %v5602_v25 }
 0x163   : > { %v1451_v11 = vpop.f32.mrf.mxu1  ;;  %v1821_v33 = vpop.f32.mrf.mxu0 }
 0x164   : > { %v5724_v12 = vadd.f32 %v4539_v47, %v1586_v62  ;;  %v1584_v31 = vadd.f32 %v1451_v11, %v5607_v35 }
 0x165   : > { %v4494_v22 = vpop.f32.mrf.mxu1  ;;  %v4542_v57 = vpop.f32.mrf.mxu0 }
 0x166   : > { %v5727_v42 = vadd.f32 %v1821_v33, %v1584_v31  ;;  %v1589_v51 = vadd.f32 %v4494_v22, %v5616_v28 }
 0x167   : > { %v1464_v44 = vpop.f32.mrf.mxu1  ;;  %v1834_v18 = vpop.f32.mrf.mxu0 }
 0x168   : > { %v5730_v40 = vadd.f32 %v4542_v57, %v1589_v51  ;;  %v1587_v45 = vadd.f32 %v1464_v44, %v5619_v10 }
 0x169   : > { %v4495_v50 = vpop.f32.mrf.mxu1  ;;  %v4543_v25 = vpop.f32.mrf.mxu0 }
 0x16a   : > { %v5733_v58 = vadd.f32 %v1834_v18, %v1587_v45  ;;  %v1590_v5 = vadd.f32 %v4495_v50, %v5622_v17 }
 0x16b   : > { %v1467_v43 = vpop.f32.mrf.mxu1  ;;  %v1837_v35 = vpop.f32.mrf.mxu0 }
 0x16c   : > { %v5736_v30 = vadd.f32 %v4543_v25, %v1590_v5  ;;  %v1588_v20 = vadd.f32 %v1467_v43, %v5627_v23 }
 0x16d   : > { %v4498_v1 = vpop.f32.mrf.mxu1  ;;  %v4546_v28 = vpop.f32.mrf.mxu0 }
 0x16e   : > { %v5739_v16 = vadd.f32 %v1837_v35, %v1588_v20  ;;  %v1593_v34 = vadd.f32 %v4498_v1, %v5636_v0 }
 0x16f   : > { %v1480_v39 = vpop.f32.mrf.mxu1  ;;  %v1850_v10 = vpop.f32.mrf.mxu0 }
 0x170   : > { %v5742_v38 = vadd.f32 %v4546_v28, %v1593_v34  ;;  %v1591_v46 = vadd.f32 %v1480_v39, %v5639_v59 }
 0x171   : > { %v4499_v15 = vpop.f32.mrf.mxu1  ;;  %v4547_v17 = vpop.f32.mrf.mxu0 }
 0x172   : > { %v5745_v55 = vadd.f32 %v1850_v10, %v1591_v46  ;;  %v1594_v48 = vadd.f32 %v4499_v15, %v5642_v63 }
 0x173   : > { %v1483_v32 = vpop.f32.mrf.mxu1  ;;  %v1853_v23 = vpop.f32.mrf.mxu0 }
 0x174   : > { %v5748_v54 = vadd.f32 %v4547_v17, %v1594_v48  ;;  %v1592_v41 = vadd.f32 %v1483_v32, %v5646_v13 }
 0x175   : > { %v4502_v47 = vpop.f32.mrf.mxu1  ;;  %v4550_v0 = vpop.f32.mrf.mxu0 }
 0x176   : > { %6095 = vst [vmem:[#allocation3_spill] sm:$0xff] %v5748_v54  ;;  %v5751_v62 = vadd.f32 %v1853_v23, %v1592_v41  ;;  %v1597_v11 = vadd.f32 %v4502_v47, %v5652_v21 }
 0x177   : > { %v1496_v33 = vpop.f32.mrf.mxu1  ;;  %v1866_v59 = vpop.f32.mrf.mxu0 }
 0x178   : > { %6096 = vst [vmem:[#allocation4_spill] sm:$0xff] %v5751_v62  ;;  %v5754_v31 = vadd.f32 %v4550_v0, %v1597_v11  ;;  %v1595_v22 = vadd.f32 %v1496_v33, %v5655_v49 }
 0x179   : > { %v4503_v57 = vpop.f32.mrf.mxu1  ;;  %v4551_v63 = vpop.f32.mrf.mxu0 }
 0x17a   : > { %6097 = vst [vmem:[#allocation5_spill] sm:$0xff] %v5754_v31  ;;  %v5757_v51 = vadd.f32 %v1866_v59, %v1595_v22  ;;  %v1598_v44 = vadd.f32 %v4503_v57, %v5658_v53 }
 0x17b   : > { %v1499_v18 = vpop.f32.mrf.mxu1  ;;  %v1869_v13 = vpop.f32.mrf.mxu0 }
 0x17c   : > { %6098 = vst [vmem:[#allocation6_spill] sm:$0xff] %v5757_v51  ;;  %v5760_v45 = vadd.f32 %v4551_v63, %v1598_v44  ;;  %v1596_v50 = vadd.f32 %v1499_v18, %v5662_v3 }
 0x17d   : > { %v4506_v25 = vpop.f32.mrf.mxu1  ;;  %v4554_v21 = vpop.f32.mrf.mxu0 }
 0x17e   : > { %6099 = vst [vmem:[#allocation7_spill] sm:$0xff] %v5760_v45  ;;  %v5763_v5 = vadd.f32 %v1869_v13, %v1596_v50  ;;  %v1601_v43 = vadd.f32 %v4506_v25, %v5670_v60 }
 0x17f   : > { %v1512_v35 = vpop.f32.mrf.mxu1  ;;  %v1882_v49 = vpop.f32.mrf.mxu0 }
 0x180   : > { %6100 = vst [vmem:[#allocation8_spill] sm:$0xff] %v5763_v5  ;;  %v5766_v20 = vadd.f32 %v4554_v21, %v1601_v43  ;;  %v1599_v1 = vadd.f32 %v1512_v35, %v5673_v56 }
 0x181   : > { %v4507_v28 = vpop.f32.mrf.mxu1  ;;  %v4555_v53 = vpop.f32.mrf.mxu0 }
 0x182   : > { %6101 = vst [vmem:[#allocation9_spill] sm:$0xff] %v5766_v20  ;;  %v5769_v34 = vadd.f32 %v1882_v49, %v1599_v1  ;;  %v1602_v39 = vadd.f32 %v4507_v28, %v5676_v2 }
 0x183   : > { %v1515_v10 = vpop.f32.mrf.mxu1  ;;  %v1885_v3 = vpop.f32.mrf.mxu0 }
 0x184   : > { %6102 = vst [vmem:[#allocation10_spill] sm:$0xff] %v5769_v34  ;;  %v5772_v46 = vadd.f32 %v4555_v53, %v1602_v39  ;;  %v1600_v15 = vadd.f32 %v1515_v10, %v5679_v4 }
 0x185   : > { %v4510_v17 = vpop.f32.mrf.mxu1  ;;  %v4558_v60 = vpop.f32.mrf.mxu0 }
 0x186   : > { %6103 = vst [vmem:[#allocation11_spill] sm:$0xff] %v5772_v46  ;;  %v5775_v48 = vadd.f32 %v1885_v3, %v1600_v15  ;;  %v1605_v32 = vadd.f32 %v4510_v17, %v5682_v37 }
 0x187   : > { %v1528_v23 = vpop.f32.mrf.mxu1  ;;  %v1898_v56 = vpop.f32.mrf.mxu0 }
 0x188   : > { %6104 = vst [vmem:[#allocation12_spill] sm:$0xff] %v5775_v48  ;;  %v5778_v41 = vadd.f32 %v4558_v60, %v1605_v32  ;;  %v1603_v47 = vadd.f32 %v1528_v23, %v5685_v29 }
 0x189   : > { %v4511_v0 = vpop.f32.mrf.mxu1  ;;  %v4559_v2 = vpop.f32.mrf.mxu0 }
 0x18a   : > { %6105 = vst [vmem:[#allocation13_spill] sm:$0xff] %v5778_v41  ;;  %v5781_v11 = vadd.f32 %v1898_v56, %v1603_v47  ;;  %v1606_v33 = vadd.f32 %v4511_v0, %v5688_v6 }
 0x18b   : > { %v1531_v59 = vpop.f32.mrf.mxu1  ;;  %v1901_v4 = vpop.f32.mrf.mxu0 }
 0x18c   : > { %6106 = vst [vmem:[#allocation14_spill] sm:$0xff] %v5781_v11  ;;  %v5784_v22 = vadd.f32 %v4559_v2, %v1606_v33  ;;  %v1604_v57 = vadd.f32 %v1531_v59, %v5691_v61 }
 0x18d   : > { %v4578_v63 = vpop.f32.mrf.mxu1  ;;  %v5787_v37 = vpop.f32.mrf.mxu0 }
 0x18e   : > { %6107 = vst [vmem:[#allocation15_spill] sm:$0xff] %v5784_v22  ;;  %v5789_v44 = vadd.f32 %v1901_v4, %v1604_v57 }
 0x18f   : > { %v2156_v18 = vpop.f32.mrf.mxu1  ;;  %v5791_v13 = vpop.f32.mrf.mxu0 }
 0x190   : > { %6108 = vst [vmem:[#allocation16_spill] sm:$0xff] %v5789_v44 }
 0x191   : > { %v5793_v29 = vpop.f32.mrf.mxu1  ;;  %v5795_v50 = vpop.f32.mrf.mxu0 }
 0x193   : > { %v5797_v25 = vpop.f32.mrf.mxu1  ;;  %v5799_v6 = vpop.f32.mrf.mxu0 }
 0x195   : > { %v5801_v21 = vpop.f32.mrf.mxu1  ;;  %v5803_v43 = vpop.f32.mrf.mxu0 }
 0x197   : > { %v5805_v61 = vpop.f32.mrf.mxu1  ;;  %v5807_v35 = vpop.f32.mrf.mxu0 }
 0x199   : > { %v5809_v49 = vpop.f32.mrf.mxu1  ;;  %v5811_v1 = vpop.f32.mrf.mxu0 }
 0x19b   : > { %v5813_v28 = vpop.f32.mrf.mxu1  ;;  %v5815_v53 = vpop.f32.mrf.mxu0 }
 0x19d   : > { %v5817_v39 = vpop.f32.mrf.mxu1  ;;  %v5819_v10 = vpop.f32.mrf.mxu0 }
 0x19f   : > { %v5821_v3 = vpop.f32.mrf.mxu1  ;;  %v5823_v15 = vpop.f32.mrf.mxu0 }
 0x1a1   : > { %v5825_v17 = vpop.f32.mrf.mxu1  ;;  %v5827_v60 = vpop.f32.mrf.mxu0 }
 0x1a3   : > { %v5829_v32 = vpop.f32.mrf.mxu1  ;;  %v5831_v23 = vpop.f32.mrf.mxu0 }
 0x1a5   : > { %v5833_v56 = vpop.f32.mrf.mxu1  ;;  %v5835_v47 = vpop.f32.mrf.mxu0 }
 0x1a7   : > { %v5837_v0 = vpop.f32.mrf.mxu1  ;;  %v5839_v2 = vpop.f32.mrf.mxu0 }
 0x1a9   : > { %v5841_v33 = vpop.f32.mrf.mxu1  ;;  %v5843_v59 = vpop.f32.mrf.mxu0 }
 0x1ab   : > { %v5845_v4 = vpop.f32.mrf.mxu1  ;;  %v5847_v57 = vpop.f32.mrf.mxu0 }
 0x1ad   : > { %v5849_v44 = vpop.f32.mrf.mxu1  ;;  %v5851_v22 = vpop.f32.mrf.mxu0 }
 0x1af   : > { %v5853_v11 = vpop.f32.mrf.mxu1  ;;  %v5855_v41 = vpop.f32.mrf.mxu0 }
 0x1b0   : > { %6109 = vst [vmem:[#allocation17_spill] sm:$0xff] %v5855_v41 }
 0x1b1   : > { %v5857_v48 = vpop.f32.mrf.mxu1  ;;  %v5859_v46 = vpop.f32.mrf.mxu0 }
 0x1b2   : > { %6110 = vst [vmem:[#allocation18_spill] sm:$0xff] %v5857_v48  ;;  %6111 = vst [vmem:[#allocation19_spill] sm:$0xff] %v5859_v46 }
 0x1b3   : > { %v5861_v34 = vpop.f32.mrf.mxu1  ;;  %v5863_v20 = vpop.f32.mrf.mxu0 }
 0x1b4   : > { %6112 = vst [vmem:[#allocation20_spill] sm:$0xff] %v5861_v34  ;;  %6113 = vst [vmem:[#allocation21_spill] sm:$0xff] %v5863_v20 }
 0x1b5   : > { %v5865_v5 = vpop.f32.mrf.mxu1  ;;  %v5867_v45 = vpop.f32.mrf.mxu0 }
 0x1b6   : > { %6114 = vst [vmem:[#allocation22_spill] sm:$0xff] %v5865_v5  ;;  %6115 = vst [vmem:[#allocation23_spill] sm:$0xff] %v5867_v45 }
 0x1b7   : > { %v5869_v51 = vpop.f32.mrf.mxu1  ;;  %v5871_v31 = vpop.f32.mrf.mxu0 }
 0x1b8   : > { %6116 = vst [vmem:[#allocation24_spill] sm:$0xff] %v5869_v51  ;;  %6117 = vst [vmem:[#allocation25_spill] sm:$0xff] %v5871_v31 }
 0x1b9   : > { %v5873_v62 = vpop.f32.mrf.mxu1  ;;  %v5875_v54 = vpop.f32.mrf.mxu0 }
 0x1ba   : > { %6118 = vst [vmem:[#allocation26_spill] sm:$0xff] %v5873_v62  ;;  %6119 = vst [vmem:[#allocation27_spill] sm:$0xff] %v5875_v54 }
 0x1bb   : > { %v5877_v41 = vpop.f32.mrf.mxu1  ;;  %v5879_v48 = vpop.f32.mrf.mxu0 }
 0x1bc   : > { %6120 = vst [vmem:[#allocation28_spill] sm:$0xff] %v5877_v41  ;;  %6121 = vst [vmem:[#allocation29_spill] sm:$0xff] %v5879_v48 }
 0x1bd   : > { %v5881_v46 = vpop.f32.mrf.mxu1  ;;  %v5883_v34 = vpop.f32.mrf.mxu0 }
 0x1be   : > { %6122 = vst [vmem:[#allocation30_spill] sm:$0xff] %v5881_v46  ;;  %6123 = vst [vmem:[#allocation31_spill] sm:$0xff] %v5883_v34 }
 0x1bf   : > { %v5885_v20 = vpop.f32.mrf.mxu1  ;;  %v5887_v5 = vpop.f32.mrf.mxu0 }
 0x1c0   : > { %6124 = vst [vmem:[#allocation32_spill] sm:$0xff] %v5885_v20  ;;  %6125 = vst [vmem:[#allocation33_spill] sm:$0xff] %v5887_v5  ;;  %v2317_v20 = vadd.f32 %v4578_v63, %v5694_v26  ;;  %v2316_v26 = vadd.f32 %v5797_v25, %v5703_v14 }
 0x1c1   : > { %v5889_v45 = vpop.f32.mrf.mxu1  ;;  %v5891_v51 = vpop.f32.mrf.mxu0 }
 0x1c2   : > { %6126 = vst [vmem:[#allocation34_spill] sm:$0xff] %v5889_v45  ;;  %6127 = vst [vmem:[#allocation35_spill] sm:$0xff] %v5891_v51  ;;  %v2315_v51 = vadd.f32 %v2156_v18, %v5697_v7  ;;  %v2321_v7 = vadd.f32 %v5801_v21, %v5706_v19  ;;  %v5927_v18 = vld [vmem:[%s6093_s2] ss:$0 sm:$0xff] }
 0x1c3   : > { %v5893_v31 = vpop.f32.mrf.mxu1  ;;  %v5895_v62 = vpop.f32.mrf.mxu0 }
 0x1c4   : > { %6128 = vst [vmem:[#allocation36_spill] sm:$0xff] %v5893_v31  ;;  %6129 = vst [vmem:[#allocation37_spill] sm:$0xff] %v5895_v62 }
 0x1c5   : > { %v5897_v54 = vpop.f32.mrf.mxu1  ;;  %v5899_v41 = vpop.f32.mrf.mxu0 }
 0x1c6   : > { %6130 = vst [vmem:[#allocation38_spill] sm:$0xff] %v5897_v54  ;;  %6131 = vst [vmem:[#allocation39_spill] sm:$0xff] %v5899_v41  ;;  %v2688_v54 = vadd.f32 %v5787_v37, %v2317_v20  ;;  %v2318_v41 = vadd.f32 %v5793_v29, %v5700_v9 }
 0x1c7   : > { %v5901_v48 = vpop.f32.mrf.mxu1  ;;  %v5903_v34 = vpop.f32.mrf.mxu0 }
 0x1c8   : > { %6132 = vst [vmem:[#allocation40_spill] sm:$0xff] %v5901_v48  ;;  %6133 = vst [vmem:[#allocation41_spill] sm:$0xff] %v5903_v34  ;;  %v2686_v34 = vadd.f32 %v5791_v13, %v2315_v51  ;;  %v2689_v9 = vadd.f32 %v5795_v50, %v2318_v41  ;;  %v2319_v51 = vadd.f32 %v5805_v61, %v5709_v24 }
 0x1c9   : > { %v5906_v5 = vpop.f32.mrf.mxu1  ;;  %v5908_v45 = vpop.f32.mrf.mxu0  ;;  %v2322_v24 = vadd.f32 %v5809_v49, %v5712_v36  ;;  %v2325_v36 = vadd.f32 %v5817_v39, %v5718_v52 }
 0x1cb   : > { %v5911_v31 = vpop.f32.mrf.mxu1  ;;  %v5913_v62 = vpop.f32.mrf.mxu0 }
 0x1cc   : > { %6134 = vst [vmem:[#allocation42_spill] sm:$0xff] %v5913_v62 }
 0x1cd   : > { %v4674_v48 = vpop.f32.mrf.mxu1  ;;  %v4722_v46 = vpop.f32.mrf.mxu0 }
 0x1ce   : > { %v3058_v63 = vadd.f32 %v4674_v48, %v2688_v54  ;;  %v2687_v54 = vadd.f32 %v5799_v6, %v2316_v26  ;;  %v2690_v6 = vadd.f32 %v5807_v35, %v2319_v51 }
 0x1cf   : > { %v2897_v20 = vpop.f32.mrf.mxu1  ;;  %v3267_v37 = vpop.f32.mrf.mxu0 }
 0x1d0   : > { %v3428_v29 = vadd.f32 %v4722_v46, %v3058_v63  ;;  %v3056_v62 = vadd.f32 %v2897_v20, %v2686_v34  ;;  %v2692_v34 = vadd.f32 %v5803_v43, %v2321_v7 }
 0x1d1   : > { %v4675_v14 = vpop.f32.mrf.mxu1  ;;  %v4723_v19 = vpop.f32.mrf.mxu0 }
 0x1d2   : > { %v3531_v48 = vadd.f32 %v5927_v18, %v3428_v29  ;;  %v3426_v13 = vadd.f32 %v3267_v37, %v3056_v62  ;;  %v3059_v41 = vadd.f32 %v4675_v14, %v2689_v9  ;;  %v2320_v62 = vadd.f32 %v5813_v28, %v5715_v8 }
 0x1d3   : > { %v2900_v46 = vpop.f32.mrf.mxu1  ;;  %v3270_v50 = vpop.f32.mrf.mxu0  ;;  %v2693_v9 = vadd.f32 %v5811_v1, %v2322_v24  ;;  %v2323_v8 = vadd.f32 %v5821_v3, %v5721_v27  ;;  %v2696_v1 = vadd.f32 %v5819_v10, %v2325_v36  ;;  %v2324_v24 = vadd.f32 %v5829_v32, %v5727_v42 }
 0x1d4   : > { %3563 = vst [vmem:[%s5935_s12 + $0x10] sm:$0xff] %v3531_v48  ;;  %v3529_v25 = vadd.f32 %v5927_v18, %v3426_v13  ;;  %v3429_v21 = vadd.f32 %v4723_v19, %v3059_v41  ;;  %v3057_v61 = vadd.f32 %v2900_v46, %v2687_v54  ;;  %v2691_v19 = vadd.f32 %v5815_v53, %v2320_v62 }
 0x1d5   : > { %v4678_v26 = vpop.f32.mrf.mxu1  ;;  %v4726_v63 = vpop.f32.mrf.mxu0  ;;  %v2326_v41 = vadd.f32 %v5825_v17, %v5724_v12  ;;  %v2694_v53 = vadd.f32 %v5823_v15, %v2323_v8  ;;  %v2329_v12 = vadd.f32 %v5833_v56, %v5730_v40  ;;  %v2327_v42 = vadd.f32 %v5837_v0, %v5733_v58 }
 0x1d6   : > { %3561 = vst [vmem:[%s5935_s12] sm:$0xff] %v3529_v25  ;;  %v3532_v43 = vadd.f32 %v5927_v18, %v3429_v21  ;;  %v3427_v7 = vadd.f32 %v3270_v50, %v3057_v61  ;;  %v3062_v20 = vadd.f32 %v4678_v26, %v2692_v34 }
 0x1d7   : > { %v2913_v49 = vpop.f32.mrf.mxu1  ;;  %v3283_v37 = vpop.f32.mrf.mxu0 }
 0x1d8   : > { %3564 = vst [vmem:[%s5935_s12 + $0x18] sm:$0xff] %v3532_v43  ;;  %v3530_v35 = vadd.f32 %v5927_v18, %v3427_v7  ;;  %v3432_v29 = vadd.f32 %v4726_v63, %v3062_v20  ;;  %v3060_v51 = vadd.f32 %v2913_v49, %v2690_v6  ;;  %v2697_v6 = vadd.f32 %v5827_v60, %v2326_v41  ;;  %v6135_v41 = vld [vmem:[#allocation3_spill] sm:$0xff] }
 0x1d9   : > { %v4679_v28 = vpop.f32.mrf.mxu1  ;;  %v4727_v14 = vpop.f32.mrf.mxu0  ;;  %v2695_v43 = vadd.f32 %v5831_v23, %v2324_v24  ;;  %v2700_v60 = vadd.f32 %v5835_v47, %v2329_v12  ;;  %v2330_v49 = vadd.f32 %v5841_v33, %v5736_v30  ;;  %v2698_v23 = vadd.f32 %v5839_v2, %v2327_v42  ;;  %v6138_v24 = vld [vmem:[#allocation4_spill] sm:$0xff] }
 0x1da   : > { %3562 = vst [vmem:[%s5935_s12 + $0x8] sm:$0xff] %v3530_v35  ;;  %v3535_v52 = vadd.f32 %v5927_v18, %v3432_v29  ;;  %v3430_v39 = vadd.f32 %v3283_v37, %v3060_v51  ;;  %v3063_v54 = vadd.f32 %v4679_v28, %v2693_v9  ;;  %v2328_v29 = vadd.f32 %v5845_v4, %v5739_v16 }
 0x1db   : > { %v2916_v48 = vpop.f32.mrf.mxu1  ;;  %v3286_v13 = vpop.f32.mrf.mxu0  ;;  %v2333_v30 = vadd.f32 %v5849_v44, %v5742_v38  ;;  %v2331_v16 = vadd.f32 %v5853_v11, %v5745_v55 }
 0x1dc   : > { %3567 = vst [vmem:[%s5935_s12 + $0x30] sm:$0xff] %v3535_v52  ;;  %v3533_v27 = vadd.f32 %v5927_v18, %v3430_v39  ;;  %v3433_v3 = vadd.f32 %v4727_v14, %v3063_v54  ;;  %v3061_v34 = vadd.f32 %v2916_v48, %v2691_v19  ;;  %v2701_v14 = vadd.f32 %v5843_v59, %v2330_v49 }
 0x1dd   : > { %v4682_v46 = vpop.f32.mrf.mxu1  ;;  %v4730_v50 = vpop.f32.mrf.mxu0  ;;  %v2699_v54 = vadd.f32 %v5847_v57, %v2328_v29  ;;  %v2704_v59 = vadd.f32 %v5851_v22, %v2333_v30  ;;  %v6137_v57 = vld [vmem:[#allocation17_spill] sm:$0xff] }
 0x1de   : > { %3565 = vst [vmem:[%s5935_s12 + $0x20] sm:$0xff] %v3533_v27  ;;  %v3536_v10 = vadd.f32 %v5927_v18, %v3433_v3  ;;  %v3431_v25 = vadd.f32 %v3286_v13, %v3061_v34  ;;  %v3066_v21 = vadd.f32 %v4682_v46, %v2696_v1  ;;  %v6136_v27 = vld [vmem:[#allocation18_spill] sm:$0xff] }
 0x1df   : > { %v2929_v17 = vpop.f32.mrf.mxu1  ;;  %v3299_v61 = vpop.f32.mrf.mxu0  ;;  %v2334_v3 = vadd.f32 %v6136_v27, %v6135_v41  ;;  %v6154_v27 = vld [vmem:[#allocation27_spill] sm:$0xff] }
 0x1e0   : > { %3568 = vst [vmem:[%s5935_s12 + $0x38] sm:$0xff] %v3536_v10  ;;  %v3534_v15 = vadd.f32 %v5927_v18, %v3431_v25  ;;  %v3436_v26 = vadd.f32 %v4730_v50, %v3066_v21  ;;  %v3064_v63 = vadd.f32 %v2929_v17, %v2694_v53  ;;  %v2702_v53 = vadd.f32 %v6137_v57, %v2331_v16  ;;  %v6139_v10 = vld [vmem:[#allocation20_spill] sm:$0xff]  ;;  %v6140_v17 = vld [vmem:[#allocation5_spill] sm:$0xff]  ;;  %v6155_v57 = vld [vmem:[#allocation10_spill] sm:$0xff] }
 0x1e1   : > { %v4683_v32 = vpop.f32.mrf.mxu1  ;;  %v4731_v62 = vpop.f32.mrf.mxu0  ;;  %v2332_v25 = vadd.f32 %v6139_v10, %v6138_v24  ;;  %v6150_v16 = vld [vmem:[#allocation8_spill] sm:$0xff]  ;;  %v6157_v10 = vld [vmem:[#allocation29_spill] sm:$0xff] }
 0x1e2   : > { %3566 = vst [vmem:[%s5935_s12 + $0x28] sm:$0xff] %v3534_v15  ;;  %v3539_v40 = vadd.f32 %v5927_v18, %v3436_v26  ;;  %v3434_v56 = vadd.f32 %v3299_v61, %v3064_v63  ;;  %v3067_v7 = vadd.f32 %v4683_v32, %v2697_v6  ;;  %v6141_v61 = vld [vmem:[#allocation22_spill] sm:$0xff]  ;;  %v6142_v63 = vld [vmem:[#allocation19_spill] sm:$0xff] }
 0x1e3   : > { %v2932_v20 = vpop.f32.mrf.mxu1  ;;  %v3302_v36 = vpop.f32.mrf.mxu0  ;;  %v2337_v6 = vadd.f32 %v6141_v61, %v6140_v17  ;;  %v2705_v42 = vadd.f32 %v6142_v63, %v2334_v3  ;;  %v6158_v17 = vld [vmem:[#allocation31_spill] sm:$0xff]  ;;  %v6160_v63 = vld [vmem:[#allocation34_spill] sm:$0xff] }
 0x1e4   : > { %3571 = vst [vmem:[%s5935_s12 + $0x50] sm:$0xff] %v3539_v40  ;;  %v3537_v58 = vadd.f32 %v5927_v18, %v3434_v56  ;;  %v3437_v0 = vadd.f32 %v4731_v62, %v3067_v7  ;;  %v3065_v37 = vadd.f32 %v2932_v20, %v2695_v43  ;;  %v6143_v40 = vld [vmem:[#allocation6_spill] sm:$0xff]  ;;  %v6144_v56 = vld [vmem:[#allocation24_spill] sm:$0xff] }
 0x1e5   : > { %v4686_v9 = vpop.f32.mrf.mxu1  ;;  %v4734_v35 = vpop.f32.mrf.mxu0  ;;  %v2335_v7 = vadd.f32 %v6144_v56, %v6143_v40  ;;  %v6161_v40 = vld [vmem:[#allocation33_spill] sm:$0xff] }
 0x1e6   : > { %3569 = vst [vmem:[%s5935_s12 + $0x40] sm:$0xff] %v3537_v58  ;;  %v3540_v47 = vadd.f32 %v5927_v18, %v3437_v0  ;;  %v3435_v51 = vadd.f32 %v3302_v36, %v3065_v37  ;;  %v3070_v8 = vadd.f32 %v4686_v9, %v2700_v60  ;;  %v6145_v36 = vld [vmem:[#allocation21_spill] sm:$0xff] }
 0x1e7   : > { %v2945_v33 = vpop.f32.mrf.mxu1  ;;  %v3315_v28 = vpop.f32.mrf.mxu0  ;;  %v2703_v49 = vadd.f32 %v6145_v36, %v2332_v25  ;;  %v6163_v36 = vld [vmem:[#allocation36_spill] sm:$0xff] }
 0x1e8   : > { %3572 = vst [vmem:[%s5935_s12 + $0x58] sm:$0xff] %v3540_v47  ;;  %v3538_v2 = vadd.f32 %v5927_v18, %v3435_v51  ;;  %v3440_v19 = vadd.f32 %v4734_v35, %v3070_v8  ;;  %v3068_v52 = vadd.f32 %v2945_v33, %v2698_v23  ;;  %v6146_v23 = vld [vmem:[#allocation23_spill] sm:$0xff]  ;;  %v6148_v51 = vld [vmem:[#allocation26_spill] sm:$0xff] }
 0x1e9   : > { %v4687_v4 = vpop.f32.mrf.mxu1  ;;  %v4735_v39 = vpop.f32.mrf.mxu0  ;;  %v2708_v9 = vadd.f32 %v6146_v23, %v2337_v6  ;;  %v6147_v47 = vld [vmem:[#allocation7_spill] sm:$0xff]  ;;  %v6164_v23 = vld [vmem:[#allocation13_spill] sm:$0xff] }
 0x1ea   : > { %3570 = vst [vmem:[%s5935_s12 + $0x48] sm:$0xff] %v3538_v2  ;;  %v3543_v38 = vadd.f32 %v5927_v18, %v3440_v19  ;;  %v3438_v44 = vadd.f32 %v3315_v28, %v3068_v52  ;;  %v3071_v1 = vadd.f32 %v4687_v4, %v2701_v14  ;;  %v2338_v8 = vadd.f32 %v6148_v51, %v6147_v47  ;;  %v6149_v14 = vld [vmem:[#allocation25_spill] sm:$0xff]  ;;  %v6151_v4 = vld [vmem:[#allocation28_spill] sm:$0xff]  ;;  %v6166_v51 = vld [vmem:[#allocation35_spill] sm:$0xff] }
 0x1eb   : > { %v2948_v48 = vpop.f32.mrf.mxu1  ;;  %v3318_v13 = vpop.f32.mrf.mxu0  ;;  %v2706_v2 = vadd.f32 %v6149_v14, %v2335_v7  ;;  %v6167_v14 = vld [vmem:[#allocation14_spill] sm:$0xff] }
 0x1ec   : > { %3575 = vst [vmem:[%s5935_s12 + $0x70] sm:$0xff] %v3543_v38  ;;  %v3541_v55 = vadd.f32 %v5927_v18, %v3438_v44  ;;  %v3441_v11 = vadd.f32 %v4735_v39, %v3071_v1  ;;  %v3069_v34 = vadd.f32 %v2948_v48, %v2699_v54  ;;  %v2336_v39 = vadd.f32 %v6151_v4, %v6150_v16  ;;  %v6152_v1 = vld [vmem:[#allocation9_spill] sm:$0xff] }
 0x1ed   : > { %v4690_v46 = vpop.f32.mrf.mxu1  ;;  %v4738_v50 = vpop.f32.mrf.mxu0  ;;  %v2709_v3 = vadd.f32 %v6154_v27, %v2338_v8  ;;  %v6169_v4 = vld [vmem:[#allocation37_spill] sm:$0xff] }
 0x1ee   : > { %3573 = vst [vmem:[%s5935_s12 + $0x60] sm:$0xff] %v3541_v55  ;;  %v3544_v22 = vadd.f32 %v5927_v18, %v3441_v11  ;;  %v3439_v21 = vadd.f32 %v3318_v13, %v3069_v34  ;;  %v3074_v12 = vadd.f32 %v4690_v46, %v2704_v59  ;;  %v6153_v59 = vld [vmem:[#allocation30_spill] sm:$0xff]  ;;  %v2707_v25 = vadd.f32 %v6157_v10, %v2336_v39 }
 0x1ef   : > { %v2961_v15 = vpop.f32.mrf.mxu1  ;;  %v3331_v26 = vpop.f32.mrf.mxu0  ;;  %v2341_v48 = vadd.f32 %v6153_v59, %v6152_v1  ;;  %v6170_v1 = vld [vmem:[#allocation39_spill] sm:$0xff] }
 0x1f0   : > { %3576 = vst [vmem:[%s5935_s12 + $0x78] sm:$0xff] %v3544_v22  ;;  %v3542_v32 = vadd.f32 %v5927_v18, %v3439_v21  ;;  %v3444_v62 = vadd.f32 %v4738_v50, %v3074_v12  ;;  %v3072_v43 = vadd.f32 %v2961_v15, %v2702_v53  ;;  %v6156_v53 = vld [vmem:[#allocation32_spill] sm:$0xff] }
 0x1f1   : > { %v4691_v60 = vpop.f32.mrf.mxu1  ;;  %v4739_v20 = vpop.f32.mrf.mxu0  ;;  %v2339_v46 = vadd.f32 %v6156_v53, %v6155_v57  ;;  %v2712_v61 = vadd.f32 %v6158_v17, %v2341_v48 }
 0x1f2   : > { %3574 = vst [vmem:[%s5935_s12 + $0x68] sm:$0xff] %v3542_v32  ;;  %v3547_v58 = vadd.f32 %v5927_v18, %v3444_v62  ;;  %v3442_v0 = vadd.f32 %v3331_v26, %v3072_v43  ;;  %v3075_v37 = vadd.f32 %v4691_v60, %v2705_v42  ;;  %v6159_v26 = vld [vmem:[#allocation11_spill] sm:$0xff] }
 0x1f3   : > { %v2964_v35 = vpop.f32.mrf.mxu1  ;;  %v3334_v29 = vpop.f32.mrf.mxu0  ;;  %v2342_v42 = vadd.f32 %v6160_v63, %v6159_v26  ;;  %v2710_v56 = vadd.f32 %v6161_v40, %v2339_v46 }
 0x1f4   : > { %3579 = vst [vmem:[%s5935_s12 + $0x90] sm:$0xff] %v3547_v58  ;;  %v3545_v30 = vadd.f32 %v5927_v18, %v3442_v0  ;;  %v3445_v33 = vadd.f32 %v4739_v20, %v3075_v37  ;;  %v3073_v28 = vadd.f32 %v2964_v35, %v2703_v49  ;;  %v6162_v20 = vld [vmem:[#allocation12_spill] sm:$0xff] }
 0x1f5   : > { %v4694_v19 = vpop.f32.mrf.mxu1  ;;  %v4742_v52 = vpop.f32.mrf.mxu0  ;;  %v2340_v49 = vadd.f32 %v6163_v36, %v6162_v20  ;;  %v2713_v8 = vadd.f32 %v6166_v51, %v2342_v42 }
 0x1f6   : > { %3577 = vst [vmem:[%s5935_s12 + $0x80] sm:$0xff] %v3545_v30  ;;  %v3548_v54 = vadd.f32 %v5927_v18, %v3445_v33  ;;  %v3443_v38 = vadd.f32 %v3334_v29, %v3073_v28  ;;  %v3078_v44 = vadd.f32 %v4694_v19, %v2708_v9  ;;  %v6165_v9 = vld [vmem:[#allocation38_spill] sm:$0xff] }
 0x1f7   : > { %v2977_v13 = vpop.f32.mrf.mxu1  ;;  %v3347_v41 = vpop.f32.mrf.mxu0  ;;  %v2345_v35 = vadd.f32 %v6165_v9, %v6164_v23  ;;  %v2711_v39 = vadd.f32 %v6169_v4, %v2340_v49 }
 0x1f8   : > { %3580 = vst [vmem:[%s5935_s12 + $0x98] sm:$0xff] %v3548_v54  ;;  %v3546_v55 = vadd.f32 %v5927_v18, %v3443_v38  ;;  %v3448_v11 = vadd.f32 %v4742_v52, %v3078_v44  ;;  %v3076_v34 = vadd.f32 %v2977_v13, %v2706_v2  ;;  %v6168_v2 = vld [vmem:[#allocation40_spill] sm:$0xff] }
 0x1f9   : > { %v4695_v50 = vpop.f32.mrf.mxu1  ;;  %v4743_v24 = vpop.f32.mrf.mxu0  ;;  %v2343_v19 = vadd.f32 %v6168_v2, %v6167_v14  ;;  %v2716_v59 = vadd.f32 %v6170_v1, %v2345_v35 }
 0x1fa   : > { %3578 = vst [vmem:[%s5935_s12 + $0x88] sm:$0xff] %v3546_v55  ;;  %v3551_v22 = vadd.f32 %v5927_v18, %v3448_v11  ;;  %v3446_v21 = vadd.f32 %v3347_v41, %v3076_v34  ;;  %v3079_v12 = vadd.f32 %v4695_v50, %v2709_v3  ;;  %v6171_v41 = vld [vmem:[#allocation15_spill] sm:$0xff]  ;;  %v6172_v34 = vld [vmem:[#allocation41_spill] sm:$0xff]  ;;  %v6173_v50 = vld [vmem:[#allocation16_spill] sm:$0xff] }
 0x1fb   : > { %v2980_v6 = vpop.f32.mrf.mxu1  ;;  %v3350_v15 = vpop.f32.mrf.mxu0  ;;  %v2346_v27 = vadd.f32 %v5906_v5, %v6171_v41  ;;  %v2714_v57 = vadd.f32 %v6172_v34, %v2343_v19 }
 0x1fc   : > { %3583 = vst [vmem:[%s5935_s12 + $0xb0] sm:$0xff] %v3551_v22  ;;  %v3549_v32 = vadd.f32 %v5927_v18, %v3446_v21  ;;  %v3449_v62 = vadd.f32 %v4743_v24, %v3079_v12  ;;  %v3077_v43 = vadd.f32 %v2980_v6, %v2707_v25  ;;  %v2344_v24 = vadd.f32 %v5911_v31, %v6173_v50  ;;  %v6174_v31 = vld [vmem:[#allocation42_spill] sm:$0xff] }
 0x1fd   : > { %v4698_v7 = vpop.f32.mrf.mxu1  ;;  %v4746_v60 = vpop.f32.mrf.mxu0  ;;  %v2717_v12 = vadd.f32 %v5908_v45, %v2346_v27 }
 0x1fe   : > { %3581 = vst [vmem:[%s5935_s12 + $0xa0] sm:$0xff] %v3549_v32  ;;  %v3552_v58 = vadd.f32 %v5927_v18, %v3449_v62  ;;  %v3447_v0 = vadd.f32 %v3350_v15, %v3077_v43  ;;  %v3082_v37 = vadd.f32 %v4698_v7, %v2712_v61  ;;  %v2715_v63 = vadd.f32 %v6174_v31, %v2344_v24 }
 0x1ff   : > { %v2993_v29 = vpop.f32.mrf.mxu1  ;;  %v3363_v47 = vpop.f32.mrf.mxu0 }
 0x200   : > { %3584 = vst [vmem:[%s5935_s12 + $0xb8] sm:$0xff] %v3552_v58  ;;  %v3550_v30 = vadd.f32 %v5927_v18, %v3447_v0  ;;  %v3452_v33 = vadd.f32 %v4746_v60, %v3082_v37  ;;  %v3080_v28 = vadd.f32 %v2993_v29, %v2710_v56 }
 0x201   : > { %v4699_v52 = vpop.f32.mrf.mxu1  ;;  %v4747_v16 = vpop.f32.mrf.mxu0 }
 0x202   : > { %3582 = vst [vmem:[%s5935_s12 + $0xa8] sm:$0xff] %v3550_v30  ;;  %v3555_v54 = vadd.f32 %v5927_v18, %v3452_v33  ;;  %v3450_v38 = vadd.f32 %v3363_v47, %v3080_v28  ;;  %v3083_v44 = vadd.f32 %v4699_v52, %v2713_v8 }
 0x203   : > { %v2996_v48 = vpop.f32.mrf.mxu1  ;;  %v3366_v13 = vpop.f32.mrf.mxu0 }
 0x204   : > { %3587 = vst [vmem:[%s5935_s12 + $0xd0] sm:$0xff] %v3555_v54  ;;  %v3553_v3 = vadd.f32 %v5927_v18, %v3450_v38  ;;  %v3453_v55 = vadd.f32 %v4747_v16, %v3083_v44  ;;  %v3081_v11 = vadd.f32 %v2996_v48, %v2711_v39 }
 0x205   : > { %v4702_v53 = vpop.f32.mrf.mxu1  ;;  %v4750_v46 = vpop.f32.mrf.mxu0 }
 0x206   : > { %3585 = vst [vmem:[%s5935_s12 + $0xc0] sm:$0xff] %v3553_v3  ;;  %v3556_v10 = vadd.f32 %v5927_v18, %v3453_v55  ;;  %v3451_v25 = vadd.f32 %v3366_v13, %v3081_v11  ;;  %v3086_v22 = vadd.f32 %v4702_v53, %v2716_v59 }
 0x207   : > { %v3009_v5 = vpop.f32.mrf.mxu1  ;;  %v3379_v21 = vpop.f32.mrf.mxu0 }
 0x208   : > { %3588 = vst [vmem:[%s5935_s12 + $0xd8] sm:$0xff] %v3556_v10  ;;  %v3554_v17 = vadd.f32 %v5927_v18, %v3451_v25  ;;  %v3456_v61 = vadd.f32 %v4750_v46, %v3086_v22  ;;  %v3084_v6 = vadd.f32 %v3009_v5, %v2714_v57 }
 0x209   : > { %v4703_v15 = vpop.f32.mrf.mxu1  ;;  %v4751_v26 = vpop.f32.mrf.mxu0 }
 0x20a   : > { %3586 = vst [vmem:[%s5935_s12 + $0xc8] sm:$0xff] %v3554_v17  ;;  %v3559_v42 = vadd.f32 %v5927_v18, %v3456_v61  ;;  %v3454_v32 = vadd.f32 %v3379_v21, %v3084_v6  ;;  %v3087_v62 = vadd.f32 %v4703_v15, %v2717_v12 }
 0x20b   : > { %v3012_v43 = vpop.f32.mrf.mxu1  ;;  %v3382_v7 = vpop.f32.mrf.mxu0 }
 0x20c   : > { %3591 = vst [vmem:[%s5935_s12 + $0xf0] sm:$0xff] %v3559_v42  ;;  %v3557_v45 = vadd.f32 %v5927_v18, %v3454_v32  ;;  %v3457_v40 = vadd.f32 %v4751_v26, %v3087_v62  ;;  %v3085_v56 = vadd.f32 %v3012_v43, %v2715_v63 }
 0x20e   : > { %3589 = vst [vmem:[%s5935_s12 + $0xe0] sm:$0xff] %v3557_v45  ;;  %v3560_v60 = vadd.f32 %v5927_v18, %v3457_v40  ;;  %v3455_v20 = vadd.f32 %v3382_v7, %v3085_v56 }
 0x210   : > { %3592 = vst [vmem:[%s5935_s12 + $0xf8] sm:$0xff] %v3560_v60  ;;  %v3558_v36 = vadd.f32 %v5927_v18, %v3455_v20 }
 0x212   : > { %3590 = vst [vmem:[%s5935_s12 + $0xe8] sm:$0xff] %v3558_v36 }
 0x213 PF: > { %s13_s14 = sadd.s32 1, %s4887_s14   ;;  %s6175_s12 = smov %s4883_s13 }
 0x214   : > { %p10_p5 = scmp.ge.s32.totalorder %s13_s14, 4   ;;  %s6176_s13 = smov %s6178_s15 }
 0x216   :  { %12 = sbr.rel (!%p10_p5) target bundleno = 2 (0x2), region = 78 }

</bundles_post_ra>
